<compile_context>
chip_gen: v7x
topology: tpu7x:2x2x1
jax: 0.10.0
libtpu: 0.0.40
codegen_flags: <defaults>
</compile_context>

<pallas_src>
import jax
import jax.numpy as jnp
from jax.experimental import pallas as pl
from jax.experimental.pallas import tpu as pltpu


def _round_up(n, m):
    return (n + m - 1) // m * m


# ---------------------------------------------------------------------------
# Kernels
# ---------------------------------------------------------------------------
def conv_taps_kernel(p_ref, w_ref, b_ref, o_ref):
    """Fused conv(+bias)+relu(+2x2 maxpool) on im2col patches, feature-major.

    p_ref: (T, KKC, TM)  T pool taps of patches (T=1 -> no pooling)
    w_ref: (Cout, KKC)   resident across grid steps
    b_ref: (Cout, 1)
    o_ref: (Cout, TM)    lane-dense output tile
    """
    n_taps = p_ref.shape[0]
    acc = None
    for t in range(n_taps):
        h = jnp.dot(w_ref[...], p_ref[t], preferred_element_type=jnp.float32)
        h = jnp.maximum(h + b_ref[...], 0.0)             # bias + relu
        acc = h if acc is None else jnp.maximum(acc, h)  # max-pool over taps
    o_ref[...] = acc.astype(o_ref.dtype)


def head_kernel(x_ref, w1_ref, b1_ref, g_ref, c_ref, w2_ref, b2_ref, o_ref):
    """fc1 + relu + bn1(eval affine) + relu + fc2 + log_softmax.

    x_ref:  (TB, 256)
    w1_ref: (256, 64)   b1_ref: (1, 64)
    g_ref:  (1, 64) bn scale   c_ref: (1, 64) bn shift
    w2_ref: (64, 128) zero-padded   b2_ref: (1, 128) padded cols = -1e30
    o_ref:  (TB, 128) lane-dense; padded cols sliced off by the wrapper
    """
    h = jnp.dot(x_ref[...], w1_ref[...], preferred_element_type=jnp.float32)
    h = jnp.maximum(h + b1_ref[...], 0.0)             # fc1 + relu
    h = h * g_ref[...] + c_ref[...]                   # bn1 (eval)
    h = jnp.maximum(h, 0.0)                           # relu
    z = jnp.dot(h, w2_ref[...],
                preferred_element_type=jnp.float32) + b2_ref[...]
    m = jnp.max(z, axis=1, keepdims=True)             # padded cols are -1e30
    s = z - m
    lse = jnp.log(jnp.sum(jnp.exp(s), axis=1, keepdims=True))
    o_ref[...] = (s - lse).astype(o_ref.dtype)        # log_softmax


# ---------------------------------------------------------------------------
# Wrappers
# ---------------------------------------------------------------------------
def _im2col_nhwc(x, k, pad):
    if pad:
        x = jnp.pad(x, ((0, 0), (pad, pad), (pad, pad), (0, 0)))
    _, h, w, _ = x.shape
    ho, wo = h - k + 1, w - k + 1
    cols = [x[:, i:i + ho, j:j + wo, :] for i in range(k) for j in range(k)]
    return jnp.concatenate(cols, axis=-1)             # (B, Ho, Wo, K*K*C)


def conv_relu_pool(x_nhwc, w_hwio, bias, *, pad=0, pool=False):
    """Stride-1 conv + bias + relu (+ 2x2/2 maxpool) via a Pallas kernel."""
    k = w_hwio.shape[0]
    cout = w_hwio.shape[3]
    patches = _im2col_nhwc(x_nhwc, k, pad)            # (B, Ho, Wo, KKC)
    batch, ho, wo, kkc = patches.shape
    if pool:
        taps = [patches[:, di::2, dj::2, :] for di in (0, 1) for dj in (0, 1)]
        hp, wp = ho // 2, wo // 2
    else:
        taps = [patches]
        hp, wp = ho, wo
    n_taps = len(taps)

    m = batch * hp * wp
    tm = min(512, _round_up(m, 128))                  # 128-aligned lane tile
    mp = _round_up(m, tm)

    # Feature-major, lane-dense in M: (T, KKC, Mp)
    p = jnp.stack([t.reshape(m, kkc).T for t in taps], axis=0)
    p = jnp.pad(p, ((0, 0), (0, 0), (0, mp - m))).astype(jnp.float32)
    w2d = w_hwio.reshape(kkc, cout).T.astype(jnp.float32)   # (Cout, KKC)
    b2d = bias.reshape(cout, 1).astype(jnp.float32)

    out = pl.pallas_call(
        conv_taps_kernel,
        out_shape=jax.ShapeDtypeStruct((cout, mp), jnp.float32),
        grid_spec=pltpu.PrefetchScalarGridSpec(
            num_scalar_prefetch=0,
            grid=(mp // tm,),
            in_specs=[
                pl.BlockSpec((n_taps, kkc, tm), lambda i: (0, 0, i)),
                pl.BlockSpec((cout, kkc), lambda i: (0, 0)),
                pl.BlockSpec((cout, 1), lambda i: (0, 0)),
            ],
            out_specs=pl.BlockSpec((cout, tm), lambda i: (0, i)),
        ),
        compiler_params=pltpu.CompilerParams(
            dimension_semantics=("parallel",)),
        cost_estimate=pl.CostEstimate(
            flops=int(2 * n_taps * cout * kkc * mp),
            transcendentals=0,
            bytes_accessed=int(p.size * 4 + w2d.size * 4 + cout * mp * 4)),
    )(p, w2d, b2d)

    out = out[:, :m]                                  # (Cout, M)
    return out.reshape(cout, batch, hp, wp).transpose(1, 2, 3, 0)  # NHWC


def fc_head(x_fc, params):
    b, d = x_fc.shape                                 # (B, 256)
    hdim = params["fc1_w"].shape[1]                   # 64
    odim = params["fc2_w"].shape[1]                   # 10
    opad = 128                                        # lane-dense output

    scale = params["bn_gamma"] * jax.lax.rsqrt(params["bn_var"] + 1e-5)
    shift = params["bn_beta"] - params["bn_mean"] * scale

    w2p = jnp.zeros((hdim, opad), jnp.float32).at[:, :odim].set(params["fc2_w"])
    b2p = jnp.full((1, opad), -1e30, jnp.float32).at[0, :odim].set(params["fc2_b"])

    tb = 128 if b >= 128 else _round_up(b, 8)
    bp = _round_up(b, tb)
    xp = jnp.pad(x_fc, ((0, bp - b), (0, 0))).astype(jnp.float32)
    w1 = params["fc1_w"].astype(jnp.float32)

    out = pl.pallas_call(
        head_kernel,
        out_shape=jax.ShapeDtypeStruct((bp, opad), jnp.float32),
        grid_spec=pltpu.PrefetchScalarGridSpec(
            num_scalar_prefetch=0,
            grid=(bp // tb,),
            in_specs=[
                pl.BlockSpec((tb, d), lambda i: (i, 0)),
                pl.BlockSpec((d, hdim), lambda i: (0, 0)),
                pl.BlockSpec((1, hdim), lambda i: (0, 0)),
                pl.BlockSpec((1, hdim), lambda i: (0, 0)),
                pl.BlockSpec((1, hdim), lambda i: (0, 0)),
                pl.BlockSpec((hdim, opad), lambda i: (0, 0)),
                pl.BlockSpec((1, opad), lambda i: (0, 0)),
            ],
            out_specs=pl.BlockSpec((tb, opad), lambda i: (i, 0)),
        ),
        compiler_params=pltpu.CompilerParams(
            dimension_semantics=("parallel",)),
        cost_estimate=pl.CostEstimate(
            flops=int(2 * bp * (d * hdim + hdim * opad)),
            transcendentals=int(bp * opad),
            bytes_accessed=int(xp.size * 4 + w1.size * 4
                               + w2p.size * 4 + bp * opad * 4)),
    )(xp, w1, params["fc1_b"].reshape(1, hdim),
      scale.reshape(1, hdim), shift.reshape(1, hdim), w2p, b2p)

    return out[:b, :odim]


@jax.jit
def net_forward(x_nchw, params):
    x = jnp.transpose(x_nchw, (0, 2, 3, 1))                       # NHWC
    x = conv_relu_pool(x, params["conv1_w"], params["conv1_b"],
                       pad=0, pool=False)                         # (B,24,24,8)
    # drop1: identity (eval)
    x = conv_relu_pool(x, params["conv2_w"], params["conv2_b"],
                       pad=2, pool=True)                          # (B,12,12,8)
    # drop2: identity (eval)
    x = conv_relu_pool(x, params["conv3_w"], params["conv3_b"],
                       pad=0, pool=True)                          # (B,4,4,16)
    # drop3: identity (eval)
    b = x.shape[0]
    x_fc = jnp.transpose(x, (0, 3, 1, 2)).reshape(b, -1)          # NCHW flatten
    return fc_head(x_fc, params)                                  # (B, 10)


# ---------------------------------------------------------------------------
# Pure-JAX reference (independent path) and demo
# ---------------------------------------------------------------------------
def net_reference(x_nchw, params):
    hi = jax.lax.Precision.HIGHEST
    x = jnp.transpose(x_nchw, (0, 2, 3, 1))

    def conv(y, w, bias, pad):
        out = jax.lax.conv_general_dilated(
            y, w, window_strides=(1, 1),
            padding=((pad, pad), (pad, pad)),
            dimension_numbers=("NHWC", "HWIO", "NHWC"), precision=hi)
        return out + bias

    def pool(y):
        b, h, w, c = y.shape
        return y.reshape(b, h // 2, 2, w // 2, 2, c).max(axis=(2, 4))

    x = jnp.maximum(conv(x, params["conv1_w"], params["conv1_b"], 0), 0.0)
    x = jnp.maximum(conv(x, params["conv2_w"], params["conv2_b"], 2), 0.0)
    x = pool(x)
    x = jnp.maximum(conv(x, params["conv3_w"], params["conv3_b"], 0), 0.0)
    x = pool(x)
    b = x.shape[0]
    x = jnp.transpose(x, (0, 3, 1, 2)).reshape(b, -1)
    h = jnp.maximum(jnp.dot(x, params["fc1_w"], precision=hi) + params["fc1_b"], 0.0)
    scale = params["bn_gamma"] / jnp.sqrt(params["bn_var"] + 1e-5)
    h = (h - params["bn_mean"]) * scale + params["bn_beta"]
    h = jnp.maximum(h, 0.0)
    z = jnp.dot(h, params["fc2_w"], precision=hi) + params["fc2_b"]
    return jax.nn.log_softmax(z, axis=1)


if __name__ == "__main__":
    key = jax.random.PRNGKey(0)
    keys = jax.random.split(key, 16)

    B = 4                                   # MNIST-shaped input (B, 1, 28, 28)
    x = jax.random.normal(keys[0], (B, 1, 28, 28), jnp.float32)

    def uniform(k, shape, fan_in):          # mimics nn.Linear/Conv2d init bound
        bound = float(fan_in) ** -0.5
        return jax.random.uniform(k, shape, jnp.float32, -bound, bound)

    params = {
        "conv1_w": uniform(keys[1], (5, 5, 1, 8), 25),     # HWIO
        "conv1_b": uniform(keys[2], (8,), 25),
        "conv2_w": uniform(keys[3], (5, 5, 8, 8), 200),
        "conv2_b": uniform(keys[4], (8,), 200),
        "conv3_w": uniform(keys[5], (5, 5, 8, 16), 200),
        "conv3_b": uniform(keys[6], (16,), 200),
        "fc1_w": uniform(keys[7], (256, 64), 256),
        "fc1_b": uniform(keys[8], (64,), 256),
        "fc2_w": uniform(keys[9], (64, 10), 64),
        "fc2_b": uniform(keys[10], (10,), 64),
        "bn_gamma": jax.random.uniform(keys[11], (64,), jnp.float32, 0.5, 1.5),
        "bn_beta": 0.1 * jax.random.normal(keys[12], (64,), jnp.float32),
        "bn_mean": 0.1 * jax.random.normal(keys[13], (64,), jnp.float32),
        "bn_var": jax.random.uniform(keys[14], (64,), jnp.float32, 0.5, 1.5),
    }

    out = jax.block_until_ready(net_forward(x, params))
    ref = net_reference(x, params)

    assert out.shape == (B, 10)
    assert bool(jnp.all(jnp.isfinite(out)))
    assert bool(jnp.allclose(out, ref, atol=1e-3, rtol=1e-3)), (
        float(jnp.max(jnp.abs(out - ref))))

    print("KERNEL_OK")
</pallas_src>

<mosaic_0001>
module attributes {stable_mosaic.version = 11 : i64} {
  func.func @conv_taps_kernel(%arg0: i32, %arg1: memref<1x25x512xf32, #tpu.memory_space<vmem>>, %arg2: memref<8x25xf32, #tpu.memory_space<vmem>>, %arg3: memref<8x1xf32, #tpu.memory_space<vmem>>, %arg4: memref<8x512xf32, #tpu.memory_space<vmem>>) attributes {dimension_semantics = [#tpu.dimension_semantics<parallel>], iteration_bounds = array<i64: 5>, scalar_prefetch = 0 : i64, scratch_operands = 0 : i64, tpu.core_type = #tpu.core_type<tc>, window_params = [{transform_indices = @transform_0, window_bounds = array<i64: 1, 25, 512>}, {pipeline_mode = #tpu.pipeline_mode<synchronous>, transform_indices = @transform_1, window_bounds = array<i64: 8, 25>}, {pipeline_mode = #tpu.pipeline_mode<synchronous>, transform_indices = @transform_2, window_bounds = array<i64: 8, 1>}, {transform_indices = @transform_3, window_bounds = array<i64: 8, 512>}]} {
    %c0 = arith.constant 0 : index
    %c0_0 = arith.constant 0 : index
    %0 = vector.load %arg2[%c0, %c0_0] : memref<8x25xf32, #tpu.memory_space<vmem>>, vector<8x25xf32>
    %c0_1 = arith.constant 0 : index
    %c0_2 = arith.constant 0 : index
    %c0_3 = arith.constant 0 : index
    %1 = vector.load %arg1[%c0_1, %c0_2, %c0_3] : memref<1x25x512xf32, #tpu.memory_space<vmem>>, vector<1x25x512xf32>
    %2 = vector.shape_cast %1 : vector<1x25x512xf32> to vector<25x512xf32>
    %cst = arith.constant dense<0.000000e+00> : vector<8x512xf32>
    %3 = tpu.matmul %0, %2, %cst {dimension_numbers = #tpu.dot_dimension_numbers<[1], [0], [0], [1], [0, 0, 1, 1], [], []>} : vector<8x25xf32>, vector<25x512xf32>, vector<8x512xf32> -> vector<8x512xf32>
    %c0_4 = arith.constant 0 : index
    %c0_5 = arith.constant 0 : index
    %4 = vector.load %arg3[%c0_4, %c0_5] : memref<8x1xf32, #tpu.memory_space<vmem>>, vector<8x1xf32>
    %5 = vector.broadcast %4 : vector<8x1xf32> to vector<8x512xf32>
    %6 = arith.addf %3, %5 : vector<8x512xf32>
    %cst_6 = arith.constant 0.000000e+00 : f32
    %7 = vector.broadcast %cst_6 : f32 to vector<8x512xf32>
    %8 = arith.maximumf %6, %7 : vector<8x512xf32>
    %c0_7 = arith.constant 0 : index
    %c0_8 = arith.constant 0 : index
    %9 = vector.load %arg4[%c0_7, %c0_8] : memref<8x512xf32, #tpu.memory_space<vmem>>, vector<8x512xf32>
    tpu.vector_store %arg4[%c0_7, %c0_8], %8 {strides = array<i32>} : memref<8x512xf32, #tpu.memory_space<vmem>>, vector<8x512xf32>,
    return
  }
  func.func @transform_0(%arg0: i32) -> (i32, i32, i32) {
    %c0_i32 = arith.constant 0 : i32
    %c0_i32_0 = arith.constant 0 : i32
    %c0_i32_1 = arith.constant 0 : i32
    return %c0_i32, %c0_i32_0, %arg0 : i32, i32, i32
  }
  func.func @transform_1(%arg0: i32) -> (i32, i32) {
    %c0_i32 = arith.constant 0 : i32
    %c0_i32_0 = arith.constant 0 : i32
    %c0_i32_1 = arith.constant 0 : i32
    return %c0_i32, %c0_i32_0 : i32, i32
  }
  func.func @transform_2(%arg0: i32) -> (i32, i32) {
    %c0_i32 = arith.constant 0 : i32
    %c0_i32_0 = arith.constant 0 : i32
    %c0_i32_1 = arith.constant 0 : i32
    return %c0_i32, %c0_i32_0 : i32, i32
  }
  func.func @transform_3(%arg0: i32) -> (i32, i32) {
    %c0_i32 = arith.constant 0 : i32
    %c0_i32_0 = arith.constant 0 : i32
    return %c0_i32, %arg0 : i32, i32
  }
}

module attributes {stable_mosaic.version = 11 : i64} {
  func.func @conv_taps_kernel(%arg0: i32, %arg1: memref<4x200x512xf32, #tpu.memory_space<vmem>>, %arg2: memref<8x200xf32, #tpu.memory_space<vmem>>, %arg3: memref<8x1xf32, #tpu.memory_space<vmem>>, %arg4: memref<8x512xf32, #tpu.memory_space<vmem>>) attributes {dimension_semantics = [#tpu.dimension_semantics<parallel>], iteration_bounds = array<i64: 2>, scalar_prefetch = 0 : i64, scratch_operands = 0 : i64, tpu.core_type = #tpu.core_type<tc>, window_params = [{transform_indices = @transform_0, window_bounds = array<i64: 4, 200, 512>}, {pipeline_mode = #tpu.pipeline_mode<synchronous>, transform_indices = @transform_1, window_bounds = array<i64: 8, 200>}, {pipeline_mode = #tpu.pipeline_mode<synchronous>, transform_indices = @transform_2, window_bounds = array<i64: 8, 1>}, {transform_indices = @transform_3, window_bounds = array<i64: 8, 512>}]} {
    %c0 = arith.constant 0 : index
    %c0_0 = arith.constant 0 : index
    %0 = vector.load %arg2[%c0, %c0_0] : memref<8x200xf32, #tpu.memory_space<vmem>>, vector<8x200xf32>
    %c0_1 = arith.constant 0 : index
    %c0_2 = arith.constant 0 : index
    %c0_3 = arith.constant 0 : index
    %1 = vector.load %arg1[%c0_1, %c0_2, %c0_3] : memref<4x200x512xf32, #tpu.memory_space<vmem>>, vector<1x200x512xf32>
    %2 = vector.shape_cast %1 : vector<1x200x512xf32> to vector<200x512xf32>
    %cst = arith.constant dense<0.000000e+00> : vector<8x512xf32>
    %3 = tpu.matmul %0, %2, %cst {dimension_numbers = #tpu.dot_dimension_numbers<[1], [0], [0], [1], [0, 0, 1, 1], [], []>} : vector<8x200xf32>, vector<200x512xf32>, vector<8x512xf32> -> vector<8x512xf32>
    %c0_4 = arith.constant 0 : index
    %c0_5 = arith.constant 0 : index
    %4 = vector.load %arg3[%c0_4, %c0_5] : memref<8x1xf32, #tpu.memory_space<vmem>>, vector<8x1xf32>
    %5 = vector.broadcast %4 : vector<8x1xf32> to vector<8x512xf32>
    %6 = arith.addf %3, %5 : vector<8x512xf32>
    %cst_6 = arith.constant 0.000000e+00 : f32
    %7 = vector.broadcast %cst_6 : f32 to vector<8x512xf32>
    %8 = arith.maximumf %6, %7 : vector<8x512xf32>
    %c0_7 = arith.constant 0 : index
    %c0_8 = arith.constant 0 : index
    %9 = vector.load %arg2[%c0_7, %c0_8] : memref<8x200xf32, #tpu.memory_space<vmem>>, vector<8x200xf32>
    %c1 = arith.constant 1 : index
    %c0_9 = arith.constant 0 : index
    %c0_10 = arith.constant 0 : index
    %10 = vector.load %arg1[%c1, %c0_9, %c0_10] : memref<4x200x512xf32, #tpu.memory_space<vmem>>, vector<1x200x512xf32>
    %11 = vector.shape_cast %10 : vector<1x200x512xf32> to vector<200x512xf32>
    %cst_11 = arith.constant dense<0.000000e+00> : vector<8x512xf32>
    %12 = tpu.matmul %9, %11, %cst_11 {dimension_numbers = #tpu.dot_dimension_numbers<[1], [0], [0], [1], [0, 0, 1, 1], [], []>} : vector<8x200xf32>, vector<200x512xf32>, vector<8x512xf32> -> vector<8x512xf32>
    %c0_12 = arith.constant 0 : index
    %c0_13 = arith.constant 0 : index
    %13 = vector.load %arg3[%c0_12, %c0_13] : memref<8x1xf32, #tpu.memory_space<vmem>>, vector<8x1xf32>
    %14 = vector.broadcast %13 : vector<8x1xf32> to vector<8x512xf32>
    %15 = arith.addf %12, %14 : vector<8x512xf32>
    %cst_14 = arith.constant 0.000000e+00 : f32
    %16 = vector.broadcast %cst_14 : f32 to vector<8x512xf32>
    %17 = arith.maximumf %15, %16 : vector<8x512xf32>
    %18 = arith.maximumf %8, %17 : vector<8x512xf32>
    %c0_15 = arith.constant 0 : index
    %c0_16 = arith.constant 0 : index
    %19 = vector.load %arg2[%c0_15, %c0_16] : memref<8x200xf32, #tpu.memory_space<vmem>>, vector<8x200xf32>
    %c2 = arith.constant 2 : index
    %c0_17 = arith.constant 0 : index
    %c0_18 = arith.constant 0 : index
    %20 = vector.load %arg1[%c2, %c0_17, %c0_18] : memref<4x200x512xf32, #tpu.memory_space<vmem>>, vector<1x200x512xf32>
    %21 = vector.shape_cast %20 : vector<1x200x512xf32> to vector<200x512xf32>
    %cst_19 = arith.constant dense<0.000000e+00> : vector<8x512xf32>
    %22 = tpu.matmul %19, %21, %cst_19 {dimension_numbers = #tpu.dot_dimension_numbers<[1], [0], [0], [1], [0, 0, 1, 1], [], []>} : vector<8x200xf32>, vector<200x512xf32>, vector<8x512xf32> -> vector<8x512xf32>
    %c0_20 = arith.constant 0 : index
    %c0_21 = arith.constant 0 : index
    %23 = vector.load %arg3[%c0_20, %c0_21] : memref<8x1xf32, #tpu.memory_space<vmem>>, vector<8x1xf32>
    %24 = vector.broadcast %23 : vector<8x1xf32> to vector<8x512xf32>
    %25 = arith.addf %22, %24 : vector<8x512xf32>
    %cst_22 = arith.constant 0.000000e+00 : f32
    %26 = vector.broadcast %cst_22 : f32 to vector<8x512xf32>
    %27 = arith.maximumf %25, %26 : vector<8x512xf32>
    %28 = arith.maximumf %18, %27 : vector<8x512xf32>
    %c0_23 = arith.constant 0 : index
    %c0_24 = arith.constant 0 : index
    %29 = vector.load %arg2[%c0_23, %c0_24] : memref<8x200xf32, #tpu.memory_space<vmem>>, vector<8x200xf32>
    %c3 = arith.constant 3 : index
    %c0_25 = arith.constant 0 : index
    %c0_26 = arith.constant 0 : index
    %30 = vector.load %arg1[%c3, %c0_25, %c0_26] : memref<4x200x512xf32, #tpu.memory_space<vmem>>, vector<1x200x512xf32>
    %31 = vector.shape_cast %30 : vector<1x200x512xf32> to vector<200x512xf32>
    %cst_27 = arith.constant dense<0.000000e+00> : vector<8x512xf32>
    %32 = tpu.matmul %29, %31, %cst_27 {dimension_numbers = #tpu.dot_dimension_numbers<[1], [0], [0], [1], [0, 0, 1, 1], [], []>} : vector<8x200xf32>, vector<200x512xf32>, vector<8x512xf32> -> vector<8x512xf32>
    %c0_28 = arith.constant 0 : index
    %c0_29 = arith.constant 0 : index
    %33 = vector.load %arg3[%c0_28, %c0_29] : memref<8x1xf32, #tpu.memory_space<vmem>>, vector<8x1xf32>
    %34 = vector.broadcast %33 : vector<8x1xf32> to vector<8x512xf32>
    %35 = arith.addf %32, %34 : vector<8x512xf32>
    %cst_30 = arith.constant 0.000000e+00 : f32
    %36 = vector.broadcast %cst_30 : f32 to vector<8x512xf32>
    %37 = arith.maximumf %35, %36 : vector<8x512xf32>
    %38 = arith.maximumf %28, %37 : vector<8x512xf32>
    %c0_31 = arith.constant 0 : index
    %c0_32 = arith.constant 0 : index
    %39 = vector.load %arg4[%c0_31, %c0_32] : memref<8x512xf32, #tpu.memory_space<vmem>>, vector<8x512xf32>
    tpu.vector_store %arg4[%c0_31, %c0_32], %38 {strides = array<i32>} : memref<8x512xf32, #tpu.memory_space<vmem>>, vector<8x512xf32>,
    return
  }
  func.func @transform_0(%arg0: i32) -> (i32, i32, i32) {
    %c0_i32 = arith.constant 0 : i32
    %c0_i32_0 = arith.constant 0 : i32
    %c0_i32_1 = arith.constant 0 : i32
    return %c0_i32, %c0_i32_0, %arg0 : i32, i32, i32
  }
  func.func @transform_1(%arg0: i32) -> (i32, i32) {
    %c0_i32 = arith.constant 0 : i32
    %c0_i32_0 = arith.constant 0 : i32
    %c0_i32_1 = arith.constant 0 : i32
    return %c0_i32, %c0_i32_0 : i32, i32
  }
  func.func @transform_2(%arg0: i32) -> (i32, i32) {
    %c0_i32 = arith.constant 0 : i32
    %c0_i32_0 = arith.constant 0 : i32
    %c0_i32_1 = arith.constant 0 : i32
    return %c0_i32, %c0_i32_0 : i32, i32
  }
  func.func @transform_3(%arg0: i32) -> (i32, i32) {
    %c0_i32 = arith.constant 0 : i32
    %c0_i32_0 = arith.constant 0 : i32
    return %c0_i32, %arg0 : i32, i32
  }
}

module attributes {stable_mosaic.version = 11 : i64} {
  func.func @conv_taps_kernel(%arg0: i32, %arg1: memref<4x200x128xf32, #tpu.memory_space<vmem>>, %arg2: memref<16x200xf32, #tpu.memory_space<vmem>>, %arg3: memref<16x1xf32, #tpu.memory_space<vmem>>, %arg4: memref<16x128xf32, #tpu.memory_space<vmem>>) attributes {dimension_semantics = [#tpu.dimension_semantics<parallel>], iteration_bounds = array<i64: 1>, scalar_prefetch = 0 : i64, scratch_operands = 0 : i64, tpu.core_type = #tpu.core_type<tc>, window_params = [{transform_indices = @transform_0, window_bounds = array<i64: 4, 200, 128>}, {pipeline_mode = #tpu.pipeline_mode<synchronous>, transform_indices = @transform_1, window_bounds = array<i64: 16, 200>}, {pipeline_mode = #tpu.pipeline_mode<synchronous>, transform_indices = @transform_2, window_bounds = array<i64: 16, 1>}, {transform_indices = @transform_3, window_bounds = array<i64: 16, 128>}]} {
    %c0 = arith.constant 0 : index
    %c0_0 = arith.constant 0 : index
    %0 = vector.load %arg2[%c0, %c0_0] : memref<16x200xf32, #tpu.memory_space<vmem>>, vector<16x200xf32>
    %c0_1 = arith.constant 0 : index
    %c0_2 = arith.constant 0 : index
    %c0_3 = arith.constant 0 : index
    %1 = vector.load %arg1[%c0_1, %c0_2, %c0_3] : memref<4x200x128xf32, #tpu.memory_space<vmem>>, vector<1x200x128xf32>
    %2 = vector.shape_cast %1 : vector<1x200x128xf32> to vector<200x128xf32>
    %cst = arith.constant dense<0.000000e+00> : vector<16x128xf32>
    %3 = tpu.matmul %0, %2, %cst {dimension_numbers = #tpu.dot_dimension_numbers<[1], [0], [0], [1], [0, 0, 1, 1], [], []>} : vector<16x200xf32>, vector<200x128xf32>, vector<16x128xf32> -> vector<16x128xf32>
    %c0_4 = arith.constant 0 : index
    %c0_5 = arith.constant 0 : index
    %4 = vector.load %arg3[%c0_4, %c0_5] : memref<16x1xf32, #tpu.memory_space<vmem>>, vector<16x1xf32>
    %5 = vector.broadcast %4 : vector<16x1xf32> to vector<16x128xf32>
    %6 = arith.addf %3, %5 : vector<16x128xf32>
    %cst_6 = arith.constant 0.000000e+00 : f32
    %7 = vector.broadcast %cst_6 : f32 to vector<16x128xf32>
    %8 = arith.maximumf %6, %7 : vector<16x128xf32>
    %c0_7 = arith.constant 0 : index
    %c0_8 = arith.constant 0 : index
    %9 = vector.load %arg2[%c0_7, %c0_8] : memref<16x200xf32, #tpu.memory_space<vmem>>, vector<16x200xf32>
    %c1 = arith.constant 1 : index
    %c0_9 = arith.constant 0 : index
    %c0_10 = arith.constant 0 : index
    %10 = vector.load %arg1[%c1, %c0_9, %c0_10] : memref<4x200x128xf32, #tpu.memory_space<vmem>>, vector<1x200x128xf32>
    %11 = vector.shape_cast %10 : vector<1x200x128xf32> to vector<200x128xf32>
    %cst_11 = arith.constant dense<0.000000e+00> : vector<16x128xf32>
    %12 = tpu.matmul %9, %11, %cst_11 {dimension_numbers = #tpu.dot_dimension_numbers<[1], [0], [0], [1], [0, 0, 1, 1], [], []>} : vector<16x200xf32>, vector<200x128xf32>, vector<16x128xf32> -> vector<16x128xf32>
    %c0_12 = arith.constant 0 : index
    %c0_13 = arith.constant 0 : index
    %13 = vector.load %arg3[%c0_12, %c0_13] : memref<16x1xf32, #tpu.memory_space<vmem>>, vector<16x1xf32>
    %14 = vector.broadcast %13 : vector<16x1xf32> to vector<16x128xf32>
    %15 = arith.addf %12, %14 : vector<16x128xf32>
    %cst_14 = arith.constant 0.000000e+00 : f32
    %16 = vector.broadcast %cst_14 : f32 to vector<16x128xf32>
    %17 = arith.maximumf %15, %16 : vector<16x128xf32>
    %18 = arith.maximumf %8, %17 : vector<16x128xf32>
    %c0_15 = arith.constant 0 : index
    %c0_16 = arith.constant 0 : index
    %19 = vector.load %arg2[%c0_15, %c0_16] : memref<16x200xf32, #tpu.memory_space<vmem>>, vector<16x200xf32>
    %c2 = arith.constant 2 : index
    %c0_17 = arith.constant 0 : index
    %c0_18 = arith.constant 0 : index
    %20 = vector.load %arg1[%c2, %c0_17, %c0_18] : memref<4x200x128xf32, #tpu.memory_space<vmem>>, vector<1x200x128xf32>
    %21 = vector.shape_cast %20 : vector<1x200x128xf32> to vector<200x128xf32>
    %cst_19 = arith.constant dense<0.000000e+00> : vector<16x128xf32>
    %22 = tpu.matmul %19, %21, %cst_19 {dimension_numbers = #tpu.dot_dimension_numbers<[1], [0], [0], [1], [0, 0, 1, 1], [], []>} : vector<16x200xf32>, vector<200x128xf32>, vector<16x128xf32> -> vector<16x128xf32>
    %c0_20 = arith.constant 0 : index
    %c0_21 = arith.constant 0 : index
    %23 = vector.load %arg3[%c0_20, %c0_21] : memref<16x1xf32, #tpu.memory_space<vmem>>, vector<16x1xf32>
    %24 = vector.broadcast %23 : vector<16x1xf32> to vector<16x128xf32>
    %25 = arith.addf %22, %24 : vector<16x128xf32>
    %cst_22 = arith.constant 0.000000e+00 : f32
    %26 = vector.broadcast %cst_22 : f32 to vector<16x128xf32>
    %27 = arith.maximumf %25, %26 : vector<16x128xf32>
    %28 = arith.maximumf %18, %27 : vector<16x128xf32>
    %c0_23 = arith.constant 0 : index
    %c0_24 = arith.constant 0 : index
    %29 = vector.load %arg2[%c0_23, %c0_24] : memref<16x200xf32, #tpu.memory_space<vmem>>, vector<16x200xf32>
    %c3 = arith.constant 3 : index
    %c0_25 = arith.constant 0 : index
    %c0_26 = arith.constant 0 : index
    %30 = vector.load %arg1[%c3, %c0_25, %c0_26] : memref<4x200x128xf32, #tpu.memory_space<vmem>>, vector<1x200x128xf32>
    %31 = vector.shape_cast %30 : vector<1x200x128xf32> to vector<200x128xf32>
    %cst_27 = arith.constant dense<0.000000e+00> : vector<16x128xf32>
    %32 = tpu.matmul %29, %31, %cst_27 {dimension_numbers = #tpu.dot_dimension_numbers<[1], [0], [0], [1], [0, 0, 1, 1], [], []>} : vector<16x200xf32>, vector<200x128xf32>, vector<16x128xf32> -> vector<16x128xf32>
    %c0_28 = arith.constant 0 : index
    %c0_29 = arith.constant 0 : index
    %33 = vector.load %arg3[%c0_28, %c0_29] : memref<16x1xf32, #tpu.memory_space<vmem>>, vector<16x1xf32>
    %34 = vector.broadcast %33 : vector<16x1xf32> to vector<16x128xf32>
    %35 = arith.addf %32, %34 : vector<16x128xf32>
    %cst_30 = arith.constant 0.000000e+00 : f32
    %36 = vector.broadcast %cst_30 : f32 to vector<16x128xf32>
    %37 = arith.maximumf %35, %36 : vector<16x128xf32>
    %38 = arith.maximumf %28, %37 : vector<16x128xf32>
    %c0_31 = arith.constant 0 : index
    %c0_32 = arith.constant 0 : index
    %39 = vector.load %arg4[%c0_31, %c0_32] : memref<16x128xf32, #tpu.memory_space<vmem>>, vector<16x128xf32>
    tpu.vector_store %arg4[%c0_31, %c0_32], %38 {strides = array<i32>} : memref<16x128xf32, #tpu.memory_space<vmem>>, vector<16x128xf32>,
    return
  }
  func.func @transform_0(%arg0: i32) -> (i32, i32, i32) {
    %c0_i32 = arith.constant 0 : i32
    %c0_i32_0 = arith.constant 0 : i32
    %c0_i32_1 = arith.constant 0 : i32
    return %c0_i32, %c0_i32_0, %arg0 : i32, i32, i32
  }
  func.func @transform_1(%arg0: i32) -> (i32, i32) {
    %c0_i32 = arith.constant 0 : i32
    %c0_i32_0 = arith.constant 0 : i32
    %c0_i32_1 = arith.constant 0 : i32
    return %c0_i32, %c0_i32_0 : i32, i32
  }
  func.func @transform_2(%arg0: i32) -> (i32, i32) {
    %c0_i32 = arith.constant 0 : i32
    %c0_i32_0 = arith.constant 0 : i32
    %c0_i32_1 = arith.constant 0 : i32
    return %c0_i32, %c0_i32_0 : i32, i32
  }
  func.func @transform_3(%arg0: i32) -> (i32, i32) {
    %c0_i32 = arith.constant 0 : i32
    %c0_i32_0 = arith.constant 0 : i32
    return %c0_i32, %arg0 : i32, i32
  }
}

module attributes {stable_mosaic.version = 11 : i64} {
  func.func @head_kernel(%arg0: i32, %arg1: memref<8x256xf32, #tpu.memory_space<vmem>>, %arg2: memref<256x64xf32, #tpu.memory_space<vmem>>, %arg3: memref<1x64xf32, #tpu.memory_space<vmem>>, %arg4: memref<1x64xf32, #tpu.memory_space<vmem>>, %arg5: memref<1x64xf32, #tpu.memory_space<vmem>>, %arg6: memref<64x128xf32, #tpu.memory_space<vmem>>, %arg7: memref<1x128xf32, #tpu.memory_space<vmem>>, %arg8: memref<8x128xf32, #tpu.memory_space<vmem>>) attributes {dimension_semantics = [#tpu.dimension_semantics<parallel>], iteration_bounds = array<i64: 1>, scalar_prefetch = 0 : i64, scratch_operands = 0 : i64, tpu.core_type = #tpu.core_type<tc>, window_params = [{transform_indices = @transform_0, window_bounds = array<i64: 8, 256>}, {pipeline_mode = #tpu.pipeline_mode<synchronous>, transform_indices = @transform_1, window_bounds = array<i64: 256, 64>}, {pipeline_mode = #tpu.pipeline_mode<synchronous>, transform_indices = @transform_2, window_bounds = array<i64: 1, 64>}, {pipeline_mode = #tpu.pipeline_mode<synchronous>, transform_indices = @transform_3, window_bounds = array<i64: 1, 64>}, {pipeline_mode = #tpu.pipeline_mode<synchronous>, transform_indices = @transform_4, window_bounds = array<i64: 1, 64>}, {pipeline_mode = #tpu.pipeline_mode<synchronous>, transform_indices = @transform_5, window_bounds = array<i64: 64, 128>}, {pipeline_mode = #tpu.pipeline_mode<synchronous>, transform_indices = @transform_6, window_bounds = array<i64: 1, 128>}, {transform_indices = @transform_7, window_bounds = array<i64: 8, 128>}]} {
    %c0 = arith.constant 0 : index
    %c0_0 = arith.constant 0 : index
    %0 = vector.load %arg1[%c0, %c0_0] : memref<8x256xf32, #tpu.memory_space<vmem>>, vector<8x256xf32>
    %c0_1 = arith.constant 0 : index
    %c0_2 = arith.constant 0 : index
    %1 = vector.load %arg2[%c0_1, %c0_2] : memref<256x64xf32, #tpu.memory_space<vmem>>, vector<256x64xf32>
    %cst = arith.constant dense<0.000000e+00> : vector<8x64xf32>
    %2 = tpu.matmul %0, %1, %cst {dimension_numbers = #tpu.dot_dimension_numbers<[1], [0], [0], [1], [0, 0, 1, 1], [], []>} : vector<8x256xf32>, vector<256x64xf32>, vector<8x64xf32> -> vector<8x64xf32>
    %c0_3 = arith.constant 0 : index
    %c0_4 = arith.constant 0 : index
    %3 = vector.load %arg3[%c0_3, %c0_4] : memref<1x64xf32, #tpu.memory_space<vmem>>, vector<1x64xf32>
    %4 = vector.broadcast %3 : vector<1x64xf32> to vector<8x64xf32>
    %5 = arith.addf %2, %4 : vector<8x64xf32>
    %cst_5 = arith.constant 0.000000e+00 : f32
    %6 = vector.broadcast %cst_5 : f32 to vector<8x64xf32>
    %7 = arith.maximumf %5, %6 : vector<8x64xf32>
    %c0_6 = arith.constant 0 : index
    %c0_7 = arith.constant 0 : index
    %8 = vector.load %arg4[%c0_6, %c0_7] : memref<1x64xf32, #tpu.memory_space<vmem>>, vector<1x64xf32>
    %9 = vector.broadcast %8 : vector<1x64xf32> to vector<8x64xf32>
    %10 = arith.mulf %7, %9 : vector<8x64xf32>
    %c0_8 = arith.constant 0 : index
    %c0_9 = arith.constant 0 : index
    %11 = vector.load %arg5[%c0_8, %c0_9] : memref<1x64xf32, #tpu.memory_space<vmem>>, vector<1x64xf32>
    %12 = vector.broadcast %11 : vector<1x64xf32> to vector<8x64xf32>
    %13 = arith.addf %10, %12 : vector<8x64xf32>
    %cst_10 = arith.constant 0.000000e+00 : f32
    %14 = vector.broadcast %cst_10 : f32 to vector<8x64xf32>
    %15 = arith.maximumf %13, %14 : vector<8x64xf32>
    %c0_11 = arith.constant 0 : index
    %c0_12 = arith.constant 0 : index
    %16 = vector.load %arg6[%c0_11, %c0_12] : memref<64x128xf32, #tpu.memory_space<vmem>>, vector<64x128xf32>
    %cst_13 = arith.constant dense<0.000000e+00> : vector<8x128xf32>
    %17 = tpu.matmul %15, %16, %cst_13 {dimension_numbers = #tpu.dot_dimension_numbers<[1], [0], [0], [1], [0, 0, 1, 1], [], []>} : vector<8x64xf32>, vector<64x128xf32>, vector<8x128xf32> -> vector<8x128xf32>
    %c0_14 = arith.constant 0 : index
    %c0_15 = arith.constant 0 : index
    %18 = vector.load %arg7[%c0_14, %c0_15] : memref<1x128xf32, #tpu.memory_space<vmem>>, vector<1x128xf32>
    %19 = vector.broadcast %18 : vector<1x128xf32> to vector<8x128xf32>
    %20 = arith.addf %17, %19 : vector<8x128xf32>
    %cst_16 = arith.constant dense<0xFF800000> : vector<8xf32>
    %21 = vector.multi_reduction <maximumf>, %20, %cst_16 [1] : vector<8x128xf32> to vector<8xf32>
    %22 = vector.shape_cast %21 : vector<8xf32> to vector<8x1xf32>
    %23 = vector.broadcast %22 : vector<8x1xf32> to vector<8x128xf32>
    %24 = arith.subf %20, %23 : vector<8x128xf32>
    %25 = math.exp %24 : vector<8x128xf32>
    %cst_17 = arith.constant dense<0.000000e+00> : vector<8xf32>
    %26 = vector.multi_reduction <add>, %25, %cst_17 [1] : vector<8x128xf32> to vector<8xf32>
    %27 = vector.shape_cast %26 : vector<8xf32> to vector<8x1xf32>
    %28 = math.log %27 : vector<8x1xf32>
    %29 = vector.broadcast %28 : vector<8x1xf32> to vector<8x128xf32>
    %30 = arith.subf %24, %29 : vector<8x128xf32>
    %c0_18 = arith.constant 0 : index
    %c0_19 = arith.constant 0 : index
    %31 = vector.load %arg8[%c0_18, %c0_19] : memref<8x128xf32, #tpu.memory_space<vmem>>, vector<8x128xf32>
    tpu.vector_store %arg8[%c0_18, %c0_19], %30 {strides = array<i32>} : memref<8x128xf32, #tpu.memory_space<vmem>>, vector<8x128xf32>,
    return
  }
  func.func @transform_0(%arg0: i32) -> (i32, i32) {
    %c0_i32 = arith.constant 0 : i32
    %c0_i32_0 = arith.constant 0 : i32
    return %arg0, %c0_i32 : i32, i32
  }
  func.func @transform_1(%arg0: i32) -> (i32, i32) {
    %c0_i32 = arith.constant 0 : i32
    %c0_i32_0 = arith.constant 0 : i32
    %c0_i32_1 = arith.constant 0 : i32
    return %c0_i32, %c0_i32_0 : i32, i32
  }
  func.func @transform_2(%arg0: i32) -> (i32, i32) {
    %c0_i32 = arith.constant 0 : i32
    %c0_i32_0 = arith.constant 0 : i32
    %c0_i32_1 = arith.constant 0 : i32
    return %c0_i32, %c0_i32_0 : i32, i32
  }
  func.func @transform_3(%arg0: i32) -> (i32, i32) {
    %c0_i32 = arith.constant 0 : i32
    %c0_i32_0 = arith.constant 0 : i32
    %c0_i32_1 = arith.constant 0 : i32
    return %c0_i32, %c0_i32_0 : i32, i32
  }
  func.func @transform_4(%arg0: i32) -> (i32, i32) {
    %c0_i32 = arith.constant 0 : i32
    %c0_i32_0 = arith.constant 0 : i32
    %c0_i32_1 = arith.constant 0 : i32
    return %c0_i32, %c0_i32_0 : i32, i32
  }
  func.func @transform_5(%arg0: i32) -> (i32, i32) {
    %c0_i32 = arith.constant 0 : i32
    %c0_i32_0 = arith.constant 0 : i32
    %c0_i32_1 = arith.constant 0 : i32
    return %c0_i32, %c0_i32_0 : i32, i32
  }
  func.func @transform_6(%arg0: i32) -> (i32, i32) {
    %c0_i32 = arith.constant 0 : i32
    %c0_i32_0 = arith.constant 0 : i32
    %c0_i32_1 = arith.constant 0 : i32
    return %c0_i32, %c0_i32_0 : i32, i32
  }
  func.func @transform_7(%arg0: i32) -> (i32, i32) {
    %c0_i32 = arith.constant 0 : i32
    %c0_i32_0 = arith.constant 0 : i32
    return %arg0, %c0_i32 : i32, i32
  }
}

</mosaic_0001>

<bundles_post_ra>
// kernel: net_forward.4
= control target key start
LH: loop header
LB: loop body
LE: loop exit
PB: predicated region body
PF: predicated region fallthrough
CT: control target
= control target key end

     0   :  { %s590_s12 = smov 0   ;;  %s592_s13 = smov 0   ;;  %s678_s0 = inlined_call_operand.vmem [shape: f32[1,25,2560], index: 0, kind: input, shape index: {}]   ;;  %s679_s1 = inlined_call_operand.vmem [shape: f32[8,25], index: 1, kind: input, shape index: {}]   ;;  %s680_s2 = inlined_call_operand.vmem [shape: f32[8,1], index: 2, kind: input, shape index: {}]   ;;  %s681_s3 = inlined_call_operand.vmem [shape: f32[8,2560], index: 3, kind: output, shape index: {}]  }
   0x1   :  { %s594_s14 = smov 0  }
   0x2 LB: > { %s475_s15 = sadd.s32 4294967295, %s565_s14   ;;  %s607_s16 = sadd.s32 1, %s565_s14   ;;  %s565_s14 = sphi %s594_s14, %s686_s14   ;;  %s561_s13 = sphi %s592_s13, %s685_s13   ;;  %s557_s12 = sphi %s590_s12, %s684_s12  }
   0x3   : > { %s17_s17 = ssub.s32 %s565_s14, %s607_s16  ;;  %s20_s18 = sadd.s32 1, %s561_s13 }
   0x4   : > { %p18_p0 = scmp.eq.s32.totalorder %s17_s17, 0  ;;  %p27_p1 = scmp.ne.s32.totalorder %s561_s13, %s557_s12 }
   0x5   : > { %p28_p2 = scmp.eq.s32.totalorder %s565_s14, 0  ;;  %p478_p4 = scmp.ge.s32.totalorder %s565_s14, 5 }
   0x6   : > { %s616_s19 = scalar_select %p18_p0, %s561_s13, %s20_s18  }
   0x7   : > { %p29_p3 = por %p28_p2, %p27_p1  ;;  %127 = sbr.rel (%p478_p4) target bundleno = 26 (0x1a), region = 24 }
   0xe   : > { %130 = sbr.rel (!%p29_p3) target bundleno = 26 (0x1a), region = 28  ;;  %s132_s20 = sand.u32 (%p29_p3), 1, %s561_s13  }
   0xf   : > { %s494_s21 = sshll.u32 (%p29_p3), %s565_s14, 5  ;;  %s479_s22 = sshll.u32 (%p29_p3), %s132_s20, 7 }
  0x10   : > { %s624_s25 = scalar_lea.vmem (%p29_p3), %s678_s0, %s494_s21  ;;  %s134_s26 = scalar_lea.vmem (%p29_p3), [#allocation2], %s479_s22 }
  0x11   : > { %v150_v0 = vld [vmem:[%s624_s25] sm:$0xff] (%p29_p3)  ;;  %v152_v1 = vld [vmem:[%s624_s25 + $0x8] sm:$0xff] (%p29_p3)  ;;  %v154_v2 = vld [vmem:[%s624_s25 + $0x10] sm:$0xff] (%p29_p3) }
  0x12   : > { %151 = vst [vmem:[%s134_s26] sm:$0xff] (%p29_p3), %v150_v0  ;;  %153 = vst [vmem:[%s134_s26 + $0x8] sm:$0xff] (%p29_p3), %v152_v1  ;;  %v156_v3 = vld [vmem:[%s624_s25 + $0x18] sm:$0xff] (%p29_p3)  ;;  %v158_v4 = vld [vmem:[%s624_s25 + $0xa0] sm:$0xff] (%p29_p3) }
  0x13   : > { %155 = vst [vmem:[%s134_s26 + $0x10] sm:$0xff] (%p29_p3), %v154_v2  ;;  %v160_v5 = vld [vmem:[%s624_s25 + $0xa8] sm:$0xff] (%p29_p3)  ;;  %157 = vst [vmem:[%s134_s26 + $0x18] sm:$0xff] (%p29_p3), %v156_v3  ;;  %v162_v6 = vld [vmem:[%s624_s25 + $0xb0] sm:$0xff] (%p29_p3) }
  0x14   : > { %159 = vst [vmem:[%s134_s26 + $0x20] sm:$0xff] (%p29_p3), %v158_v4  ;;  %161 = vst [vmem:[%s134_s26 + $0x28] sm:$0xff] (%p29_p3), %v160_v5  ;;  %v164_v7 = vld [vmem:[%s624_s25 + $0xb8] sm:$0xff] (%p29_p3)  ;;  %v166_v8 = vld [vmem:[%s624_s25 + $0x140] sm:$0xff] (%p29_p3) }
  0x15   : > { %163 = vst [vmem:[%s134_s26 + $0x30] sm:$0xff] %v162_v6  ;;  %165 = vst [vmem:[%s134_s26 + $0x38] sm:$0xff] %v164_v7  ;;  %v168_v9 = vld [vmem:[%s624_s25 + $0x148] sm:$0xff]  ;;  %v170_v10 = vld [vmem:[%s624_s25 + $0x150] sm:$0xff] }
  0x16   : > { %167 = vst [vmem:[%s134_s26 + $0x40] sm:$0xff] %v166_v8  ;;  %v172_v11 = vld [vmem:[%s624_s25 + $0x158] sm:$0xff]  ;;  %169 = vst [vmem:[%s134_s26 + $0x48] sm:$0xff] %v168_v9  ;;  %v174_v12 = vld [vmem:[%s624_s25 + $0x1e0] sm:$0xff] }
  0x17   : > { %171 = vst [vmem:[%s134_s26 + $0x50] sm:$0xff] %v170_v10  ;;  %173 = vst [vmem:[%s134_s26 + $0x58] sm:$0xff] %v172_v11  ;;  %v176_v13 = vld [vmem:[%s624_s25 + $0x1e8] sm:$0xff]  ;;  %v178_v14 = vld [vmem:[%s624_s25 + $0x1f0] sm:$0xff] }
  0x18   : > { %175 = vst [vmem:[%s134_s26 + $0x60] sm:$0xff] %v174_v12  ;;  %177 = vst [vmem:[%s134_s26 + $0x68] sm:$0xff] %v176_v13  ;;  %v180_v15 = vld [vmem:[%s624_s25 + $0x1f8] sm:$0xff] }
  0x19   : > { %179 = vst [vmem:[%s134_s26 + $0x70] sm:$0xff] %v178_v14  ;;  %181 = vst [vmem:[%s134_s26 + $0x78] sm:$0xff] %v180_v15 }
  0x1a PF: > { %p482_p5 = scmp.ge.s32.totalorder %s565_s14, 1  ;;  %p186_p6 = scmp.lt.s32.totalorder %s565_s14, 6 }
  0x1c   : > { %p187_p7 = pnand %p482_p5, %p186_p6 }
  0x1d   : > { %s193_s27 = sand.u32 (!%p187_p7), 1, %s557_s12   ;;  %vm250_vm0 = vcmask (!%p187_p7), 1040384   ;;  %v567_v16 = vmov (!%p187_p7), 0.0   ;;  %v240_v17 = vld [vmem:[%s680_s2] sm:$0xff] (!%p187_p7)  ;;  %vm568_vm1 = vmmov (!%p187_p7), 1   ;;  %v569_v19 = vmov (!%p187_p7), 0  }
  0x1e   : > { %190 = sbr.rel (%p187_p7) target bundleno = 263 (0x107), region = 51  ;;  %s483_s28 = sshll.u32 (!%p187_p7), %s193_s27, 7  ;;  %327 = vmatprep.mubr.f32.mxu0 (!%p187_p7), %v567_v16  ;;  %398 = vmatprep.mubr.f32.mxu1 (!%p187_p7), %v567_v16  ;;  %vm648_vm2 = vmpackc.low (!%p187_p7), %vm250_vm0, %vm568_vm1  ;;  %v223_v44 = vld [vmem:[%s679_s1] sm:$0xff] (!%p187_p7)  ;;  %vm246_vm3 = vcmask (!%p187_p7), 203776  }
  0x1f   : > { %542 = vset.pattern.permute.xlu0 (!%p187_p7), %v569_v19  ;;  %s195_s4 = scalar_lea.vmem (!%p187_p7), [#allocation2], %s483_s28  ;;  %s484_s7 = sshll.u32 (!%p187_p7), %s475_s15, 2 }
  0x20   : > { %v225_v20 = vld [vmem:[%s195_s4 + $0x8] sm:$0xff] (!%p187_p7)  ;;  %v227_v22 = vld [vmem:[%s195_s4 + $0x18] sm:$0xff] (!%p187_p7)  ;;  %243 = vperm.xlu0 (!%p187_p7), %542, %v240_v17   ;;  %v224_v25 = vld [vmem:[%s195_s4] sm:$0xff] (!%p187_p7)  ;;  %p218_p8 = scmp.lt.s32.totalorder (!%p187_p7), %s484_s7, 19 }
  0x21   : > { %v229_v21 = vld [vmem:[%s195_s4 + $0x28] sm:$0xff] (!%p187_p7)  ;;  %v231_v24 = vld [vmem:[%s195_s4 + $0x38] sm:$0xff] (!%p187_p7)  ;;  %v228_v26 = vld [vmem:[%s195_s4 + $0x20] sm:$0xff] (!%p187_p7) }
  0x22   : > { %v495_v23 = vpack.c.bf16 (!%p187_p7), %v229_v21, %v225_v20  ;;  %v505_v27 = vpack.c.bf16 (!%p187_p7), %v231_v24, %v227_v22  ;;  %v497_v28 = vpack.c.bf16 (!%p187_p7), %v228_v26, %v224_v25  ;;  %v226_v29 = vld [vmem:[%s195_s4 + $0x10] sm:$0xff] (!%p187_p7)  ;;  %v233_v31 = vld [vmem:[%s195_s4 + $0x48] sm:$0xff] (!%p187_p7)  ;;  %v235_v34 = vld [vmem:[%s195_s4 + $0x58] sm:$0xff] (!%p187_p7) }
  0x23   : > { %v230_v30 = vld [vmem:[%s195_s4 + $0x30] sm:$0xff] (!%p187_p7)  ;;  %v237_v33 = vld [vmem:[%s195_s4 + $0x68] sm:$0x1] (!%p187_p7)  ;;  %v239_v35 = vld [vmem:[%s195_s4 + $0x78] sm:$0x1] (!%p187_p7) }
  0x24   : > { %496 = vmatprep.subr.bf16.mxu0 (!%p187_p7), %v495_v23  ;;  %v507_v32 = vpack.c.bf16 (!%p187_p7), %v230_v30, %v226_v29  ;;  %506 = vmatprep.subr.bf16.mxu1 (!%p187_p7), %v505_v27  ;;  %v499_v36 = vpack.c.bf16 (!%p187_p7), %v237_v33, %v233_v31  ;;  %v509_v37 = vpack.c.bf16 (!%p187_p7), %v239_v35, %v235_v34  ;;  %v232_v38 = vld [vmem:[%s195_s4 + $0x40] sm:$0xff] (!%p187_p7)  ;;  %v234_v40 = vld [vmem:[%s195_s4 + $0x50] sm:$0xff] (!%p187_p7) }
  0x25   : > { %498 = vmatpush1.bf16.msra.mxu0 %v497_v28  ;;  %v236_v39 = vld [vmem:[%s195_s4 + $0x60] sm:$0x1]  ;;  %v238_v42 = vld [vmem:[%s195_s4 + $0x70] sm:$0x1]  ;;  %s688_s7 = smov (!%p218_p8, %s484_s7), 19 }
  0x26   : > { %508 = vmatpush1.bf16.msra.mxu1 %v507_v32  ;;  %v502_v41 = vpack.c.bf16 %v236_v39, %v232_v38  ;;  %501 = vmatprep.subr.msk.bf16.mxu0 %vm648_vm2, %v499_v36  ;;  %v512_v43 = vpack.c.bf16 %v238_v42, %v234_v40  ;;  %s485_s8 = sshll.u32 %s688_s7, 3 }
  0x27   : > { %511 = vmatprep.subr.msk.bf16.mxu1 %vm648_vm2, %v509_v37  ;;  %s221_s11 = scalar_lea.vmem %s681_s3, %s485_s8 }
  0x29   : > { %504 = vmatpush1.bf16.msk.msra.mxu0 %vm648_vm2, %v502_v41 }
  0x2a   : > { %514 = vmatpush1.bf16.msk.msra.mxu1 %vm648_vm2, %v512_v43 }
  0x2c   : > { %488 = vmatmul.mubr.msk.f32.vlgmr.msra.gmra.mrb[0].mxu0 %vm246_vm3, %v223_v44 }
  0x2d   : > { %491 = vmatmul.mubr.msk.f32.vlgmr.msra.gmra.mrb[0].mxu1 %vm246_vm3, %v223_v44 }
  0x9f   : > { %v244_v45 = vpop.permute.xlu0 %243 }
  0xff   : > { %v329_v46 = vpop.f32.mrb[0].mxu0 }
 0x100   : > { %v330_v47 = vadd.f32 %v329_v46, %v244_v45  ;;  %v400_v48 = vpop.f32.mrb[0].mxu1  ;;  %v331_v49 = vpop.f32.mrb[1].mxu0 }
 0x101   : > { %v401_v50 = vadd.f32 %v400_v48, %v244_v45  ;;  %v332_v51 = vadd.f32 %v331_v49, %v244_v45  ;;  %v402_v52 = vpop.f32.mrb[1].mxu1 }
 0x102   : > { %v405_v53 = vmax.f32 %v330_v47, 0.0  ;;  %v403_v54 = vadd.f32 %v402_v52, %v244_v45 }
 0x103   : > { %v407_v55 = vmax.f32 %v401_v50, 0.0  ;;  %v406_v56 = vmax.f32 %v332_v51, 0.0 }
 0x104   : > { %409 = vst [vmem:[%s221_s11] sm:$0xff] %v405_v53  ;;  %v408_v57 = vmax.f32 %v403_v54, 0.0 }
 0x105   : > { %411 = vst [vmem:[%s221_s11 + $0x10] sm:$0xff] %v407_v55  ;;  %410 = vst [vmem:[%s221_s11 + $0x8] sm:$0xff] %v406_v56 }
 0x106   : > { %412 = vst [vmem:[%s221_s11 + $0x18] sm:$0xff] %v408_v57 }
 0x107 PF: > { %p10_p9 = scmp.ge.s32.totalorder %s607_s16, 7   ;;  %s684_s12 = smov %s561_s13 }
 0x108   : > { %s685_s13 = smov %s616_s19  ;;  %s686_s14 = smov %s607_s16 }
 0x109   :  { %12 = sbr.rel (!%p10_p9) target bundleno = 2 (0x2), region = 90 }

// kernel: net_forward.5
= control target key start
LH: loop header
LB: loop body
LE: loop exit
PB: predicated region body
PF: predicated region fallthrough
CT: control target
= control target key end

     0   :  { %s2847_s12 = smov 0   ;;  %s2849_s13 = smov 0   ;;  %s4144_s0 = inlined_call_operand.vmem [shape: f32[4,200,1024], index: 0, kind: input, shape index: {}]   ;;  %s4145_s1 = inlined_call_operand.vmem [shape: f32[8,200], index: 1, kind: input, shape index: {}]   ;;  %s4146_s2 = inlined_call_operand.vmem [shape: f32[8,1], index: 2, kind: input, shape index: {}]   ;;  %s4147_s3 = inlined_call_operand.vmem [shape: f32[8,1024], index: 3, kind: output, shape index: {}]  }
   0x1   :  { %s2851_s14 = smov 0  }
   0x2 LB: > { %s2068_s15 = sadd.s32 4294967295, %s2824_s14   ;;  %s2864_s16 = sadd.s32 1, %s2824_s14   ;;  %s2824_s14 = sphi %s2851_s14, %s4150_s14   ;;  %s2820_s13 = sphi %s2849_s13, %s4149_s13   ;;  %s2816_s12 = sphi %s2847_s12, %s4148_s12  }
   0x3   : > { %s17_s17 = ssub.s32 %s2824_s14, %s2864_s16  ;;  %s20_s18 = sadd.s32 1, %s2820_s13 }
   0x4   : > { %p18_p0 = scmp.eq.s32.totalorder %s17_s17, 0  ;;  %p27_p1 = scmp.ne.s32.totalorder %s2820_s13, %s2816_s12 }
   0x5   : > { %p28_p2 = scmp.eq.s32.totalorder %s2824_s14, 0  ;;  %p2071_p4 = scmp.ge.s32.totalorder %s2824_s14, 2 }
   0x6   : > { %s2873_s19 = scalar_select %p18_p0, %s2820_s13, %s20_s18  }
   0x7   : > { %p29_p3 = por %p28_p2, %p27_p1  ;;  %127 = sbr.rel (%p2071_p4) target bundleno = 219 (0xdb), region = 24 }
   0xe   : > { %130 = sbr.rel (!%p29_p3) target bundleno = 219 (0xdb), region = 28  ;;  %s132_s20 = sand.u32 (%p29_p3), 1, %s2820_s13  }
   0xf   : > { %s2387_s21 = sshll.u32 (%p29_p3), %s2824_s14, 5  ;;  %s2772_s22 = smul.u32 (%p29_p3), 3200, %s132_s20 }
  0x10   : > { %s2881_s25 = scalar_lea.vmem (%p29_p3), %s4144_s0, %s2387_s21 }
  0x11   : > { %v150_v0 = vld [vmem:[%s2881_s25] sm:$0xff] (%p29_p3)  ;;  %v152_v1 = vld [vmem:[%s2881_s25 + $0x8] sm:$0xff] (%p29_p3)  ;;  %v154_v2 = vld [vmem:[%s2881_s25 + $0x10] sm:$0xff] (%p29_p3)  ;;  %s2889_s26 = scalar_lea.vmem (%p29_p3), [#allocation2], %s2772_s22 }
  0x12   : > { %v156_v3 = vld [vmem:[%s2881_s25 + $0x18] sm:$0xff] (%p29_p3)  ;;  %v158_v4 = vld [vmem:[%s2881_s25 + $0x40] sm:$0xff] (%p29_p3)  ;;  %v160_v5 = vld [vmem:[%s2881_s25 + $0x48] sm:$0xff] (%p29_p3)  ;;  %151 = vst [vmem:[%s2889_s26] sm:$0xff] (%p29_p3), %v150_v0 }
  0x13   : > { %153 = vst [vmem:[%s2889_s26 + $0x8] sm:$0xff] (%p29_p3), %v152_v1  ;;  %155 = vst [vmem:[%s2889_s26 + $0x10] sm:$0xff] (%p29_p3), %v154_v2  ;;  %v162_v6 = vld [vmem:[%s2881_s25 + $0x50] sm:$0xff] (%p29_p3)  ;;  %v164_v7 = vld [vmem:[%s2881_s25 + $0x58] sm:$0xff] (%p29_p3) }
  0x14   : > { %157 = vst [vmem:[%s2889_s26 + $0x18] sm:$0xff] (%p29_p3), %v156_v3  ;;  %159 = vst [vmem:[%s2889_s26 + $0x20] sm:$0xff] (%p29_p3), %v158_v4  ;;  %v166_v8 = vld [vmem:[%s2881_s25 + $0x80] sm:$0xff] (%p29_p3)  ;;  %v168_v9 = vld [vmem:[%s2881_s25 + $0x88] sm:$0xff] (%p29_p3) }
  0x15   : > { %161 = vst [vmem:[%s2889_s26 + $0x28] sm:$0xff] %v160_v5  ;;  %163 = vst [vmem:[%s2889_s26 + $0x30] sm:$0xff] %v162_v6  ;;  %v170_v10 = vld [vmem:[%s2881_s25 + $0x90] sm:$0xff]  ;;  %v172_v11 = vld [vmem:[%s2881_s25 + $0x98] sm:$0xff] }
  0x16   : > { %165 = vst [vmem:[%s2889_s26 + $0x38] sm:$0xff] %v164_v7  ;;  %167 = vst [vmem:[%s2889_s26 + $0x40] sm:$0xff] %v166_v8  ;;  %v174_v12 = vld [vmem:[%s2881_s25 + $0xc0] sm:$0xff]  ;;  %v176_v13 = vld [vmem:[%s2881_s25 + $0xc8] sm:$0xff] }
  0x17   : > { %169 = vst [vmem:[%s2889_s26 + $0x48] sm:$0xff] %v168_v9  ;;  %171 = vst [vmem:[%s2889_s26 + $0x50] sm:$0xff] %v170_v10  ;;  %v178_v14 = vld [vmem:[%s2881_s25 + $0xd0] sm:$0xff]  ;;  %v180_v15 = vld [vmem:[%s2881_s25 + $0xd8] sm:$0xff] }
  0x18   : > { %173 = vst [vmem:[%s2889_s26 + $0x58] sm:$0xff] %v172_v11  ;;  %175 = vst [vmem:[%s2889_s26 + $0x60] sm:$0xff] %v174_v12  ;;  %v182_v16 = vld [vmem:[%s2881_s25 + $0x100] sm:$0xff]  ;;  %v184_v17 = vld [vmem:[%s2881_s25 + $0x108] sm:$0xff] }
  0x19   : > { %177 = vst [vmem:[%s2889_s26 + $0x68] sm:$0xff] %v176_v13  ;;  %179 = vst [vmem:[%s2889_s26 + $0x70] sm:$0xff] %v178_v14  ;;  %v186_v18 = vld [vmem:[%s2881_s25 + $0x110] sm:$0xff]  ;;  %v188_v19 = vld [vmem:[%s2881_s25 + $0x118] sm:$0xff] }
  0x1a   : > { %181 = vst [vmem:[%s2889_s26 + $0x78] sm:$0xff] %v180_v15  ;;  %183 = vst [vmem:[%s2889_s26 + $0x80] sm:$0xff] %v182_v16  ;;  %v190_v20 = vld [vmem:[%s2881_s25 + $0x140] sm:$0xff]  ;;  %v192_v21 = vld [vmem:[%s2881_s25 + $0x148] sm:$0xff] }
  0x1b   : > { %185 = vst [vmem:[%s2889_s26 + $0x88] sm:$0xff] %v184_v17  ;;  %187 = vst [vmem:[%s2889_s26 + $0x90] sm:$0xff] %v186_v18  ;;  %v194_v22 = vld [vmem:[%s2881_s25 + $0x150] sm:$0xff]  ;;  %v196_v23 = vld [vmem:[%s2881_s25 + $0x158] sm:$0xff] }
  0x1c   : > { %189 = vst [vmem:[%s2889_s26 + $0x98] sm:$0xff] %v188_v19  ;;  %191 = vst [vmem:[%s2889_s26 + $0xa0] sm:$0xff] %v190_v20  ;;  %v198_v24 = vld [vmem:[%s2881_s25 + $0x180] sm:$0xff]  ;;  %v200_v25 = vld [vmem:[%s2881_s25 + $0x188] sm:$0xff] }
  0x1d   : > { %193 = vst [vmem:[%s2889_s26 + $0xa8] sm:$0xff] %v192_v21  ;;  %195 = vst [vmem:[%s2889_s26 + $0xb0] sm:$0xff] %v194_v22  ;;  %v202_v26 = vld [vmem:[%s2881_s25 + $0x190] sm:$0xff]  ;;  %v204_v27 = vld [vmem:[%s2881_s25 + $0x198] sm:$0xff] }
  0x1e   : > { %197 = vst [vmem:[%s2889_s26 + $0xb8] sm:$0xff] %v196_v23  ;;  %199 = vst [vmem:[%s2889_s26 + $0xc0] sm:$0xff] %v198_v24  ;;  %v206_v28 = vld [vmem:[%s2881_s25 + $0x1c0] sm:$0xff]  ;;  %v208_v29 = vld [vmem:[%s2881_s25 + $0x1c8] sm:$0xff] }
  0x1f   : > { %201 = vst [vmem:[%s2889_s26 + $0xc8] sm:$0xff] %v200_v25  ;;  %203 = vst [vmem:[%s2889_s26 + $0xd0] sm:$0xff] %v202_v26  ;;  %v210_v30 = vld [vmem:[%s2881_s25 + $0x1d0] sm:$0xff]  ;;  %v212_v31 = vld [vmem:[%s2881_s25 + $0x1d8] sm:$0xff] }
  0x20   : > { %205 = vst [vmem:[%s2889_s26 + $0xd8] sm:$0xff] %v204_v27  ;;  %207 = vst [vmem:[%s2889_s26 + $0xe0] sm:$0xff] %v206_v28  ;;  %v214_v32 = vld [vmem:[%s2881_s25 + $0x200] sm:$0xff]  ;;  %v216_v33 = vld [vmem:[%s2881_s25 + $0x208] sm:$0xff] }
  0x21   : > { %209 = vst [vmem:[%s2889_s26 + $0xe8] sm:$0xff] %v208_v29  ;;  %211 = vst [vmem:[%s2889_s26 + $0xf0] sm:$0xff] %v210_v30  ;;  %v218_v34 = vld [vmem:[%s2881_s25 + $0x210] sm:$0xff]  ;;  %v220_v35 = vld [vmem:[%s2881_s25 + $0x218] sm:$0xff] }
  0x22   : > { %213 = vst [vmem:[%s2889_s26 + $0xf8] sm:$0xff] %v212_v31  ;;  %215 = vst [vmem:[%s2889_s26 + $0x100] sm:$0xff] %v214_v32  ;;  %v222_v36 = vld [vmem:[%s2881_s25 + $0x240] sm:$0xff]  ;;  %v224_v37 = vld [vmem:[%s2881_s25 + $0x248] sm:$0xff] }
  0x23   : > { %217 = vst [vmem:[%s2889_s26 + $0x108] sm:$0xff] %v216_v33  ;;  %219 = vst [vmem:[%s2889_s26 + $0x110] sm:$0xff] %v218_v34  ;;  %v226_v38 = vld [vmem:[%s2881_s25 + $0x250] sm:$0xff]  ;;  %v228_v39 = vld [vmem:[%s2881_s25 + $0x258] sm:$0xff] }
  0x24   : > { %221 = vst [vmem:[%s2889_s26 + $0x118] sm:$0xff] %v220_v35  ;;  %223 = vst [vmem:[%s2889_s26 + $0x120] sm:$0xff] %v222_v36  ;;  %v230_v40 = vld [vmem:[%s2881_s25 + $0x280] sm:$0xff]  ;;  %v232_v41 = vld [vmem:[%s2881_s25 + $0x288] sm:$0xff] }
  0x25   : > { %225 = vst [vmem:[%s2889_s26 + $0x128] sm:$0xff] %v224_v37  ;;  %227 = vst [vmem:[%s2889_s26 + $0x130] sm:$0xff] %v226_v38  ;;  %v234_v42 = vld [vmem:[%s2881_s25 + $0x290] sm:$0xff]  ;;  %v236_v43 = vld [vmem:[%s2881_s25 + $0x298] sm:$0xff] }
  0x26   : > { %229 = vst [vmem:[%s2889_s26 + $0x138] sm:$0xff] %v228_v39  ;;  %231 = vst [vmem:[%s2889_s26 + $0x140] sm:$0xff] %v230_v40  ;;  %v238_v44 = vld [vmem:[%s2881_s25 + $0x2c0] sm:$0xff]  ;;  %v240_v45 = vld [vmem:[%s2881_s25 + $0x2c8] sm:$0xff] }
  0x27   : > { %233 = vst [vmem:[%s2889_s26 + $0x148] sm:$0xff] %v232_v41  ;;  %235 = vst [vmem:[%s2889_s26 + $0x150] sm:$0xff] %v234_v42  ;;  %v242_v46 = vld [vmem:[%s2881_s25 + $0x2d0] sm:$0xff]  ;;  %v244_v47 = vld [vmem:[%s2881_s25 + $0x2d8] sm:$0xff] }
  0x28   : > { %237 = vst [vmem:[%s2889_s26 + $0x158] sm:$0xff] %v236_v43  ;;  %239 = vst [vmem:[%s2889_s26 + $0x160] sm:$0xff] %v238_v44  ;;  %v246_v48 = vld [vmem:[%s2881_s25 + $0x300] sm:$0xff]  ;;  %v248_v49 = vld [vmem:[%s2881_s25 + $0x308] sm:$0xff] }
  0x29   : > { %241 = vst [vmem:[%s2889_s26 + $0x168] sm:$0xff] %v240_v45  ;;  %243 = vst [vmem:[%s2889_s26 + $0x170] sm:$0xff] %v242_v46  ;;  %v250_v50 = vld [vmem:[%s2881_s25 + $0x310] sm:$0xff]  ;;  %v252_v51 = vld [vmem:[%s2881_s25 + $0x318] sm:$0xff] }
  0x2a   : > { %245 = vst [vmem:[%s2889_s26 + $0x178] sm:$0xff] %v244_v47  ;;  %247 = vst [vmem:[%s2889_s26 + $0x180] sm:$0xff] %v246_v48  ;;  %v254_v52 = vld [vmem:[%s2881_s25 + $0x340] sm:$0xff]  ;;  %v256_v53 = vld [vmem:[%s2881_s25 + $0x348] sm:$0xff] }
  0x2b   : > { %249 = vst [vmem:[%s2889_s26 + $0x188] sm:$0xff] %v248_v49  ;;  %251 = vst [vmem:[%s2889_s26 + $0x190] sm:$0xff] %v250_v50  ;;  %v258_v54 = vld [vmem:[%s2881_s25 + $0x350] sm:$0xff]  ;;  %v260_v55 = vld [vmem:[%s2881_s25 + $0x358] sm:$0xff] }
  0x2c   : > { %253 = vst [vmem:[%s2889_s26 + $0x198] sm:$0xff] %v252_v51  ;;  %255 = vst [vmem:[%s2889_s26 + $0x1a0] sm:$0xff] %v254_v52  ;;  %v262_v56 = vld [vmem:[%s2881_s25 + $0x380] sm:$0xff]  ;;  %v264_v57 = vld [vmem:[%s2881_s25 + $0x388] sm:$0xff] }
  0x2d   : > { %257 = vst [vmem:[%s2889_s26 + $0x1a8] sm:$0xff] %v256_v53  ;;  %259 = vst [vmem:[%s2889_s26 + $0x1b0] sm:$0xff] %v258_v54  ;;  %v266_v58 = vld [vmem:[%s2881_s25 + $0x390] sm:$0xff]  ;;  %v268_v59 = vld [vmem:[%s2881_s25 + $0x398] sm:$0xff] }
  0x2e   : > { %261 = vst [vmem:[%s2889_s26 + $0x1b8] sm:$0xff] %v260_v55  ;;  %263 = vst [vmem:[%s2889_s26 + $0x1c0] sm:$0xff] %v262_v56  ;;  %v270_v60 = vld [vmem:[%s2881_s25 + $0x3c0] sm:$0xff]  ;;  %v272_v61 = vld [vmem:[%s2881_s25 + $0x3c8] sm:$0xff] }
  0x2f   : > { %265 = vst [vmem:[%s2889_s26 + $0x1c8] sm:$0xff] %v264_v57  ;;  %267 = vst [vmem:[%s2889_s26 + $0x1d0] sm:$0xff] %v266_v58  ;;  %v274_v62 = vld [vmem:[%s2881_s25 + $0x3d0] sm:$0xff]  ;;  %v276_v63 = vld [vmem:[%s2881_s25 + $0x3d8] sm:$0xff] }
  0x30   : > { %269 = vst [vmem:[%s2889_s26 + $0x1d8] sm:$0xff] %v268_v59  ;;  %271 = vst [vmem:[%s2889_s26 + $0x1e0] sm:$0xff] %v270_v60  ;;  %v278_v0 = vld [vmem:[%s2881_s25 + $0x400] sm:$0xff]  ;;  %v280_v1 = vld [vmem:[%s2881_s25 + $0x408] sm:$0xff] }
  0x31   : > { %273 = vst [vmem:[%s2889_s26 + $0x1e8] sm:$0xff] %v272_v61  ;;  %275 = vst [vmem:[%s2889_s26 + $0x1f0] sm:$0xff] %v274_v62  ;;  %v282_v2 = vld [vmem:[%s2881_s25 + $0x410] sm:$0xff]  ;;  %v284_v3 = vld [vmem:[%s2881_s25 + $0x418] sm:$0xff] }
  0x32   : > { %277 = vst [vmem:[%s2889_s26 + $0x1f8] sm:$0xff] %v276_v63  ;;  %279 = vst [vmem:[%s2889_s26 + $0x200] sm:$0xff] %v278_v0  ;;  %v286_v4 = vld [vmem:[%s2881_s25 + $0x440] sm:$0xff]  ;;  %v288_v5 = vld [vmem:[%s2881_s25 + $0x448] sm:$0xff] }
  0x33   : > { %281 = vst [vmem:[%s2889_s26 + $0x208] sm:$0xff] %v280_v1  ;;  %283 = vst [vmem:[%s2889_s26 + $0x210] sm:$0xff] %v282_v2  ;;  %v290_v6 = vld [vmem:[%s2881_s25 + $0x450] sm:$0xff]  ;;  %v292_v7 = vld [vmem:[%s2881_s25 + $0x458] sm:$0xff] }
  0x34   : > { %285 = vst [vmem:[%s2889_s26 + $0x218] sm:$0xff] %v284_v3  ;;  %287 = vst [vmem:[%s2889_s26 + $0x220] sm:$0xff] %v286_v4  ;;  %v294_v8 = vld [vmem:[%s2881_s25 + $0x480] sm:$0xff]  ;;  %v296_v9 = vld [vmem:[%s2881_s25 + $0x488] sm:$0xff] }
  0x35   : > { %289 = vst [vmem:[%s2889_s26 + $0x228] sm:$0xff] %v288_v5  ;;  %291 = vst [vmem:[%s2889_s26 + $0x230] sm:$0xff] %v290_v6  ;;  %v298_v10 = vld [vmem:[%s2881_s25 + $0x490] sm:$0xff]  ;;  %v300_v11 = vld [vmem:[%s2881_s25 + $0x498] sm:$0xff] }
  0x36   : > { %293 = vst [vmem:[%s2889_s26 + $0x238] sm:$0xff] %v292_v7  ;;  %295 = vst [vmem:[%s2889_s26 + $0x240] sm:$0xff] %v294_v8  ;;  %v302_v12 = vld [vmem:[%s2881_s25 + $0x4c0] sm:$0xff]  ;;  %v304_v13 = vld [vmem:[%s2881_s25 + $0x4c8] sm:$0xff] }
  0x37   : > { %297 = vst [vmem:[%s2889_s26 + $0x248] sm:$0xff] %v296_v9  ;;  %299 = vst [vmem:[%s2889_s26 + $0x250] sm:$0xff] %v298_v10  ;;  %v306_v14 = vld [vmem:[%s2881_s25 + $0x4d0] sm:$0xff]  ;;  %v308_v15 = vld [vmem:[%s2881_s25 + $0x4d8] sm:$0xff] }
  0x38   : > { %301 = vst [vmem:[%s2889_s26 + $0x258] sm:$0xff] %v300_v11  ;;  %303 = vst [vmem:[%s2889_s26 + $0x260] sm:$0xff] %v302_v12  ;;  %v310_v16 = vld [vmem:[%s2881_s25 + $0x500] sm:$0xff]  ;;  %v312_v17 = vld [vmem:[%s2881_s25 + $0x508] sm:$0xff] }
  0x39   : > { %305 = vst [vmem:[%s2889_s26 + $0x268] sm:$0xff] %v304_v13  ;;  %307 = vst [vmem:[%s2889_s26 + $0x270] sm:$0xff] %v306_v14  ;;  %v314_v18 = vld [vmem:[%s2881_s25 + $0x510] sm:$0xff]  ;;  %v316_v19 = vld [vmem:[%s2881_s25 + $0x518] sm:$0xff] }
  0x3a   : > { %309 = vst [vmem:[%s2889_s26 + $0x278] sm:$0xff] %v308_v15  ;;  %311 = vst [vmem:[%s2889_s26 + $0x280] sm:$0xff] %v310_v16  ;;  %v318_v20 = vld [vmem:[%s2881_s25 + $0x540] sm:$0xff]  ;;  %v320_v21 = vld [vmem:[%s2881_s25 + $0x548] sm:$0xff] }
  0x3b   : > { %313 = vst [vmem:[%s2889_s26 + $0x288] sm:$0xff] %v312_v17  ;;  %315 = vst [vmem:[%s2889_s26 + $0x290] sm:$0xff] %v314_v18  ;;  %v322_v22 = vld [vmem:[%s2881_s25 + $0x550] sm:$0xff]  ;;  %v324_v23 = vld [vmem:[%s2881_s25 + $0x558] sm:$0xff] }
  0x3c   : > { %317 = vst [vmem:[%s2889_s26 + $0x298] sm:$0xff] %v316_v19  ;;  %319 = vst [vmem:[%s2889_s26 + $0x2a0] sm:$0xff] %v318_v20  ;;  %v326_v24 = vld [vmem:[%s2881_s25 + $0x580] sm:$0xff]  ;;  %v328_v25 = vld [vmem:[%s2881_s25 + $0x588] sm:$0xff] }
  0x3d   : > { %321 = vst [vmem:[%s2889_s26 + $0x2a8] sm:$0xff] %v320_v21  ;;  %323 = vst [vmem:[%s2889_s26 + $0x2b0] sm:$0xff] %v322_v22  ;;  %v330_v26 = vld [vmem:[%s2881_s25 + $0x590] sm:$0xff]  ;;  %v332_v27 = vld [vmem:[%s2881_s25 + $0x598] sm:$0xff] }
  0x3e   : > { %325 = vst [vmem:[%s2889_s26 + $0x2b8] sm:$0xff] %v324_v23  ;;  %327 = vst [vmem:[%s2889_s26 + $0x2c0] sm:$0xff] %v326_v24  ;;  %v334_v28 = vld [vmem:[%s2881_s25 + $0x5c0] sm:$0xff]  ;;  %v336_v29 = vld [vmem:[%s2881_s25 + $0x5c8] sm:$0xff] }
  0x3f   : > { %329 = vst [vmem:[%s2889_s26 + $0x2c8] sm:$0xff] %v328_v25  ;;  %331 = vst [vmem:[%s2889_s26 + $0x2d0] sm:$0xff] %v330_v26  ;;  %v338_v30 = vld [vmem:[%s2881_s25 + $0x5d0] sm:$0xff]  ;;  %v340_v31 = vld [vmem:[%s2881_s25 + $0x5d8] sm:$0xff] }
  0x40   : > { %333 = vst [vmem:[%s2889_s26 + $0x2d8] sm:$0xff] %v332_v27  ;;  %335 = vst [vmem:[%s2889_s26 + $0x2e0] sm:$0xff] %v334_v28  ;;  %v342_v32 = vld [vmem:[%s2881_s25 + $0x600] sm:$0xff]  ;;  %v344_v33 = vld [vmem:[%s2881_s25 + $0x608] sm:$0xff] }
  0x41   : > { %337 = vst [vmem:[%s2889_s26 + $0x2e8] sm:$0xff] %v336_v29  ;;  %339 = vst [vmem:[%s2889_s26 + $0x2f0] sm:$0xff] %v338_v30  ;;  %v346_v34 = vld [vmem:[%s2881_s25 + $0x610] sm:$0xff]  ;;  %v348_v35 = vld [vmem:[%s2881_s25 + $0x618] sm:$0xff] }
  0x42   : > { %341 = vst [vmem:[%s2889_s26 + $0x2f8] sm:$0xff] %v340_v31  ;;  %343 = vst [vmem:[%s2889_s26 + $0x300] sm:$0xff] %v342_v32  ;;  %v350_v36 = vld [vmem:[%s2881_s25 + $0x640] sm:$0xff]  ;;  %v352_v37 = vld [vmem:[%s2881_s25 + $0x648] sm:$0xff] }
  0x43   : > { %345 = vst [vmem:[%s2889_s26 + $0x308] sm:$0xff] %v344_v33  ;;  %347 = vst [vmem:[%s2889_s26 + $0x310] sm:$0xff] %v346_v34  ;;  %v354_v38 = vld [vmem:[%s2881_s25 + $0x650] sm:$0xff]  ;;  %v356_v39 = vld [vmem:[%s2881_s25 + $0x658] sm:$0xff] }
  0x44   : > { %349 = vst [vmem:[%s2889_s26 + $0x318] sm:$0xff] %v348_v35  ;;  %351 = vst [vmem:[%s2889_s26 + $0x320] sm:$0xff] %v350_v36  ;;  %v358_v40 = vld [vmem:[%s2881_s25 + $0x680] sm:$0xff]  ;;  %v360_v41 = vld [vmem:[%s2881_s25 + $0x688] sm:$0xff] }
  0x45   : > { %353 = vst [vmem:[%s2889_s26 + $0x328] sm:$0xff] %v352_v37  ;;  %355 = vst [vmem:[%s2889_s26 + $0x330] sm:$0xff] %v354_v38  ;;  %v362_v42 = vld [vmem:[%s2881_s25 + $0x690] sm:$0xff]  ;;  %v364_v43 = vld [vmem:[%s2881_s25 + $0x698] sm:$0xff] }
  0x46   : > { %357 = vst [vmem:[%s2889_s26 + $0x338] sm:$0xff] %v356_v39  ;;  %359 = vst [vmem:[%s2889_s26 + $0x340] sm:$0xff] %v358_v40  ;;  %v366_v44 = vld [vmem:[%s2881_s25 + $0x6c0] sm:$0xff]  ;;  %v368_v45 = vld [vmem:[%s2881_s25 + $0x6c8] sm:$0xff] }
  0x47   : > { %361 = vst [vmem:[%s2889_s26 + $0x348] sm:$0xff] %v360_v41  ;;  %363 = vst [vmem:[%s2889_s26 + $0x350] sm:$0xff] %v362_v42  ;;  %v370_v46 = vld [vmem:[%s2881_s25 + $0x6d0] sm:$0xff]  ;;  %v372_v47 = vld [vmem:[%s2881_s25 + $0x6d8] sm:$0xff] }
  0x48   : > { %365 = vst [vmem:[%s2889_s26 + $0x358] sm:$0xff] %v364_v43  ;;  %367 = vst [vmem:[%s2889_s26 + $0x360] sm:$0xff] %v366_v44  ;;  %v374_v48 = vld [vmem:[%s2881_s25 + $0x700] sm:$0xff]  ;;  %v376_v49 = vld [vmem:[%s2881_s25 + $0x708] sm:$0xff] }
  0x49   : > { %369 = vst [vmem:[%s2889_s26 + $0x368] sm:$0xff] %v368_v45  ;;  %371 = vst [vmem:[%s2889_s26 + $0x370] sm:$0xff] %v370_v46  ;;  %v378_v50 = vld [vmem:[%s2881_s25 + $0x710] sm:$0xff]  ;;  %v380_v51 = vld [vmem:[%s2881_s25 + $0x718] sm:$0xff] }
  0x4a   : > { %373 = vst [vmem:[%s2889_s26 + $0x378] sm:$0xff] %v372_v47  ;;  %375 = vst [vmem:[%s2889_s26 + $0x380] sm:$0xff] %v374_v48  ;;  %v382_v52 = vld [vmem:[%s2881_s25 + $0x740] sm:$0xff]  ;;  %v384_v53 = vld [vmem:[%s2881_s25 + $0x748] sm:$0xff] }
  0x4b   : > { %377 = vst [vmem:[%s2889_s26 + $0x388] sm:$0xff] %v376_v49  ;;  %379 = vst [vmem:[%s2889_s26 + $0x390] sm:$0xff] %v378_v50  ;;  %v386_v54 = vld [vmem:[%s2881_s25 + $0x750] sm:$0xff]  ;;  %v388_v55 = vld [vmem:[%s2881_s25 + $0x758] sm:$0xff] }
  0x4c   : > { %381 = vst [vmem:[%s2889_s26 + $0x398] sm:$0xff] %v380_v51  ;;  %383 = vst [vmem:[%s2889_s26 + $0x3a0] sm:$0xff] %v382_v52  ;;  %v390_v56 = vld [vmem:[%s2881_s25 + $0x780] sm:$0xff]  ;;  %v392_v57 = vld [vmem:[%s2881_s25 + $0x788] sm:$0xff] }
  0x4d   : > { %385 = vst [vmem:[%s2889_s26 + $0x3a8] sm:$0xff] %v384_v53  ;;  %387 = vst [vmem:[%s2889_s26 + $0x3b0] sm:$0xff] %v386_v54  ;;  %v394_v58 = vld [vmem:[%s2881_s25 + $0x790] sm:$0xff]  ;;  %v396_v59 = vld [vmem:[%s2881_s25 + $0x798] sm:$0xff] }
  0x4e   : > { %389 = vst [vmem:[%s2889_s26 + $0x3b8] sm:$0xff] %v388_v55  ;;  %391 = vst [vmem:[%s2889_s26 + $0x3c0] sm:$0xff] %v390_v56  ;;  %v398_v60 = vld [vmem:[%s2881_s25 + $0x7c0] sm:$0xff]  ;;  %v400_v61 = vld [vmem:[%s2881_s25 + $0x7c8] sm:$0xff] }
  0x4f   : > { %393 = vst [vmem:[%s2889_s26 + $0x3c8] sm:$0xff] %v392_v57  ;;  %395 = vst [vmem:[%s2889_s26 + $0x3d0] sm:$0xff] %v394_v58  ;;  %v402_v62 = vld [vmem:[%s2881_s25 + $0x7d0] sm:$0xff]  ;;  %v404_v63 = vld [vmem:[%s2881_s25 + $0x7d8] sm:$0xff] }
  0x50   : > { %397 = vst [vmem:[%s2889_s26 + $0x3d8] sm:$0xff] %v396_v59  ;;  %399 = vst [vmem:[%s2889_s26 + $0x3e0] sm:$0xff] %v398_v60  ;;  %v406_v0 = vld [vmem:[%s2881_s25 + $0x800] sm:$0xff]  ;;  %v408_v1 = vld [vmem:[%s2881_s25 + $0x808] sm:$0xff] }
  0x51   : > { %401 = vst [vmem:[%s2889_s26 + $0x3e8] sm:$0xff] %v400_v61  ;;  %403 = vst [vmem:[%s2889_s26 + $0x3f0] sm:$0xff] %v402_v62  ;;  %v410_v2 = vld [vmem:[%s2881_s25 + $0x810] sm:$0xff]  ;;  %v412_v3 = vld [vmem:[%s2881_s25 + $0x818] sm:$0xff] }
  0x52   : > { %405 = vst [vmem:[%s2889_s26 + $0x3f8] sm:$0xff] %v404_v63  ;;  %407 = vst [vmem:[%s2889_s26 + $0x400] sm:$0xff] %v406_v0  ;;  %v414_v4 = vld [vmem:[%s2881_s25 + $0x840] sm:$0xff]  ;;  %v416_v5 = vld [vmem:[%s2881_s25 + $0x848] sm:$0xff] }
  0x53   : > { %409 = vst [vmem:[%s2889_s26 + $0x408] sm:$0xff] %v408_v1  ;;  %411 = vst [vmem:[%s2889_s26 + $0x410] sm:$0xff] %v410_v2  ;;  %v418_v6 = vld [vmem:[%s2881_s25 + $0x850] sm:$0xff]  ;;  %v420_v7 = vld [vmem:[%s2881_s25 + $0x858] sm:$0xff] }
  0x54   : > { %413 = vst [vmem:[%s2889_s26 + $0x418] sm:$0xff] %v412_v3  ;;  %415 = vst [vmem:[%s2889_s26 + $0x420] sm:$0xff] %v414_v4  ;;  %v422_v8 = vld [vmem:[%s2881_s25 + $0x880] sm:$0xff]  ;;  %v424_v9 = vld [vmem:[%s2881_s25 + $0x888] sm:$0xff] }
  0x55   : > { %417 = vst [vmem:[%s2889_s26 + $0x428] sm:$0xff] %v416_v5  ;;  %419 = vst [vmem:[%s2889_s26 + $0x430] sm:$0xff] %v418_v6  ;;  %v426_v10 = vld [vmem:[%s2881_s25 + $0x890] sm:$0xff]  ;;  %v428_v11 = vld [vmem:[%s2881_s25 + $0x898] sm:$0xff] }
  0x56   : > { %421 = vst [vmem:[%s2889_s26 + $0x438] sm:$0xff] %v420_v7  ;;  %423 = vst [vmem:[%s2889_s26 + $0x440] sm:$0xff] %v422_v8  ;;  %v430_v12 = vld [vmem:[%s2881_s25 + $0x8c0] sm:$0xff]  ;;  %v432_v13 = vld [vmem:[%s2881_s25 + $0x8c8] sm:$0xff] }
  0x57   : > { %425 = vst [vmem:[%s2889_s26 + $0x448] sm:$0xff] %v424_v9  ;;  %427 = vst [vmem:[%s2889_s26 + $0x450] sm:$0xff] %v426_v10  ;;  %v434_v14 = vld [vmem:[%s2881_s25 + $0x8d0] sm:$0xff]  ;;  %v436_v15 = vld [vmem:[%s2881_s25 + $0x8d8] sm:$0xff] }
  0x58   : > { %429 = vst [vmem:[%s2889_s26 + $0x458] sm:$0xff] %v428_v11  ;;  %431 = vst [vmem:[%s2889_s26 + $0x460] sm:$0xff] %v430_v12  ;;  %v438_v16 = vld [vmem:[%s2881_s25 + $0x900] sm:$0xff]  ;;  %v440_v17 = vld [vmem:[%s2881_s25 + $0x908] sm:$0xff] }
  0x59   : > { %433 = vst [vmem:[%s2889_s26 + $0x468] sm:$0xff] %v432_v13  ;;  %435 = vst [vmem:[%s2889_s26 + $0x470] sm:$0xff] %v434_v14  ;;  %v442_v18 = vld [vmem:[%s2881_s25 + $0x910] sm:$0xff]  ;;  %v444_v19 = vld [vmem:[%s2881_s25 + $0x918] sm:$0xff] }
  0x5a   : > { %437 = vst [vmem:[%s2889_s26 + $0x478] sm:$0xff] %v436_v15  ;;  %439 = vst [vmem:[%s2889_s26 + $0x480] sm:$0xff] %v438_v16  ;;  %v446_v20 = vld [vmem:[%s2881_s25 + $0x940] sm:$0xff]  ;;  %v448_v21 = vld [vmem:[%s2881_s25 + $0x948] sm:$0xff] }
  0x5b   : > { %441 = vst [vmem:[%s2889_s26 + $0x488] sm:$0xff] %v440_v17  ;;  %443 = vst [vmem:[%s2889_s26 + $0x490] sm:$0xff] %v442_v18  ;;  %v450_v22 = vld [vmem:[%s2881_s25 + $0x950] sm:$0xff]  ;;  %v452_v23 = vld [vmem:[%s2881_s25 + $0x958] sm:$0xff] }
  0x5c   : > { %445 = vst [vmem:[%s2889_s26 + $0x498] sm:$0xff] %v444_v19  ;;  %447 = vst [vmem:[%s2889_s26 + $0x4a0] sm:$0xff] %v446_v20  ;;  %v454_v24 = vld [vmem:[%s2881_s25 + $0x980] sm:$0xff]  ;;  %v456_v25 = vld [vmem:[%s2881_s25 + $0x988] sm:$0xff] }
  0x5d   : > { %449 = vst [vmem:[%s2889_s26 + $0x4a8] sm:$0xff] %v448_v21  ;;  %451 = vst [vmem:[%s2889_s26 + $0x4b0] sm:$0xff] %v450_v22  ;;  %v458_v26 = vld [vmem:[%s2881_s25 + $0x990] sm:$0xff]  ;;  %v460_v27 = vld [vmem:[%s2881_s25 + $0x998] sm:$0xff] }
  0x5e   : > { %453 = vst [vmem:[%s2889_s26 + $0x4b8] sm:$0xff] %v452_v23  ;;  %455 = vst [vmem:[%s2889_s26 + $0x4c0] sm:$0xff] %v454_v24  ;;  %v462_v28 = vld [vmem:[%s2881_s25 + $0x9c0] sm:$0xff]  ;;  %v464_v29 = vld [vmem:[%s2881_s25 + $0x9c8] sm:$0xff] }
  0x5f   : > { %457 = vst [vmem:[%s2889_s26 + $0x4c8] sm:$0xff] %v456_v25  ;;  %459 = vst [vmem:[%s2889_s26 + $0x4d0] sm:$0xff] %v458_v26  ;;  %v466_v30 = vld [vmem:[%s2881_s25 + $0x9d0] sm:$0xff]  ;;  %v468_v31 = vld [vmem:[%s2881_s25 + $0x9d8] sm:$0xff] }
  0x60   : > { %461 = vst [vmem:[%s2889_s26 + $0x4d8] sm:$0xff] %v460_v27  ;;  %463 = vst [vmem:[%s2889_s26 + $0x4e0] sm:$0xff] %v462_v28  ;;  %v470_v32 = vld [vmem:[%s2881_s25 + $0xa00] sm:$0xff]  ;;  %v472_v33 = vld [vmem:[%s2881_s25 + $0xa08] sm:$0xff] }
  0x61   : > { %465 = vst [vmem:[%s2889_s26 + $0x4e8] sm:$0xff] %v464_v29  ;;  %467 = vst [vmem:[%s2889_s26 + $0x4f0] sm:$0xff] %v466_v30  ;;  %v474_v34 = vld [vmem:[%s2881_s25 + $0xa10] sm:$0xff]  ;;  %v476_v35 = vld [vmem:[%s2881_s25 + $0xa18] sm:$0xff] }
  0x62   : > { %469 = vst [vmem:[%s2889_s26 + $0x4f8] sm:$0xff] %v468_v31  ;;  %471 = vst [vmem:[%s2889_s26 + $0x500] sm:$0xff] %v470_v32  ;;  %v478_v36 = vld [vmem:[%s2881_s25 + $0xa40] sm:$0xff]  ;;  %v480_v37 = vld [vmem:[%s2881_s25 + $0xa48] sm:$0xff] }
  0x63   : > { %473 = vst [vmem:[%s2889_s26 + $0x508] sm:$0xff] %v472_v33  ;;  %475 = vst [vmem:[%s2889_s26 + $0x510] sm:$0xff] %v474_v34  ;;  %v482_v38 = vld [vmem:[%s2881_s25 + $0xa50] sm:$0xff]  ;;  %v484_v39 = vld [vmem:[%s2881_s25 + $0xa58] sm:$0xff] }
  0x64   : > { %477 = vst [vmem:[%s2889_s26 + $0x518] sm:$0xff] %v476_v35  ;;  %479 = vst [vmem:[%s2889_s26 + $0x520] sm:$0xff] %v478_v36  ;;  %v486_v40 = vld [vmem:[%s2881_s25 + $0xa80] sm:$0xff]  ;;  %v488_v41 = vld [vmem:[%s2881_s25 + $0xa88] sm:$0xff] }
  0x65   : > { %481 = vst [vmem:[%s2889_s26 + $0x528] sm:$0xff] %v480_v37  ;;  %483 = vst [vmem:[%s2889_s26 + $0x530] sm:$0xff] %v482_v38  ;;  %v490_v42 = vld [vmem:[%s2881_s25 + $0xa90] sm:$0xff]  ;;  %v492_v43 = vld [vmem:[%s2881_s25 + $0xa98] sm:$0xff] }
  0x66   : > { %485 = vst [vmem:[%s2889_s26 + $0x538] sm:$0xff] %v484_v39  ;;  %487 = vst [vmem:[%s2889_s26 + $0x540] sm:$0xff] %v486_v40  ;;  %v494_v44 = vld [vmem:[%s2881_s25 + $0xac0] sm:$0xff]  ;;  %v496_v45 = vld [vmem:[%s2881_s25 + $0xac8] sm:$0xff] }
  0x67   : > { %489 = vst [vmem:[%s2889_s26 + $0x548] sm:$0xff] %v488_v41  ;;  %491 = vst [vmem:[%s2889_s26 + $0x550] sm:$0xff] %v490_v42  ;;  %v498_v46 = vld [vmem:[%s2881_s25 + $0xad0] sm:$0xff]  ;;  %v500_v47 = vld [vmem:[%s2881_s25 + $0xad8] sm:$0xff] }
  0x68   : > { %493 = vst [vmem:[%s2889_s26 + $0x558] sm:$0xff] %v492_v43  ;;  %495 = vst [vmem:[%s2889_s26 + $0x560] sm:$0xff] %v494_v44  ;;  %v502_v48 = vld [vmem:[%s2881_s25 + $0xb00] sm:$0xff]  ;;  %v504_v49 = vld [vmem:[%s2881_s25 + $0xb08] sm:$0xff] }
  0x69   : > { %497 = vst [vmem:[%s2889_s26 + $0x568] sm:$0xff] %v496_v45  ;;  %499 = vst [vmem:[%s2889_s26 + $0x570] sm:$0xff] %v498_v46  ;;  %v506_v50 = vld [vmem:[%s2881_s25 + $0xb10] sm:$0xff]  ;;  %v508_v51 = vld [vmem:[%s2881_s25 + $0xb18] sm:$0xff] }
  0x6a   : > { %501 = vst [vmem:[%s2889_s26 + $0x578] sm:$0xff] %v500_v47  ;;  %503 = vst [vmem:[%s2889_s26 + $0x580] sm:$0xff] %v502_v48  ;;  %v510_v52 = vld [vmem:[%s2881_s25 + $0xb40] sm:$0xff]  ;;  %v512_v53 = vld [vmem:[%s2881_s25 + $0xb48] sm:$0xff] }
  0x6b   : > { %505 = vst [vmem:[%s2889_s26 + $0x588] sm:$0xff] %v504_v49  ;;  %507 = vst [vmem:[%s2889_s26 + $0x590] sm:$0xff] %v506_v50  ;;  %v514_v54 = vld [vmem:[%s2881_s25 + $0xb50] sm:$0xff]  ;;  %v516_v55 = vld [vmem:[%s2881_s25 + $0xb58] sm:$0xff] }
  0x6c   : > { %509 = vst [vmem:[%s2889_s26 + $0x598] sm:$0xff] %v508_v51  ;;  %511 = vst [vmem:[%s2889_s26 + $0x5a0] sm:$0xff] %v510_v52  ;;  %v518_v56 = vld [vmem:[%s2881_s25 + $0xb80] sm:$0xff]  ;;  %v520_v57 = vld [vmem:[%s2881_s25 + $0xb88] sm:$0xff] }
  0x6d   : > { %513 = vst [vmem:[%s2889_s26 + $0x5a8] sm:$0xff] %v512_v53  ;;  %515 = vst [vmem:[%s2889_s26 + $0x5b0] sm:$0xff] %v514_v54  ;;  %v522_v58 = vld [vmem:[%s2881_s25 + $0xb90] sm:$0xff]  ;;  %v524_v59 = vld [vmem:[%s2881_s25 + $0xb98] sm:$0xff] }
  0x6e   : > { %517 = vst [vmem:[%s2889_s26 + $0x5b8] sm:$0xff] %v516_v55  ;;  %519 = vst [vmem:[%s2889_s26 + $0x5c0] sm:$0xff] %v518_v56  ;;  %v526_v60 = vld [vmem:[%s2881_s25 + $0xbc0] sm:$0xff]  ;;  %v528_v61 = vld [vmem:[%s2881_s25 + $0xbc8] sm:$0xff] }
  0x6f   : > { %521 = vst [vmem:[%s2889_s26 + $0x5c8] sm:$0xff] %v520_v57  ;;  %523 = vst [vmem:[%s2889_s26 + $0x5d0] sm:$0xff] %v522_v58  ;;  %v530_v62 = vld [vmem:[%s2881_s25 + $0xbd0] sm:$0xff]  ;;  %v532_v63 = vld [vmem:[%s2881_s25 + $0xbd8] sm:$0xff] }
  0x70   : > { %525 = vst [vmem:[%s2889_s26 + $0x5d8] sm:$0xff] %v524_v59  ;;  %527 = vst [vmem:[%s2889_s26 + $0x5e0] sm:$0xff] %v526_v60  ;;  %v534_v0 = vld [vmem:[%s2881_s25 + $0xc00] sm:$0xff]  ;;  %v536_v1 = vld [vmem:[%s2881_s25 + $0xc08] sm:$0xff] }
  0x71   : > { %529 = vst [vmem:[%s2889_s26 + $0x5e8] sm:$0xff] %v528_v61  ;;  %531 = vst [vmem:[%s2889_s26 + $0x5f0] sm:$0xff] %v530_v62  ;;  %v538_v2 = vld [vmem:[%s2881_s25 + $0xc10] sm:$0xff]  ;;  %v540_v3 = vld [vmem:[%s2881_s25 + $0xc18] sm:$0xff] }
  0x72   : > { %533 = vst [vmem:[%s2889_s26 + $0x5f8] sm:$0xff] %v532_v63  ;;  %535 = vst [vmem:[%s2889_s26 + $0x600] sm:$0xff] %v534_v0  ;;  %v542_v4 = vld [vmem:[%s2881_s25 + $0xc40] sm:$0xff]  ;;  %v544_v5 = vld [vmem:[%s2881_s25 + $0xc48] sm:$0xff] }
  0x73   : > { %537 = vst [vmem:[%s2889_s26 + $0x608] sm:$0xff] %v536_v1  ;;  %539 = vst [vmem:[%s2889_s26 + $0x610] sm:$0xff] %v538_v2  ;;  %v546_v6 = vld [vmem:[%s2881_s25 + $0xc50] sm:$0xff]  ;;  %v548_v7 = vld [vmem:[%s2881_s25 + $0xc58] sm:$0xff] }
  0x74   : > { %541 = vst [vmem:[%s2889_s26 + $0x618] sm:$0xff] %v540_v3  ;;  %543 = vst [vmem:[%s2889_s26 + $0x620] sm:$0xff] %v542_v4  ;;  %v550_v8 = vld [vmem:[%s2881_s25 + $0xc80] sm:$0xff]  ;;  %v552_v9 = vld [vmem:[%s2881_s25 + $0xc88] sm:$0xff] }
  0x75   : > { %545 = vst [vmem:[%s2889_s26 + $0x628] sm:$0xff] %v544_v5  ;;  %547 = vst [vmem:[%s2889_s26 + $0x630] sm:$0xff] %v546_v6  ;;  %v554_v10 = vld [vmem:[%s2881_s25 + $0xc90] sm:$0xff]  ;;  %v556_v11 = vld [vmem:[%s2881_s25 + $0xc98] sm:$0xff] }
  0x76   : > { %549 = vst [vmem:[%s2889_s26 + $0x638] sm:$0xff] %v548_v7  ;;  %551 = vst [vmem:[%s2889_s26 + $0x640] sm:$0xff] %v550_v8  ;;  %v558_v12 = vld [vmem:[%s2881_s25 + $0xcc0] sm:$0xff]  ;;  %v560_v13 = vld [vmem:[%s2881_s25 + $0xcc8] sm:$0xff] }
  0x77   : > { %553 = vst [vmem:[%s2889_s26 + $0x648] sm:$0xff] %v552_v9  ;;  %555 = vst [vmem:[%s2889_s26 + $0x650] sm:$0xff] %v554_v10  ;;  %v562_v14 = vld [vmem:[%s2881_s25 + $0xcd0] sm:$0xff]  ;;  %v564_v15 = vld [vmem:[%s2881_s25 + $0xcd8] sm:$0xff] }
  0x78   : > { %557 = vst [vmem:[%s2889_s26 + $0x658] sm:$0xff] %v556_v11  ;;  %559 = vst [vmem:[%s2889_s26 + $0x660] sm:$0xff] %v558_v12  ;;  %v566_v16 = vld [vmem:[%s2881_s25 + $0xd00] sm:$0xff]  ;;  %v568_v17 = vld [vmem:[%s2881_s25 + $0xd08] sm:$0xff] }
  0x79   : > { %561 = vst [vmem:[%s2889_s26 + $0x668] sm:$0xff] %v560_v13  ;;  %563 = vst [vmem:[%s2889_s26 + $0x670] sm:$0xff] %v562_v14  ;;  %v570_v18 = vld [vmem:[%s2881_s25 + $0xd10] sm:$0xff]  ;;  %v572_v19 = vld [vmem:[%s2881_s25 + $0xd18] sm:$0xff] }
  0x7a   : > { %565 = vst [vmem:[%s2889_s26 + $0x678] sm:$0xff] %v564_v15  ;;  %567 = vst [vmem:[%s2889_s26 + $0x680] sm:$0xff] %v566_v16  ;;  %v574_v20 = vld [vmem:[%s2881_s25 + $0xd40] sm:$0xff]  ;;  %v576_v21 = vld [vmem:[%s2881_s25 + $0xd48] sm:$0xff] }
  0x7b   : > { %569 = vst [vmem:[%s2889_s26 + $0x688] sm:$0xff] %v568_v17  ;;  %571 = vst [vmem:[%s2889_s26 + $0x690] sm:$0xff] %v570_v18  ;;  %v578_v22 = vld [vmem:[%s2881_s25 + $0xd50] sm:$0xff]  ;;  %v580_v23 = vld [vmem:[%s2881_s25 + $0xd58] sm:$0xff] }
  0x7c   : > { %573 = vst [vmem:[%s2889_s26 + $0x698] sm:$0xff] %v572_v19  ;;  %575 = vst [vmem:[%s2889_s26 + $0x6a0] sm:$0xff] %v574_v20  ;;  %v582_v24 = vld [vmem:[%s2881_s25 + $0xd80] sm:$0xff]  ;;  %v584_v25 = vld [vmem:[%s2881_s25 + $0xd88] sm:$0xff] }
  0x7d   : > { %577 = vst [vmem:[%s2889_s26 + $0x6a8] sm:$0xff] %v576_v21  ;;  %579 = vst [vmem:[%s2889_s26 + $0x6b0] sm:$0xff] %v578_v22  ;;  %v586_v26 = vld [vmem:[%s2881_s25 + $0xd90] sm:$0xff]  ;;  %v588_v27 = vld [vmem:[%s2881_s25 + $0xd98] sm:$0xff] }
  0x7e   : > { %581 = vst [vmem:[%s2889_s26 + $0x6b8] sm:$0xff] %v580_v23  ;;  %583 = vst [vmem:[%s2889_s26 + $0x6c0] sm:$0xff] %v582_v24  ;;  %v590_v28 = vld [vmem:[%s2881_s25 + $0xdc0] sm:$0xff]  ;;  %v592_v29 = vld [vmem:[%s2881_s25 + $0xdc8] sm:$0xff] }
  0x7f   : > { %585 = vst [vmem:[%s2889_s26 + $0x6c8] sm:$0xff] %v584_v25  ;;  %587 = vst [vmem:[%s2889_s26 + $0x6d0] sm:$0xff] %v586_v26  ;;  %v594_v30 = vld [vmem:[%s2881_s25 + $0xdd0] sm:$0xff]  ;;  %v596_v31 = vld [vmem:[%s2881_s25 + $0xdd8] sm:$0xff] }
  0x80   : > { %589 = vst [vmem:[%s2889_s26 + $0x6d8] sm:$0xff] %v588_v27  ;;  %591 = vst [vmem:[%s2889_s26 + $0x6e0] sm:$0xff] %v590_v28  ;;  %v598_v32 = vld [vmem:[%s2881_s25 + $0xe00] sm:$0xff]  ;;  %v600_v33 = vld [vmem:[%s2881_s25 + $0xe08] sm:$0xff] }
  0x81   : > { %593 = vst [vmem:[%s2889_s26 + $0x6e8] sm:$0xff] %v592_v29  ;;  %595 = vst [vmem:[%s2889_s26 + $0x6f0] sm:$0xff] %v594_v30  ;;  %v602_v34 = vld [vmem:[%s2881_s25 + $0xe10] sm:$0xff]  ;;  %v604_v35 = vld [vmem:[%s2881_s25 + $0xe18] sm:$0xff] }
  0x82   : > { %597 = vst [vmem:[%s2889_s26 + $0x6f8] sm:$0xff] %v596_v31  ;;  %599 = vst [vmem:[%s2889_s26 + $0x700] sm:$0xff] %v598_v32  ;;  %v606_v36 = vld [vmem:[%s2881_s25 + $0xe40] sm:$0xff]  ;;  %v608_v37 = vld [vmem:[%s2881_s25 + $0xe48] sm:$0xff] }
  0x83   : > { %601 = vst [vmem:[%s2889_s26 + $0x708] sm:$0xff] %v600_v33  ;;  %603 = vst [vmem:[%s2889_s26 + $0x710] sm:$0xff] %v602_v34  ;;  %v610_v38 = vld [vmem:[%s2881_s25 + $0xe50] sm:$0xff]  ;;  %v612_v39 = vld [vmem:[%s2881_s25 + $0xe58] sm:$0xff] }
  0x84   : > { %605 = vst [vmem:[%s2889_s26 + $0x718] sm:$0xff] %v604_v35  ;;  %607 = vst [vmem:[%s2889_s26 + $0x720] sm:$0xff] %v606_v36  ;;  %v614_v40 = vld [vmem:[%s2881_s25 + $0xe80] sm:$0xff]  ;;  %v616_v41 = vld [vmem:[%s2881_s25 + $0xe88] sm:$0xff] }
  0x85   : > { %609 = vst [vmem:[%s2889_s26 + $0x728] sm:$0xff] %v608_v37  ;;  %611 = vst [vmem:[%s2889_s26 + $0x730] sm:$0xff] %v610_v38  ;;  %v618_v42 = vld [vmem:[%s2881_s25 + $0xe90] sm:$0xff]  ;;  %v620_v43 = vld [vmem:[%s2881_s25 + $0xe98] sm:$0xff] }
  0x86   : > { %613 = vst [vmem:[%s2889_s26 + $0x738] sm:$0xff] %v612_v39  ;;  %615 = vst [vmem:[%s2889_s26 + $0x740] sm:$0xff] %v614_v40  ;;  %v622_v44 = vld [vmem:[%s2881_s25 + $0xec0] sm:$0xff]  ;;  %v624_v45 = vld [vmem:[%s2881_s25 + $0xec8] sm:$0xff] }
  0x87   : > { %617 = vst [vmem:[%s2889_s26 + $0x748] sm:$0xff] %v616_v41  ;;  %619 = vst [vmem:[%s2889_s26 + $0x750] sm:$0xff] %v618_v42  ;;  %v626_v46 = vld [vmem:[%s2881_s25 + $0xed0] sm:$0xff]  ;;  %v628_v47 = vld [vmem:[%s2881_s25 + $0xed8] sm:$0xff] }
  0x88   : > { %621 = vst [vmem:[%s2889_s26 + $0x758] sm:$0xff] %v620_v43  ;;  %623 = vst [vmem:[%s2889_s26 + $0x760] sm:$0xff] %v622_v44  ;;  %v630_v48 = vld [vmem:[%s2881_s25 + $0xf00] sm:$0xff]  ;;  %v632_v49 = vld [vmem:[%s2881_s25 + $0xf08] sm:$0xff] }
  0x89   : > { %625 = vst [vmem:[%s2889_s26 + $0x768] sm:$0xff] %v624_v45  ;;  %627 = vst [vmem:[%s2889_s26 + $0x770] sm:$0xff] %v626_v46  ;;  %v634_v50 = vld [vmem:[%s2881_s25 + $0xf10] sm:$0xff]  ;;  %v636_v51 = vld [vmem:[%s2881_s25 + $0xf18] sm:$0xff] }
  0x8a   : > { %629 = vst [vmem:[%s2889_s26 + $0x778] sm:$0xff] %v628_v47  ;;  %631 = vst [vmem:[%s2889_s26 + $0x780] sm:$0xff] %v630_v48  ;;  %v638_v52 = vld [vmem:[%s2881_s25 + $0xf40] sm:$0xff]  ;;  %v640_v53 = vld [vmem:[%s2881_s25 + $0xf48] sm:$0xff] }
  0x8b   : > { %633 = vst [vmem:[%s2889_s26 + $0x788] sm:$0xff] %v632_v49  ;;  %635 = vst [vmem:[%s2889_s26 + $0x790] sm:$0xff] %v634_v50  ;;  %v642_v54 = vld [vmem:[%s2881_s25 + $0xf50] sm:$0xff]  ;;  %v644_v55 = vld [vmem:[%s2881_s25 + $0xf58] sm:$0xff] }
  0x8c   : > { %637 = vst [vmem:[%s2889_s26 + $0x798] sm:$0xff] %v636_v51  ;;  %639 = vst [vmem:[%s2889_s26 + $0x7a0] sm:$0xff] %v638_v52  ;;  %v646_v56 = vld [vmem:[%s2881_s25 + $0xf80] sm:$0xff]  ;;  %v648_v57 = vld [vmem:[%s2881_s25 + $0xf88] sm:$0xff] }
  0x8d   : > { %641 = vst [vmem:[%s2889_s26 + $0x7a8] sm:$0xff] %v640_v53  ;;  %643 = vst [vmem:[%s2889_s26 + $0x7b0] sm:$0xff] %v642_v54  ;;  %v650_v58 = vld [vmem:[%s2881_s25 + $0xf90] sm:$0xff]  ;;  %v652_v59 = vld [vmem:[%s2881_s25 + $0xf98] sm:$0xff] }
  0x8e   : > { %645 = vst [vmem:[%s2889_s26 + $0x7b8] sm:$0xff] %v644_v55  ;;  %647 = vst [vmem:[%s2889_s26 + $0x7c0] sm:$0xff] %v646_v56  ;;  %v654_v60 = vld [vmem:[%s2881_s25 + $0xfc0] sm:$0xff]  ;;  %v656_v61 = vld [vmem:[%s2881_s25 + $0xfc8] sm:$0xff] }
  0x8f   : > { %649 = vst [vmem:[%s2889_s26 + $0x7c8] sm:$0xff] %v648_v57  ;;  %651 = vst [vmem:[%s2889_s26 + $0x7d0] sm:$0xff] %v650_v58  ;;  %v658_v62 = vld [vmem:[%s2881_s25 + $0xfd0] sm:$0xff]  ;;  %v660_v63 = vld [vmem:[%s2881_s25 + $0xfd8] sm:$0xff] }
  0x90   : > { %653 = vst [vmem:[%s2889_s26 + $0x7d8] sm:$0xff] %v652_v59  ;;  %655 = vst [vmem:[%s2889_s26 + $0x7e0] sm:$0xff] %v654_v60  ;;  %v662_v0 = vld [vmem:[%s2881_s25 + $0x1000] sm:$0xff]  ;;  %v664_v1 = vld [vmem:[%s2881_s25 + $0x1008] sm:$0xff] }
  0x91   : > { %657 = vst [vmem:[%s2889_s26 + $0x7e8] sm:$0xff] %v656_v61  ;;  %659 = vst [vmem:[%s2889_s26 + $0x7f0] sm:$0xff] %v658_v62  ;;  %v666_v2 = vld [vmem:[%s2881_s25 + $0x1010] sm:$0xff]  ;;  %v668_v3 = vld [vmem:[%s2881_s25 + $0x1018] sm:$0xff] }
  0x92   : > { %661 = vst [vmem:[%s2889_s26 + $0x7f8] sm:$0xff] %v660_v63  ;;  %663 = vst [vmem:[%s2889_s26 + $0x800] sm:$0xff] %v662_v0  ;;  %v670_v4 = vld [vmem:[%s2881_s25 + $0x1040] sm:$0xff]  ;;  %v672_v5 = vld [vmem:[%s2881_s25 + $0x1048] sm:$0xff] }
  0x93   : > { %665 = vst [vmem:[%s2889_s26 + $0x808] sm:$0xff] %v664_v1  ;;  %667 = vst [vmem:[%s2889_s26 + $0x810] sm:$0xff] %v666_v2  ;;  %v674_v6 = vld [vmem:[%s2881_s25 + $0x1050] sm:$0xff]  ;;  %v676_v7 = vld [vmem:[%s2881_s25 + $0x1058] sm:$0xff] }
  0x94   : > { %669 = vst [vmem:[%s2889_s26 + $0x818] sm:$0xff] %v668_v3  ;;  %671 = vst [vmem:[%s2889_s26 + $0x820] sm:$0xff] %v670_v4  ;;  %v678_v8 = vld [vmem:[%s2881_s25 + $0x1080] sm:$0xff]  ;;  %v680_v9 = vld [vmem:[%s2881_s25 + $0x1088] sm:$0xff] }
  0x95   : > { %673 = vst [vmem:[%s2889_s26 + $0x828] sm:$0xff] %v672_v5  ;;  %675 = vst [vmem:[%s2889_s26 + $0x830] sm:$0xff] %v674_v6  ;;  %v682_v10 = vld [vmem:[%s2881_s25 + $0x1090] sm:$0xff]  ;;  %v684_v11 = vld [vmem:[%s2881_s25 + $0x1098] sm:$0xff] }
  0x96   : > { %677 = vst [vmem:[%s2889_s26 + $0x838] sm:$0xff] %v676_v7  ;;  %679 = vst [vmem:[%s2889_s26 + $0x840] sm:$0xff] %v678_v8  ;;  %v686_v12 = vld [vmem:[%s2881_s25 + $0x10c0] sm:$0xff]  ;;  %v688_v13 = vld [vmem:[%s2881_s25 + $0x10c8] sm:$0xff] }
  0x97   : > { %681 = vst [vmem:[%s2889_s26 + $0x848] sm:$0xff] %v680_v9  ;;  %683 = vst [vmem:[%s2889_s26 + $0x850] sm:$0xff] %v682_v10  ;;  %v690_v14 = vld [vmem:[%s2881_s25 + $0x10d0] sm:$0xff]  ;;  %v692_v15 = vld [vmem:[%s2881_s25 + $0x10d8] sm:$0xff] }
  0x98   : > { %685 = vst [vmem:[%s2889_s26 + $0x858] sm:$0xff] %v684_v11  ;;  %687 = vst [vmem:[%s2889_s26 + $0x860] sm:$0xff] %v686_v12  ;;  %v694_v16 = vld [vmem:[%s2881_s25 + $0x1100] sm:$0xff]  ;;  %v696_v17 = vld [vmem:[%s2881_s25 + $0x1108] sm:$0xff] }
  0x99   : > { %689 = vst [vmem:[%s2889_s26 + $0x868] sm:$0xff] %v688_v13  ;;  %691 = vst [vmem:[%s2889_s26 + $0x870] sm:$0xff] %v690_v14  ;;  %v698_v18 = vld [vmem:[%s2881_s25 + $0x1110] sm:$0xff]  ;;  %v700_v19 = vld [vmem:[%s2881_s25 + $0x1118] sm:$0xff] }
  0x9a   : > { %693 = vst [vmem:[%s2889_s26 + $0x878] sm:$0xff] %v692_v15  ;;  %695 = vst [vmem:[%s2889_s26 + $0x880] sm:$0xff] %v694_v16  ;;  %v702_v20 = vld [vmem:[%s2881_s25 + $0x1140] sm:$0xff]  ;;  %v704_v21 = vld [vmem:[%s2881_s25 + $0x1148] sm:$0xff] }
  0x9b   : > { %697 = vst [vmem:[%s2889_s26 + $0x888] sm:$0xff] %v696_v17  ;;  %699 = vst [vmem:[%s2889_s26 + $0x890] sm:$0xff] %v698_v18  ;;  %v706_v22 = vld [vmem:[%s2881_s25 + $0x1150] sm:$0xff]  ;;  %v708_v23 = vld [vmem:[%s2881_s25 + $0x1158] sm:$0xff] }
  0x9c   : > { %701 = vst [vmem:[%s2889_s26 + $0x898] sm:$0xff] %v700_v19  ;;  %703 = vst [vmem:[%s2889_s26 + $0x8a0] sm:$0xff] %v702_v20  ;;  %v710_v24 = vld [vmem:[%s2881_s25 + $0x1180] sm:$0xff]  ;;  %v712_v25 = vld [vmem:[%s2881_s25 + $0x1188] sm:$0xff] }
  0x9d   : > { %705 = vst [vmem:[%s2889_s26 + $0x8a8] sm:$0xff] %v704_v21  ;;  %707 = vst [vmem:[%s2889_s26 + $0x8b0] sm:$0xff] %v706_v22  ;;  %v714_v26 = vld [vmem:[%s2881_s25 + $0x1190] sm:$0xff]  ;;  %v716_v27 = vld [vmem:[%s2881_s25 + $0x1198] sm:$0xff] }
  0x9e   : > { %709 = vst [vmem:[%s2889_s26 + $0x8b8] sm:$0xff] %v708_v23  ;;  %711 = vst [vmem:[%s2889_s26 + $0x8c0] sm:$0xff] %v710_v24  ;;  %v718_v28 = vld [vmem:[%s2881_s25 + $0x11c0] sm:$0xff]  ;;  %v720_v29 = vld [vmem:[%s2881_s25 + $0x11c8] sm:$0xff] }
  0x9f   : > { %713 = vst [vmem:[%s2889_s26 + $0x8c8] sm:$0xff] %v712_v25  ;;  %715 = vst [vmem:[%s2889_s26 + $0x8d0] sm:$0xff] %v714_v26  ;;  %v722_v30 = vld [vmem:[%s2881_s25 + $0x11d0] sm:$0xff]  ;;  %v724_v31 = vld [vmem:[%s2881_s25 + $0x11d8] sm:$0xff] }
  0xa0   : > { %717 = vst [vmem:[%s2889_s26 + $0x8d8] sm:$0xff] %v716_v27  ;;  %719 = vst [vmem:[%s2889_s26 + $0x8e0] sm:$0xff] %v718_v28  ;;  %v726_v32 = vld [vmem:[%s2881_s25 + $0x1200] sm:$0xff]  ;;  %v728_v33 = vld [vmem:[%s2881_s25 + $0x1208] sm:$0xff] }
  0xa1   : > { %721 = vst [vmem:[%s2889_s26 + $0x8e8] sm:$0xff] %v720_v29  ;;  %723 = vst [vmem:[%s2889_s26 + $0x8f0] sm:$0xff] %v722_v30  ;;  %v730_v34 = vld [vmem:[%s2881_s25 + $0x1210] sm:$0xff]  ;;  %v732_v35 = vld [vmem:[%s2881_s25 + $0x1218] sm:$0xff] }
  0xa2   : > { %725 = vst [vmem:[%s2889_s26 + $0x8f8] sm:$0xff] %v724_v31  ;;  %727 = vst [vmem:[%s2889_s26 + $0x900] sm:$0xff] %v726_v32  ;;  %v734_v36 = vld [vmem:[%s2881_s25 + $0x1240] sm:$0xff]  ;;  %v736_v37 = vld [vmem:[%s2881_s25 + $0x1248] sm:$0xff] }
  0xa3   : > { %729 = vst [vmem:[%s2889_s26 + $0x908] sm:$0xff] %v728_v33  ;;  %731 = vst [vmem:[%s2889_s26 + $0x910] sm:$0xff] %v730_v34  ;;  %v738_v38 = vld [vmem:[%s2881_s25 + $0x1250] sm:$0xff]  ;;  %v740_v39 = vld [vmem:[%s2881_s25 + $0x1258] sm:$0xff] }
  0xa4   : > { %733 = vst [vmem:[%s2889_s26 + $0x918] sm:$0xff] %v732_v35  ;;  %735 = vst [vmem:[%s2889_s26 + $0x920] sm:$0xff] %v734_v36  ;;  %v742_v40 = vld [vmem:[%s2881_s25 + $0x1280] sm:$0xff]  ;;  %v744_v41 = vld [vmem:[%s2881_s25 + $0x1288] sm:$0xff] }
  0xa5   : > { %737 = vst [vmem:[%s2889_s26 + $0x928] sm:$0xff] %v736_v37  ;;  %739 = vst [vmem:[%s2889_s26 + $0x930] sm:$0xff] %v738_v38  ;;  %v746_v42 = vld [vmem:[%s2881_s25 + $0x1290] sm:$0xff]  ;;  %v748_v43 = vld [vmem:[%s2881_s25 + $0x1298] sm:$0xff] }
  0xa6   : > { %741 = vst [vmem:[%s2889_s26 + $0x938] sm:$0xff] %v740_v39  ;;  %743 = vst [vmem:[%s2889_s26 + $0x940] sm:$0xff] %v742_v40  ;;  %v750_v44 = vld [vmem:[%s2881_s25 + $0x12c0] sm:$0xff]  ;;  %v752_v45 = vld [vmem:[%s2881_s25 + $0x12c8] sm:$0xff] }
  0xa7   : > { %745 = vst [vmem:[%s2889_s26 + $0x948] sm:$0xff] %v744_v41  ;;  %747 = vst [vmem:[%s2889_s26 + $0x950] sm:$0xff] %v746_v42  ;;  %v754_v46 = vld [vmem:[%s2881_s25 + $0x12d0] sm:$0xff]  ;;  %v756_v47 = vld [vmem:[%s2881_s25 + $0x12d8] sm:$0xff] }
  0xa8   : > { %749 = vst [vmem:[%s2889_s26 + $0x958] sm:$0xff] %v748_v43  ;;  %751 = vst [vmem:[%s2889_s26 + $0x960] sm:$0xff] %v750_v44  ;;  %v758_v48 = vld [vmem:[%s2881_s25 + $0x1300] sm:$0xff]  ;;  %v760_v49 = vld [vmem:[%s2881_s25 + $0x1308] sm:$0xff] }
  0xa9   : > { %753 = vst [vmem:[%s2889_s26 + $0x968] sm:$0xff] %v752_v45  ;;  %755 = vst [vmem:[%s2889_s26 + $0x970] sm:$0xff] %v754_v46  ;;  %v762_v50 = vld [vmem:[%s2881_s25 + $0x1310] sm:$0xff]  ;;  %v764_v51 = vld [vmem:[%s2881_s25 + $0x1318] sm:$0xff] }
  0xaa   : > { %757 = vst [vmem:[%s2889_s26 + $0x978] sm:$0xff] %v756_v47  ;;  %759 = vst [vmem:[%s2889_s26 + $0x980] sm:$0xff] %v758_v48  ;;  %v766_v52 = vld [vmem:[%s2881_s25 + $0x1340] sm:$0xff]  ;;  %v768_v53 = vld [vmem:[%s2881_s25 + $0x1348] sm:$0xff] }
  0xab   : > { %761 = vst [vmem:[%s2889_s26 + $0x988] sm:$0xff] %v760_v49  ;;  %763 = vst [vmem:[%s2889_s26 + $0x990] sm:$0xff] %v762_v50  ;;  %v770_v54 = vld [vmem:[%s2881_s25 + $0x1350] sm:$0xff]  ;;  %v772_v55 = vld [vmem:[%s2881_s25 + $0x1358] sm:$0xff] }
  0xac   : > { %765 = vst [vmem:[%s2889_s26 + $0x998] sm:$0xff] %v764_v51  ;;  %767 = vst [vmem:[%s2889_s26 + $0x9a0] sm:$0xff] %v766_v52  ;;  %v774_v56 = vld [vmem:[%s2881_s25 + $0x1380] sm:$0xff]  ;;  %v776_v57 = vld [vmem:[%s2881_s25 + $0x1388] sm:$0xff] }
  0xad   : > { %769 = vst [vmem:[%s2889_s26 + $0x9a8] sm:$0xff] %v768_v53  ;;  %771 = vst [vmem:[%s2889_s26 + $0x9b0] sm:$0xff] %v770_v54  ;;  %v778_v58 = vld [vmem:[%s2881_s25 + $0x1390] sm:$0xff]  ;;  %v780_v59 = vld [vmem:[%s2881_s25 + $0x1398] sm:$0xff] }
  0xae   : > { %773 = vst [vmem:[%s2889_s26 + $0x9b8] sm:$0xff] %v772_v55  ;;  %775 = vst [vmem:[%s2889_s26 + $0x9c0] sm:$0xff] %v774_v56  ;;  %v782_v60 = vld [vmem:[%s2881_s25 + $0x13c0] sm:$0xff]  ;;  %v784_v61 = vld [vmem:[%s2881_s25 + $0x13c8] sm:$0xff] }
  0xaf   : > { %777 = vst [vmem:[%s2889_s26 + $0x9c8] sm:$0xff] %v776_v57  ;;  %779 = vst [vmem:[%s2889_s26 + $0x9d0] sm:$0xff] %v778_v58  ;;  %v786_v62 = vld [vmem:[%s2881_s25 + $0x13d0] sm:$0xff]  ;;  %v788_v63 = vld [vmem:[%s2881_s25 + $0x13d8] sm:$0xff] }
  0xb0   : > { %781 = vst [vmem:[%s2889_s26 + $0x9d8] sm:$0xff] %v780_v59  ;;  %783 = vst [vmem:[%s2889_s26 + $0x9e0] sm:$0xff] %v782_v60  ;;  %v790_v0 = vld [vmem:[%s2881_s25 + $0x1400] sm:$0xff]  ;;  %v792_v1 = vld [vmem:[%s2881_s25 + $0x1408] sm:$0xff] }
  0xb1   : > { %785 = vst [vmem:[%s2889_s26 + $0x9e8] sm:$0xff] %v784_v61  ;;  %787 = vst [vmem:[%s2889_s26 + $0x9f0] sm:$0xff] %v786_v62  ;;  %v794_v2 = vld [vmem:[%s2881_s25 + $0x1410] sm:$0xff]  ;;  %v796_v3 = vld [vmem:[%s2881_s25 + $0x1418] sm:$0xff] }
  0xb2   : > { %789 = vst [vmem:[%s2889_s26 + $0x9f8] sm:$0xff] %v788_v63  ;;  %791 = vst [vmem:[%s2889_s26 + $0xa00] sm:$0xff] %v790_v0  ;;  %v798_v4 = vld [vmem:[%s2881_s25 + $0x1440] sm:$0xff]  ;;  %v800_v5 = vld [vmem:[%s2881_s25 + $0x1448] sm:$0xff] }
  0xb3   : > { %793 = vst [vmem:[%s2889_s26 + $0xa08] sm:$0xff] %v792_v1  ;;  %795 = vst [vmem:[%s2889_s26 + $0xa10] sm:$0xff] %v794_v2  ;;  %v802_v6 = vld [vmem:[%s2881_s25 + $0x1450] sm:$0xff]  ;;  %v804_v7 = vld [vmem:[%s2881_s25 + $0x1458] sm:$0xff] }
  0xb4   : > { %797 = vst [vmem:[%s2889_s26 + $0xa18] sm:$0xff] %v796_v3  ;;  %799 = vst [vmem:[%s2889_s26 + $0xa20] sm:$0xff] %v798_v4  ;;  %v806_v8 = vld [vmem:[%s2881_s25 + $0x1480] sm:$0xff]  ;;  %v808_v9 = vld [vmem:[%s2881_s25 + $0x1488] sm:$0xff] }
  0xb5   : > { %801 = vst [vmem:[%s2889_s26 + $0xa28] sm:$0xff] %v800_v5  ;;  %803 = vst [vmem:[%s2889_s26 + $0xa30] sm:$0xff] %v802_v6  ;;  %v810_v10 = vld [vmem:[%s2881_s25 + $0x1490] sm:$0xff]  ;;  %v812_v11 = vld [vmem:[%s2881_s25 + $0x1498] sm:$0xff] }
  0xb6   : > { %805 = vst [vmem:[%s2889_s26 + $0xa38] sm:$0xff] %v804_v7  ;;  %807 = vst [vmem:[%s2889_s26 + $0xa40] sm:$0xff] %v806_v8  ;;  %v814_v12 = vld [vmem:[%s2881_s25 + $0x14c0] sm:$0xff]  ;;  %v816_v13 = vld [vmem:[%s2881_s25 + $0x14c8] sm:$0xff] }
  0xb7   : > { %809 = vst [vmem:[%s2889_s26 + $0xa48] sm:$0xff] %v808_v9  ;;  %811 = vst [vmem:[%s2889_s26 + $0xa50] sm:$0xff] %v810_v10  ;;  %v818_v14 = vld [vmem:[%s2881_s25 + $0x14d0] sm:$0xff]  ;;  %v820_v15 = vld [vmem:[%s2881_s25 + $0x14d8] sm:$0xff] }
  0xb8   : > { %813 = vst [vmem:[%s2889_s26 + $0xa58] sm:$0xff] %v812_v11  ;;  %815 = vst [vmem:[%s2889_s26 + $0xa60] sm:$0xff] %v814_v12  ;;  %v822_v16 = vld [vmem:[%s2881_s25 + $0x1500] sm:$0xff]  ;;  %v824_v17 = vld [vmem:[%s2881_s25 + $0x1508] sm:$0xff] }
  0xb9   : > { %817 = vst [vmem:[%s2889_s26 + $0xa68] sm:$0xff] %v816_v13  ;;  %819 = vst [vmem:[%s2889_s26 + $0xa70] sm:$0xff] %v818_v14  ;;  %v826_v18 = vld [vmem:[%s2881_s25 + $0x1510] sm:$0xff]  ;;  %v828_v19 = vld [vmem:[%s2881_s25 + $0x1518] sm:$0xff] }
  0xba   : > { %821 = vst [vmem:[%s2889_s26 + $0xa78] sm:$0xff] %v820_v15  ;;  %823 = vst [vmem:[%s2889_s26 + $0xa80] sm:$0xff] %v822_v16  ;;  %v830_v20 = vld [vmem:[%s2881_s25 + $0x1540] sm:$0xff]  ;;  %v832_v21 = vld [vmem:[%s2881_s25 + $0x1548] sm:$0xff] }
  0xbb   : > { %825 = vst [vmem:[%s2889_s26 + $0xa88] sm:$0xff] %v824_v17  ;;  %827 = vst [vmem:[%s2889_s26 + $0xa90] sm:$0xff] %v826_v18  ;;  %v834_v22 = vld [vmem:[%s2881_s25 + $0x1550] sm:$0xff]  ;;  %v836_v23 = vld [vmem:[%s2881_s25 + $0x1558] sm:$0xff] }
  0xbc   : > { %829 = vst [vmem:[%s2889_s26 + $0xa98] sm:$0xff] %v828_v19  ;;  %831 = vst [vmem:[%s2889_s26 + $0xaa0] sm:$0xff] %v830_v20  ;;  %v838_v24 = vld [vmem:[%s2881_s25 + $0x1580] sm:$0xff]  ;;  %v840_v25 = vld [vmem:[%s2881_s25 + $0x1588] sm:$0xff] }
  0xbd   : > { %833 = vst [vmem:[%s2889_s26 + $0xaa8] sm:$0xff] %v832_v21  ;;  %835 = vst [vmem:[%s2889_s26 + $0xab0] sm:$0xff] %v834_v22  ;;  %v842_v26 = vld [vmem:[%s2881_s25 + $0x1590] sm:$0xff]  ;;  %v844_v27 = vld [vmem:[%s2881_s25 + $0x1598] sm:$0xff] }
  0xbe   : > { %837 = vst [vmem:[%s2889_s26 + $0xab8] sm:$0xff] %v836_v23  ;;  %839 = vst [vmem:[%s2889_s26 + $0xac0] sm:$0xff] %v838_v24  ;;  %v846_v28 = vld [vmem:[%s2881_s25 + $0x15c0] sm:$0xff]  ;;  %v848_v29 = vld [vmem:[%s2881_s25 + $0x15c8] sm:$0xff] }
  0xbf   : > { %841 = vst [vmem:[%s2889_s26 + $0xac8] sm:$0xff] %v840_v25  ;;  %843 = vst [vmem:[%s2889_s26 + $0xad0] sm:$0xff] %v842_v26  ;;  %v850_v30 = vld [vmem:[%s2881_s25 + $0x15d0] sm:$0xff]  ;;  %v852_v31 = vld [vmem:[%s2881_s25 + $0x15d8] sm:$0xff] }
  0xc0   : > { %845 = vst [vmem:[%s2889_s26 + $0xad8] sm:$0xff] %v844_v27  ;;  %847 = vst [vmem:[%s2889_s26 + $0xae0] sm:$0xff] %v846_v28  ;;  %v854_v32 = vld [vmem:[%s2881_s25 + $0x1600] sm:$0xff]  ;;  %v856_v33 = vld [vmem:[%s2881_s25 + $0x1608] sm:$0xff] }
  0xc1   : > { %849 = vst [vmem:[%s2889_s26 + $0xae8] sm:$0xff] %v848_v29  ;;  %851 = vst [vmem:[%s2889_s26 + $0xaf0] sm:$0xff] %v850_v30  ;;  %v858_v34 = vld [vmem:[%s2881_s25 + $0x1610] sm:$0xff]  ;;  %v860_v35 = vld [vmem:[%s2881_s25 + $0x1618] sm:$0xff] }
  0xc2   : > { %853 = vst [vmem:[%s2889_s26 + $0xaf8] sm:$0xff] %v852_v31  ;;  %855 = vst [vmem:[%s2889_s26 + $0xb00] sm:$0xff] %v854_v32  ;;  %v862_v36 = vld [vmem:[%s2881_s25 + $0x1640] sm:$0xff]  ;;  %v864_v37 = vld [vmem:[%s2881_s25 + $0x1648] sm:$0xff] }
  0xc3   : > { %857 = vst [vmem:[%s2889_s26 + $0xb08] sm:$0xff] %v856_v33  ;;  %859 = vst [vmem:[%s2889_s26 + $0xb10] sm:$0xff] %v858_v34  ;;  %v866_v38 = vld [vmem:[%s2881_s25 + $0x1650] sm:$0xff]  ;;  %v868_v39 = vld [vmem:[%s2881_s25 + $0x1658] sm:$0xff] }
  0xc4   : > { %861 = vst [vmem:[%s2889_s26 + $0xb18] sm:$0xff] %v860_v35  ;;  %863 = vst [vmem:[%s2889_s26 + $0xb20] sm:$0xff] %v862_v36  ;;  %v870_v40 = vld [vmem:[%s2881_s25 + $0x1680] sm:$0xff]  ;;  %v872_v41 = vld [vmem:[%s2881_s25 + $0x1688] sm:$0xff] }
  0xc5   : > { %865 = vst [vmem:[%s2889_s26 + $0xb28] sm:$0xff] %v864_v37  ;;  %867 = vst [vmem:[%s2889_s26 + $0xb30] sm:$0xff] %v866_v38  ;;  %v874_v42 = vld [vmem:[%s2881_s25 + $0x1690] sm:$0xff]  ;;  %v876_v43 = vld [vmem:[%s2881_s25 + $0x1698] sm:$0xff] }
  0xc6   : > { %869 = vst [vmem:[%s2889_s26 + $0xb38] sm:$0xff] %v868_v39  ;;  %871 = vst [vmem:[%s2889_s26 + $0xb40] sm:$0xff] %v870_v40  ;;  %v878_v44 = vld [vmem:[%s2881_s25 + $0x16c0] sm:$0xff]  ;;  %v880_v45 = vld [vmem:[%s2881_s25 + $0x16c8] sm:$0xff] }
  0xc7   : > { %873 = vst [vmem:[%s2889_s26 + $0xb48] sm:$0xff] %v872_v41  ;;  %875 = vst [vmem:[%s2889_s26 + $0xb50] sm:$0xff] %v874_v42  ;;  %v882_v46 = vld [vmem:[%s2881_s25 + $0x16d0] sm:$0xff]  ;;  %v884_v47 = vld [vmem:[%s2881_s25 + $0x16d8] sm:$0xff] }
  0xc8   : > { %877 = vst [vmem:[%s2889_s26 + $0xb58] sm:$0xff] %v876_v43  ;;  %879 = vst [vmem:[%s2889_s26 + $0xb60] sm:$0xff] %v878_v44  ;;  %v886_v48 = vld [vmem:[%s2881_s25 + $0x1700] sm:$0xff]  ;;  %v888_v49 = vld [vmem:[%s2881_s25 + $0x1708] sm:$0xff] }
  0xc9   : > { %881 = vst [vmem:[%s2889_s26 + $0xb68] sm:$0xff] %v880_v45  ;;  %883 = vst [vmem:[%s2889_s26 + $0xb70] sm:$0xff] %v882_v46  ;;  %v890_v50 = vld [vmem:[%s2881_s25 + $0x1710] sm:$0xff]  ;;  %v892_v51 = vld [vmem:[%s2881_s25 + $0x1718] sm:$0xff] }
  0xca   : > { %885 = vst [vmem:[%s2889_s26 + $0xb78] sm:$0xff] %v884_v47  ;;  %887 = vst [vmem:[%s2889_s26 + $0xb80] sm:$0xff] %v886_v48  ;;  %v894_v52 = vld [vmem:[%s2881_s25 + $0x1740] sm:$0xff]  ;;  %v896_v53 = vld [vmem:[%s2881_s25 + $0x1748] sm:$0xff] }
  0xcb   : > { %889 = vst [vmem:[%s2889_s26 + $0xb88] sm:$0xff] %v888_v49  ;;  %891 = vst [vmem:[%s2889_s26 + $0xb90] sm:$0xff] %v890_v50  ;;  %v898_v54 = vld [vmem:[%s2881_s25 + $0x1750] sm:$0xff]  ;;  %v900_v55 = vld [vmem:[%s2881_s25 + $0x1758] sm:$0xff] }
  0xcc   : > { %893 = vst [vmem:[%s2889_s26 + $0xb98] sm:$0xff] %v892_v51  ;;  %895 = vst [vmem:[%s2889_s26 + $0xba0] sm:$0xff] %v894_v52  ;;  %v902_v56 = vld [vmem:[%s2881_s25 + $0x1780] sm:$0xff]  ;;  %v904_v57 = vld [vmem:[%s2881_s25 + $0x1788] sm:$0xff] }
  0xcd   : > { %897 = vst [vmem:[%s2889_s26 + $0xba8] sm:$0xff] %v896_v53  ;;  %899 = vst [vmem:[%s2889_s26 + $0xbb0] sm:$0xff] %v898_v54  ;;  %v906_v58 = vld [vmem:[%s2881_s25 + $0x1790] sm:$0xff]  ;;  %v908_v59 = vld [vmem:[%s2881_s25 + $0x1798] sm:$0xff] }
  0xce   : > { %901 = vst [vmem:[%s2889_s26 + $0xbb8] sm:$0xff] %v900_v55  ;;  %903 = vst [vmem:[%s2889_s26 + $0xbc0] sm:$0xff] %v902_v56  ;;  %v910_v60 = vld [vmem:[%s2881_s25 + $0x17c0] sm:$0xff]  ;;  %v912_v61 = vld [vmem:[%s2881_s25 + $0x17c8] sm:$0xff] }
  0xcf   : > { %905 = vst [vmem:[%s2889_s26 + $0xbc8] sm:$0xff] %v904_v57  ;;  %907 = vst [vmem:[%s2889_s26 + $0xbd0] sm:$0xff] %v906_v58  ;;  %v914_v62 = vld [vmem:[%s2881_s25 + $0x17d0] sm:$0xff]  ;;  %v916_v63 = vld [vmem:[%s2881_s25 + $0x17d8] sm:$0xff] }
  0xd0   : > { %909 = vst [vmem:[%s2889_s26 + $0xbd8] sm:$0xff] %v908_v59  ;;  %911 = vst [vmem:[%s2889_s26 + $0xbe0] sm:$0xff] %v910_v60  ;;  %v918_v0 = vld [vmem:[%s2881_s25 + $0x1800] sm:$0xff]  ;;  %v920_v1 = vld [vmem:[%s2881_s25 + $0x1808] sm:$0xff] }
  0xd1   : > { %913 = vst [vmem:[%s2889_s26 + $0xbe8] sm:$0xff] %v912_v61  ;;  %915 = vst [vmem:[%s2889_s26 + $0xbf0] sm:$0xff] %v914_v62  ;;  %v922_v2 = vld [vmem:[%s2881_s25 + $0x1810] sm:$0xff]  ;;  %v924_v3 = vld [vmem:[%s2881_s25 + $0x1818] sm:$0xff] }
  0xd2   : > { %917 = vst [vmem:[%s2889_s26 + $0xbf8] sm:$0xff] %v916_v63  ;;  %919 = vst [vmem:[%s2889_s26 + $0xc00] sm:$0xff] %v918_v0  ;;  %v926_v4 = vld [vmem:[%s2881_s25 + $0x1840] sm:$0xff]  ;;  %v928_v5 = vld [vmem:[%s2881_s25 + $0x1848] sm:$0xff] }
  0xd3   : > { %921 = vst [vmem:[%s2889_s26 + $0xc08] sm:$0xff] %v920_v1  ;;  %923 = vst [vmem:[%s2889_s26 + $0xc10] sm:$0xff] %v922_v2  ;;  %v930_v6 = vld [vmem:[%s2881_s25 + $0x1850] sm:$0xff]  ;;  %v932_v7 = vld [vmem:[%s2881_s25 + $0x1858] sm:$0xff] }
  0xd4   : > { %925 = vst [vmem:[%s2889_s26 + $0xc18] sm:$0xff] %v924_v3  ;;  %927 = vst [vmem:[%s2889_s26 + $0xc20] sm:$0xff] %v926_v4  ;;  %v934_v8 = vld [vmem:[%s2881_s25 + $0x1880] sm:$0xff]  ;;  %v936_v9 = vld [vmem:[%s2881_s25 + $0x1888] sm:$0xff] }
  0xd5   : > { %929 = vst [vmem:[%s2889_s26 + $0xc28] sm:$0xff] %v928_v5  ;;  %931 = vst [vmem:[%s2889_s26 + $0xc30] sm:$0xff] %v930_v6  ;;  %v938_v10 = vld [vmem:[%s2881_s25 + $0x1890] sm:$0xff]  ;;  %v940_v11 = vld [vmem:[%s2881_s25 + $0x1898] sm:$0xff] }
  0xd6   : > { %933 = vst [vmem:[%s2889_s26 + $0xc38] sm:$0xff] %v932_v7  ;;  %935 = vst [vmem:[%s2889_s26 + $0xc40] sm:$0xff] %v934_v8  ;;  %v942_v12 = vld [vmem:[%s2881_s25 + $0x18c0] sm:$0xff]  ;;  %v944_v13 = vld [vmem:[%s2881_s25 + $0x18c8] sm:$0xff] }
  0xd7   : > { %937 = vst [vmem:[%s2889_s26 + $0xc48] sm:$0xff] %v936_v9  ;;  %939 = vst [vmem:[%s2889_s26 + $0xc50] sm:$0xff] %v938_v10  ;;  %v946_v14 = vld [vmem:[%s2881_s25 + $0x18d0] sm:$0xff]  ;;  %v948_v15 = vld [vmem:[%s2881_s25 + $0x18d8] sm:$0xff] }
  0xd8   : > { %941 = vst [vmem:[%s2889_s26 + $0xc58] sm:$0xff] %v940_v11  ;;  %943 = vst [vmem:[%s2889_s26 + $0xc60] sm:$0xff] %v942_v12 }
  0xd9   : > { %945 = vst [vmem:[%s2889_s26 + $0xc68] sm:$0xff] %v944_v13  ;;  %947 = vst [vmem:[%s2889_s26 + $0xc70] sm:$0xff] %v946_v14 }
  0xda   : > { %949 = vst [vmem:[%s2889_s26 + $0xc78] sm:$0xff] %v948_v15 }
  0xdb PF: > { %p2074_p5 = scmp.ge.s32.totalorder %s2824_s14, 1  ;;  %p954_p6 = scmp.lt.s32.totalorder %s2824_s14, 3 }
  0xdd   : > { %p955_p7 = pnand %p2074_p5, %p954_p6 }
  0xde   : > { %s961_s27 = sand.u32 (!%p955_p7), 1, %s2816_s12   ;;  %v3691_v16 = vld [vmem:[%s4145_s1 + $0x8] sm:$0xff] (!%p955_p7)  ;;  %vm1099_vm0 = vcmask (!%p955_p7), 588800   ;;  %v2826_v4 = vmov (!%p955_p7), 0   ;;  %s2075_s17 = sshll.u32 (!%p955_p7), %s2068_s15, 2 }
  0xdf   : > { %958 = sbr.rel (%p955_p7) target bundleno = 655 (0x28f), region = 51  ;;  %2077 = vmatprep.mubr.msk.f32.mxu0 (!%p955_p7), %vm1099_vm0, %v3691_v16  ;;  %2078 = vmatprep.mubr.msk.f32.mxu1 (!%p955_p7), %vm1099_vm0, %v3691_v16  ;;  %p986_p8 = scmp.lt.s32.totalorder (!%p955_p7), %s2075_s17, 7 }
  0xe0   : > { %s2773_s30 = smul.u32 (!%p955_p7), 3200, %s961_s27  ;;  %2799 = vset.pattern.permute.xlu0 (!%p955_p7), %v2826_v4 }
  0xe2   : > { %s3697_s4 = scalar_lea.vmem (!%p955_p7), [#allocation2], %s2773_s30 }
  0xe3   : > { %v994_v17 = vld [vmem:[%s3697_s4 + $0x8] sm:$0xff] (!%p955_p7)  ;;  %v996_v19 = vld [vmem:[%s3697_s4 + $0x18] sm:$0xff] (!%p955_p7)  ;;  %v993_v22 = vld [vmem:[%s3697_s4] sm:$0xff] (!%p955_p7) }
  0xe4   : > { %v998_v18 = vld [vmem:[%s3697_s4 + $0x28] sm:$0xff] (!%p955_p7)  ;;  %v1000_v21 = vld [vmem:[%s3697_s4 + $0x38] sm:$0xff] (!%p955_p7)  ;;  %v997_v23 = vld [vmem:[%s3697_s4 + $0x20] sm:$0xff] (!%p955_p7) }
  0xe5   : > { %v2388_v20 = vpack.c.bf16 (!%p955_p7), %v998_v18, %v994_v17  ;;  %v2436_v24 = vpack.c.bf16 (!%p955_p7), %v1000_v21, %v996_v19  ;;  %v2390_v25 = vpack.c.bf16 (!%p955_p7), %v997_v23, %v993_v22  ;;  %v995_v26 = vld [vmem:[%s3697_s4 + $0x10] sm:$0xff] (!%p955_p7)  ;;  %v1002_v28 = vld [vmem:[%s3697_s4 + $0x48] sm:$0xff] (!%p955_p7)  ;;  %v1004_v31 = vld [vmem:[%s3697_s4 + $0x58] sm:$0xff] (!%p955_p7) }
  0xe6   : > { %v999_v27 = vld [vmem:[%s3697_s4 + $0x30] sm:$0xff]  ;;  %v1006_v30 = vld [vmem:[%s3697_s4 + $0x68] sm:$0xff]  ;;  %v1008_v32 = vld [vmem:[%s3697_s4 + $0x78] sm:$0xff]  ;;  %s4152_s17 = smov (!%p986_p8, %s2075_s17), 7 }
  0xe7   : > { %2389 = vmatprep.subr.bf16.mxu0 %v2388_v20  ;;  %v2438_v29 = vpack.c.bf16 %v999_v27, %v995_v26  ;;  %2437 = vmatprep.subr.bf16.mxu1 %v2436_v24  ;;  %v2392_v33 = vpack.c.bf16 %v1006_v30, %v1002_v28  ;;  %v2440_v34 = vpack.c.bf16 %v1008_v32, %v1004_v31  ;;  %v1001_v35 = vld [vmem:[%s3697_s4 + $0x40] sm:$0xff]  ;;  %v1003_v37 = vld [vmem:[%s3697_s4 + $0x50] sm:$0xff]  ;;  %v1010_v40 = vld [vmem:[%s3697_s4 + $0x88] sm:$0xff]  ;;  %s2076_s18 = sshll.u32 %s4152_s17, 3 }
  0xe8   : > { %2391 = vmatpush1.bf16.msra.mxu0 %v2390_v25  ;;  %v1005_v36 = vld [vmem:[%s3697_s4 + $0x60] sm:$0xff]  ;;  %v1007_v39 = vld [vmem:[%s3697_s4 + $0x70] sm:$0xff]  ;;  %v1014_v41 = vld [vmem:[%s3697_s4 + $0xa8] sm:$0xff]  ;;  %s989_s22 = scalar_lea.vmem %s4147_s3, %s2076_s18 }
  0xe9   : > { %2439 = vmatpush1.bf16.msra.mxu1 %v2438_v29  ;;  %v2394_v38 = vpack.c.bf16 %v1005_v36, %v1001_v35  ;;  %2393 = vmatprep.subr.bf16.mxu0 %v2392_v33  ;;  %v2442_v42 = vpack.c.bf16 %v1007_v39, %v1003_v37  ;;  %v2396_v43 = vpack.c.bf16 %v1014_v41, %v1010_v40  ;;  %v1012_v44 = vld [vmem:[%s3697_s4 + $0x98] sm:$0xff]  ;;  %v1009_v46 = vld [vmem:[%s3697_s4 + $0x80] sm:$0xff]  ;;  %v1011_v49 = vld [vmem:[%s3697_s4 + $0x90] sm:$0xff] }
  0xea   : > { %2441 = vmatprep.subr.bf16.mxu1 %v2440_v34  ;;  %v1016_v45 = vld [vmem:[%s3697_s4 + $0xb8] sm:$0xff]  ;;  %v1013_v48 = vld [vmem:[%s3697_s4 + $0xa0] sm:$0xff]  ;;  %v1015_v50 = vld [vmem:[%s3697_s4 + $0xb0] sm:$0xff] }
  0xeb   : > { %v2444_v47 = vpack.c.bf16 %v1016_v45, %v1012_v44  ;;  %v2398_v51 = vpack.c.bf16 %v1013_v48, %v1009_v46  ;;  %v1018_v52 = vld [vmem:[%s3697_s4 + $0xc8] sm:$0xff]  ;;  %v1020_v54 = vld [vmem:[%s3697_s4 + $0xd8] sm:$0xff]  ;;  %v2446_v55 = vpack.c.bf16 %v1015_v50, %v1011_v49  ;;  %v1017_v58 = vld [vmem:[%s3697_s4 + $0xc0] sm:$0xff] }
  0xec   : > { %2395 = vmatpush1.bf16.msra.mxu0 %v2394_v38  ;;  %v1022_v53 = vld [vmem:[%s3697_s4 + $0xe8] sm:$0xff]  ;;  %v1024_v57 = vld [vmem:[%s3697_s4 + $0xf8] sm:$0xff]  ;;  %v1021_v59 = vld [vmem:[%s3697_s4 + $0xe0] sm:$0xff] }
  0xed   : > { %2443 = vmatpush1.bf16.msra.mxu1 %v2442_v42  ;;  %2397 = vmatprep.subr.bf16.mxu0 %v2396_v43  ;;  %v2400_v56 = vpack.c.bf16 %v1022_v53, %v1018_v52  ;;  %v2448_v60 = vpack.c.bf16 %v1024_v57, %v1020_v54  ;;  %v1019_v61 = vld [vmem:[%s3697_s4 + $0xd0] sm:$0xff]  ;;  %v1026_v63 = vld [vmem:[%s3697_s4 + $0x108] sm:$0xff]  ;;  %v1028_v1 = vld [vmem:[%s3697_s4 + $0x118] sm:$0xff]  ;;  %v2402_v3 = vpack.c.bf16 %v1021_v59, %v1017_v58 }
  0xee   : > { %2445 = vmatprep.subr.bf16.mxu1 %v2444_v47  ;;  %v1023_v62 = vld [vmem:[%s3697_s4 + $0xf0] sm:$0xff]  ;;  %v1030_v0 = vld [vmem:[%s3697_s4 + $0x128] sm:$0xff]  ;;  %v1032_v2 = vld [vmem:[%s3697_s4 + $0x138] sm:$0xff] }
  0xef   : > { %v2450_v5 = vpack.c.bf16 %v1023_v62, %v1019_v61  ;;  %v2404_v6 = vpack.c.bf16 %v1030_v0, %v1026_v63  ;;  %v1025_v7 = vld [vmem:[%s3697_s4 + $0x100] sm:$0xff]  ;;  %v1027_v9 = vld [vmem:[%s3697_s4 + $0x110] sm:$0xff]  ;;  %v2452_v10 = vpack.c.bf16 %v1032_v2, %v1028_v1  ;;  %v1034_v12 = vld [vmem:[%s3697_s4 + $0x148] sm:$0xff] }
  0xf0   : > { %2399 = vmatpush1.bf16.msra.mxu0 %v2398_v51  ;;  %v1029_v8 = vld [vmem:[%s3697_s4 + $0x120] sm:$0xff]  ;;  %v1031_v11 = vld [vmem:[%s3697_s4 + $0x130] sm:$0xff]  ;;  %v1038_v13 = vld [vmem:[%s3697_s4 + $0x168] sm:$0xff] }
  0xf1   : > { %2447 = vmatpush1.bf16.msra.mxu1 %v2446_v55  ;;  %2401 = vmatprep.subr.bf16.mxu0 %v2400_v56  ;;  %v1036_v14 = vld [vmem:[%s3697_s4 + $0x158] sm:$0xff]  ;;  %v2406_v17 = vpack.c.bf16 %v1029_v8, %v1025_v7  ;;  %v2454_v18 = vpack.c.bf16 %v1031_v11, %v1027_v9  ;;  %v2408_v19 = vpack.c.bf16 %v1038_v13, %v1034_v12  ;;  %v1033_v20 = vld [vmem:[%s3697_s4 + $0x140] sm:$0xff]  ;;  %v1035_v22 = vld [vmem:[%s3697_s4 + $0x150] sm:$0xff] }
  0xf2   : > { %2449 = vmatprep.subr.bf16.mxu1 %v2448_v60  ;;  %v1040_v15 = vld [vmem:[%s3697_s4 + $0x178] sm:$0xff]  ;;  %v1037_v21 = vld [vmem:[%s3697_s4 + $0x160] sm:$0xff]  ;;  %v1039_v24 = vld [vmem:[%s3697_s4 + $0x170] sm:$0xff] }
  0xf3   : > { %v2456_v23 = vpack.c.bf16 %v1040_v15, %v1036_v14  ;;  %v1042_v25 = vld [vmem:[%s3697_s4 + $0x188] sm:$0xff]  ;;  %v1044_v27 = vld [vmem:[%s3697_s4 + $0x198] sm:$0xff]  ;;  %v2410_v29 = vpack.c.bf16 %v1037_v21, %v1033_v20  ;;  %v2458_v30 = vpack.c.bf16 %v1039_v24, %v1035_v22  ;;  %v1041_v32 = vld [vmem:[%s3697_s4 + $0x180] sm:$0xff] }
  0xf4   : > { %2403 = vmatpush1.bf16.msra.mxu0 %v2402_v3  ;;  %v1046_v26 = vld [vmem:[%s3697_s4 + $0x1a8] sm:$0xff]  ;;  %v1048_v28 = vld [vmem:[%s3697_s4 + $0x1b8] sm:$0xff]  ;;  %v1045_v33 = vld [vmem:[%s3697_s4 + $0x1a0] sm:$0xff] }
  0xf5   : > { %2451 = vmatpush1.bf16.msra.mxu1 %v2450_v5  ;;  %2405 = vmatprep.subr.bf16.mxu0 %v2404_v6  ;;  %v2412_v31 = vpack.c.bf16 %v1046_v26, %v1042_v25  ;;  %v1043_v34 = vld [vmem:[%s3697_s4 + $0x190] sm:$0xff]  ;;  %v2460_v35 = vpack.c.bf16 %v1048_v28, %v1044_v27  ;;  %v1050_v37 = vld [vmem:[%s3697_s4 + $0x1c8] sm:$0xff]  ;;  %v1052_v39 = vld [vmem:[%s3697_s4 + $0x1d8] sm:$0xff]  ;;  %v2414_v41 = vpack.c.bf16 %v1045_v33, %v1041_v32 }
  0xf6   : > { %2453 = vmatprep.subr.bf16.mxu1 %v2452_v10  ;;  %v1047_v36 = vld [vmem:[%s3697_s4 + $0x1b0] sm:$0xff]  ;;  %v1054_v38 = vld [vmem:[%s3697_s4 + $0x1e8] sm:$0xff]  ;;  %v1056_v40 = vld [vmem:[%s3697_s4 + $0x1f8] sm:$0xff] }
  0xf7   : > { %v2462_v42 = vpack.c.bf16 %v1047_v36, %v1043_v34  ;;  %v2416_v43 = vpack.c.bf16 %v1054_v38, %v1050_v37  ;;  %v1049_v44 = vld [vmem:[%s3697_s4 + $0x1c0] sm:$0xff]  ;;  %v1051_v46 = vld [vmem:[%s3697_s4 + $0x1d0] sm:$0xff]  ;;  %v2464_v47 = vpack.c.bf16 %v1056_v40, %v1052_v39  ;;  %v1058_v49 = vld [vmem:[%s3697_s4 + $0x208] sm:$0xff] }
  0xf8   : > { %2407 = vmatpush1.bf16.msra.mxu0 %v2406_v17  ;;  %v1053_v45 = vld [vmem:[%s3697_s4 + $0x1e0] sm:$0xff]  ;;  %v1055_v48 = vld [vmem:[%s3697_s4 + $0x1f0] sm:$0xff]  ;;  %v1062_v50 = vld [vmem:[%s3697_s4 + $0x228] sm:$0xff] }
  0xf9   : > { %2455 = vmatpush1.bf16.msra.mxu1 %v2454_v18  ;;  %2409 = vmatprep.subr.bf16.mxu0 %v2408_v19  ;;  %v1060_v51 = vld [vmem:[%s3697_s4 + $0x218] sm:$0xff]  ;;  %v2418_v53 = vpack.c.bf16 %v1053_v45, %v1049_v44  ;;  %v2466_v54 = vpack.c.bf16 %v1055_v48, %v1051_v46  ;;  %v2420_v55 = vpack.c.bf16 %v1062_v50, %v1058_v49  ;;  %v1057_v56 = vld [vmem:[%s3697_s4 + $0x200] sm:$0xff]  ;;  %v1059_v58 = vld [vmem:[%s3697_s4 + $0x210] sm:$0xff] }
  0xfa   : > { %2457 = vmatprep.subr.bf16.mxu1 %v2456_v23  ;;  %v1064_v52 = vld [vmem:[%s3697_s4 + $0x238] sm:$0xff]  ;;  %v1061_v57 = vld [vmem:[%s3697_s4 + $0x220] sm:$0xff]  ;;  %v1063_v60 = vld [vmem:[%s3697_s4 + $0x230] sm:$0xff] }
  0xfb   : > { %v2468_v59 = vpack.c.bf16 %v1064_v52, %v1060_v51  ;;  %v1066_v61 = vld [vmem:[%s3697_s4 + $0x248] sm:$0xff]  ;;  %v1068_v63 = vld [vmem:[%s3697_s4 + $0x258] sm:$0xff]  ;;  %v2422_v1 = vpack.c.bf16 %v1061_v57, %v1057_v56  ;;  %v2470_v2 = vpack.c.bf16 %v1063_v60, %v1059_v58  ;;  %v1065_v4 = vld [vmem:[%s3697_s4 + $0x240] sm:$0xff] }
  0xfc   : > { %2411 = vmatpush1.bf16.msra.mxu0 %v2410_v29  ;;  %v1070_v62 = vld [vmem:[%s3697_s4 + $0x268] sm:$0xff]  ;;  %v1072_v0 = vld [vmem:[%s3697_s4 + $0x278] sm:$0xff]  ;;  %v1069_v5 = vld [vmem:[%s3697_s4 + $0x260] sm:$0xff] }
  0xfd   : > { %2459 = vmatpush1.bf16.msra.mxu1 %v2458_v30  ;;  %2413 = vmatprep.subr.bf16.mxu0 %v2412_v31  ;;  %v2424_v3 = vpack.c.bf16 %v1070_v62, %v1066_v61  ;;  %v1067_v6 = vld [vmem:[%s3697_s4 + $0x250] sm:$0xff]  ;;  %v2472_v7 = vpack.c.bf16 %v1072_v0, %v1068_v63  ;;  %v1074_v9 = vld [vmem:[%s3697_s4 + $0x288] sm:$0xff]  ;;  %v1076_v11 = vld [vmem:[%s3697_s4 + $0x298] sm:$0xff]  ;;  %v2426_v13 = vpack.c.bf16 %v1069_v5, %v1065_v4 }
  0xfe   : > { %2461 = vmatprep.subr.bf16.mxu1 %v2460_v35  ;;  %v1071_v8 = vld [vmem:[%s3697_s4 + $0x270] sm:$0xff]  ;;  %v1078_v10 = vld [vmem:[%s3697_s4 + $0x2a8] sm:$0xff]  ;;  %v1080_v12 = vld [vmem:[%s3697_s4 + $0x2b8] sm:$0xff] }
  0xff   : > { %v2474_v14 = vpack.c.bf16 %v1071_v8, %v1067_v6  ;;  %v2428_v15 = vpack.c.bf16 %v1078_v10, %v1074_v9  ;;  %v1073_v17 = vld [vmem:[%s3697_s4 + $0x280] sm:$0xff]  ;;  %v1075_v19 = vld [vmem:[%s3697_s4 + $0x290] sm:$0xff]  ;;  %v2476_v20 = vpack.c.bf16 %v1080_v12, %v1076_v11  ;;  %v1082_v22 = vld [vmem:[%s3697_s4 + $0x2c8] sm:$0xff] }
 0x100   : > { %2415 = vmatpush1.bf16.msra.mxu0 %v2414_v41  ;;  %v1077_v18 = vld [vmem:[%s3697_s4 + $0x2a0] sm:$0xff]  ;;  %v1079_v21 = vld [vmem:[%s3697_s4 + $0x2b0] sm:$0xff]  ;;  %v1086_v23 = vld [vmem:[%s3697_s4 + $0x2e8] sm:$0xff] }
 0x101   : > { %2463 = vmatpush1.bf16.msra.mxu1 %v2462_v42  ;;  %2417 = vmatprep.subr.bf16.mxu0 %v2416_v43  ;;  %v1084_v24 = vld [vmem:[%s3697_s4 + $0x2d8] sm:$0xff]  ;;  %v2430_v26 = vpack.c.bf16 %v1077_v18, %v1073_v17  ;;  %v2478_v27 = vpack.c.bf16 %v1079_v21, %v1075_v19  ;;  %v2432_v28 = vpack.c.bf16 %v1086_v23, %v1082_v22  ;;  %v1081_v29 = vld [vmem:[%s3697_s4 + $0x2c0] sm:$0xff]  ;;  %v1083_v32 = vld [vmem:[%s3697_s4 + $0x2d0] sm:$0xff] }
 0x102   : > { %2465 = vmatprep.subr.bf16.mxu1 %v2464_v47  ;;  %v1088_v25 = vld [vmem:[%s3697_s4 + $0x2f8] sm:$0xff]  ;;  %v1085_v30 = vld [vmem:[%s3697_s4 + $0x2e0] sm:$0xff]  ;;  %v1087_v33 = vld [vmem:[%s3697_s4 + $0x2f0] sm:$0xff] }
 0x103   : > { %v2480_v31 = vpack.c.bf16 %v1088_v25, %v1084_v24  ;;  %v2434_v34 = vpack.c.bf16 %v1085_v30, %v1081_v29  ;;  %v2482_v35 = vpack.c.bf16 %v1087_v33, %v1083_v32  ;;  %v1090_v36 = vld [vmem:[%s3697_s4 + $0x308] sm:$0xff]  ;;  %v1092_v37 = vld [vmem:[%s3697_s4 + $0x318] sm:$0xff]  ;;  %v1089_v39 = vld [vmem:[%s3697_s4 + $0x300] sm:$0xff] }
 0x104   : > { %2419 = vmatpush1.bf16.msra.mxu0 %v2418_v53  ;;  %v2080_v38 = vld [vmem:[%s3697_s4 + $0x328] sm:$0xff]  ;;  %v2082_v41 = vld [vmem:[%s3697_s4 + $0x338] sm:$0xff]  ;;  %v3805_v43 = vld [vmem:[%s4145_s1] sm:$0xff] }
 0x105   : > { %2467 = vmatpush1.bf16.msra.mxu1 %v2466_v54  ;;  %2421 = vmatprep.subr.bf16.mxu0 %v2420_v55  ;;  %v2084_v40 = vld [vmem:[%s3697_s4 + $0x348] sm:$0xff]  ;;  %v2086_v42 = vld [vmem:[%s3697_s4 + $0x358] sm:$0xff]  ;;  %v2079_v44 = vld [vmem:[%s3697_s4 + $0x320] sm:$0xff] }
 0x106   : > { %2469 = vmatprep.subr.bf16.mxu1 %v2468_v59  ;;  %v2083_v45 = vld [vmem:[%s3697_s4 + $0x340] sm:$0xff]  ;;  %v2081_v46 = vld [vmem:[%s3697_s4 + $0x330] sm:$0xff]  ;;  %v2088_v48 = vld [vmem:[%s3697_s4 + $0x368] sm:$0xff]  ;;  %v2484_v51 = vpack.c.bf16 %v2084_v40, %v2080_v38  ;;  %v2532_v52 = vpack.c.bf16 %v2086_v42, %v2082_v41 }
 0x107   : > { %v2085_v47 = vld [vmem:[%s3697_s4 + $0x350] sm:$0xff]  ;;  %v2092_v49 = vld [vmem:[%s3697_s4 + $0x388] sm:$0xff]  ;;  %v2090_v53 = vld [vmem:[%s3697_s4 + $0x378] sm:$0xff]  ;;  %v2486_v55 = vpack.c.bf16 %v2083_v45, %v2079_v44 }
 0x108   : > { %2423 = vmatpush1.bf16.msra.mxu0 %v2422_v1  ;;  %v1091_v50 = vld [vmem:[%s3697_s4 + $0x310] sm:$0xff]  ;;  %v2094_v54 = vld [vmem:[%s3697_s4 + $0x398] sm:$0xff]  ;;  %v2534_v56 = vpack.c.bf16 %v2085_v47, %v2081_v46  ;;  %v2488_v57 = vpack.c.bf16 %v2092_v49, %v2088_v48  ;;  %v2087_v58 = vld [vmem:[%s3697_s4 + $0x360] sm:$0xff] }
 0x109   : > { %2471 = vmatpush1.bf16.msra.mxu1 %v2470_v2  ;;  %2425 = vmatprep.subr.bf16.mxu0 %v2424_v3  ;;  %v2091_v59 = vld [vmem:[%s3697_s4 + $0x380] sm:$0xff]  ;;  %v2089_v60 = vld [vmem:[%s3697_s4 + $0x370] sm:$0xff]  ;;  %v2536_v61 = vpack.c.bf16 %v2094_v54, %v2090_v53  ;;  %v2096_v63 = vld [vmem:[%s3697_s4 + $0x3a8] sm:$0xff] }
 0x10a   : > { %2473 = vmatprep.subr.bf16.mxu1 %v2472_v7  ;;  %v2093_v62 = vld [vmem:[%s3697_s4 + $0x390] sm:$0xff]  ;;  %v2100_v0 = vld [vmem:[%s3697_s4 + $0x3c8] sm:$0xff]  ;;  %v2098_v1 = vld [vmem:[%s3697_s4 + $0x3b8] sm:$0xff]  ;;  %v2490_v3 = vpack.c.bf16 %v2091_v59, %v2087_v58 }
 0x10b   : > { %v2102_v2 = vld [vmem:[%s3697_s4 + $0x3d8] sm:$0xff]  ;;  %v2538_v4 = vpack.c.bf16 %v2093_v62, %v2089_v60  ;;  %v2492_v5 = vpack.c.bf16 %v2100_v0, %v2096_v63  ;;  %v2095_v6 = vld [vmem:[%s3697_s4 + $0x3a0] sm:$0xff]  ;;  %v2097_v8 = vld [vmem:[%s3697_s4 + $0x3b0] sm:$0xff] }
 0x10c   : > { %2427 = vmatpush1.bf16.msra.mxu0 %v2426_v13  ;;  %v2099_v7 = vld [vmem:[%s3697_s4 + $0x3c0] sm:$0xff]  ;;  %v2540_v9 = vpack.c.bf16 %v2102_v2, %v2098_v1  ;;  %v2101_v10 = vld [vmem:[%s3697_s4 + $0x3d0] sm:$0xff]  ;;  %v2104_v11 = vld [vmem:[%s3697_s4 + $0x3e8] sm:$0xff] }
 0x10d   : > { %2475 = vmatpush1.bf16.msra.mxu1 %v2474_v14  ;;  %2429 = vmatprep.subr.bf16.mxu0 %v2428_v15  ;;  %v2108_v12 = vld [vmem:[%s3697_s4 + $0x408] sm:$0xff]  ;;  %v2106_v13 = vld [vmem:[%s3697_s4 + $0x3f8] sm:$0xff]  ;;  %v2494_v15 = vpack.c.bf16 %v2099_v7, %v2095_v6  ;;  %v2542_v17 = vpack.c.bf16 %v2101_v10, %v2097_v8  ;;  %v2103_v19 = vld [vmem:[%s3697_s4 + $0x3e0] sm:$0xff] }
 0x10e   : > { %2477 = vmatprep.subr.bf16.mxu1 %v2476_v20  ;;  %v2110_v14 = vld [vmem:[%s3697_s4 + $0x418] sm:$0xff]  ;;  %v2496_v18 = vpack.c.bf16 %v2108_v12, %v2104_v11  ;;  %v2107_v20 = vld [vmem:[%s3697_s4 + $0x400] sm:$0xff]  ;;  %v2105_v21 = vld [vmem:[%s3697_s4 + $0x3f0] sm:$0xff] }
 0x10f   : > { %v2544_v22 = vpack.c.bf16 %v2110_v14, %v2106_v13  ;;  %v2109_v23 = vld [vmem:[%s3697_s4 + $0x410] sm:$0xff]  ;;  %v2112_v24 = vld [vmem:[%s3697_s4 + $0x428] sm:$0xff]  ;;  %v2115_v32 = vld [vmem:[%s3697_s4 + $0x440] sm:$0xff] }
 0x110   : > { %2431 = vmatpush1.bf16.msra.mxu0 %v2430_v26  ;;  %v2116_v25 = vld [vmem:[%s3697_s4 + $0x448] sm:$0xff]  ;;  %v2114_v26 = vld [vmem:[%s3697_s4 + $0x438] sm:$0xff]  ;;  %v2546_v29 = vpack.c.bf16 %v2109_v23, %v2105_v21  ;;  %v2113_v33 = vld [vmem:[%s3697_s4 + $0x430] sm:$0xff] }
 0x111   : > { %2479 = vmatpush1.bf16.msra.mxu1 %v2478_v27  ;;  %2433 = vmatprep.subr.bf16.mxu0 %v2432_v28  ;;  %v2118_v27 = vld [vmem:[%s3697_s4 + $0x458] sm:$0xff]  ;;  %v2498_v28 = vpack.c.bf16 %v2107_v20, %v2103_v19  ;;  %v2500_v30 = vpack.c.bf16 %v2116_v25, %v2112_v24  ;;  %v2119_v44 = vld [vmem:[%s3697_s4 + $0x460] sm:$0xff]  ;;  %v2121_v46 = vld [vmem:[%s3697_s4 + $0x470] sm:$0xff] }
 0x112   : > { %2481 = vmatprep.subr.bf16.mxu1 %v2480_v31  ;;  %v2111_v31 = vld [vmem:[%s3697_s4 + $0x420] sm:$0xff]  ;;  %v2122_v38 = vld [vmem:[%s3697_s4 + $0x478] sm:$0xff]  ;;  %v2125_v48 = vld [vmem:[%s3697_s4 + $0x490] sm:$0xff] }
 0x113   : > { %v2502_v40 = vpack.c.bf16 %v2115_v32, %v2111_v31  ;;  %v2123_v45 = vld [vmem:[%s3697_s4 + $0x480] sm:$0xff]  ;;  %v2128_v49 = vld [vmem:[%s3697_s4 + $0x4a8] sm:$0xff]  ;;  %v2554_v54 = vpack.c.bf16 %v2125_v48, %v2121_v46  ;;  %v2129_v58 = vld [vmem:[%s3697_s4 + $0x4b0] sm:$0xff] }
 0x114   : > { %2435 = vmatpush1.bf16.msra.mxu0 %v2434_v34  ;;  %v2548_v34 = vpack.c.bf16 %v2118_v27, %v2114_v26  ;;  %v2506_v53 = vpack.c.bf16 %v2123_v45, %v2119_v44  ;;  %v2133_v60 = vld [vmem:[%s3697_s4 + $0x4d0] sm:$0xff]  ;;  %v2140_v62 = vld [vmem:[%s3697_s4 + $0x508] sm:$0xff]  ;;  %v2138_v63 = vld [vmem:[%s3697_s4 + $0x4f8] sm:$0xff] }
 0x115   : > { %2483 = vmatpush1.bf16.msra.mxu1 %v2482_v35  ;;  %1151 = vmatprep.subr.mxu0 %v1090_v36  ;;  %v2117_v35 = vld [vmem:[%s3697_s4 + $0x450] sm:$0xff]  ;;  %v2120_v36 = vld [vmem:[%s3697_s4 + $0x468] sm:$0xff]  ;;  %v2142_v0 = vld [vmem:[%s3697_s4 + $0x518] sm:$0xff]  ;;  %v2558_v2 = vpack.c.bf16 %v2133_v60, %v2129_v58 }
 0x116   : > { %1222 = vmatprep.subr.mxu1 %v1092_v37  ;;  %v2124_v37 = vld [vmem:[%s3697_s4 + $0x488] sm:$0xff]  ;;  %v2550_v41 = vpack.c.bf16 %v2117_v35, %v2113_v33  ;;  %v2137_v6 = vld [vmem:[%s3697_s4 + $0x4f0] sm:$0xff]  ;;  %v2560_v7 = vpack.c.bf16 %v2142_v0, %v2138_v63  ;;  %v2146_v11 = vld [vmem:[%s3697_s4 + $0x538] sm:$0xff] }
 0x117   : > { %v2504_v42 = vpack.c.bf16 %v2124_v37, %v2120_v36  ;;  %v2141_v8 = vld [vmem:[%s3697_s4 + $0x510] sm:$0xff]  ;;  %v2148_v10 = vld [vmem:[%s3697_s4 + $0x548] sm:$0xff]  ;;  %v2150_v12 = vld [vmem:[%s3697_s4 + $0x558] sm:$0xff] }
 0x118   : > { %1152 = vmatpush1.msra.mxu0 %v1089_v39  ;;  %v2126_v39 = vld [vmem:[%s3697_s4 + $0x498] sm:$0xff]  ;;  %v2562_v14 = vpack.c.bf16 %v2141_v8, %v2137_v6  ;;  %v2145_v19 = vld [vmem:[%s3697_s4 + $0x530] sm:$0xff]  ;;  %v2564_v20 = vpack.c.bf16 %v2150_v12, %v2146_v11  ;;  %v2156_v23 = vld [vmem:[%s3697_s4 + $0x588] sm:$0xff] }
 0x119   : > { %1223 = vmatpush1.msra.mxu1 %v1091_v50  ;;  %1168 = vmatmul.mubr.f32.vlgmr.msra.gmra.mrb[0].mxu0 %v3805_v43  ;;  %v2552_v47 = vpack.c.bf16 %v2126_v39, %v2122_v38  ;;  %v2132_v50 = vld [vmem:[%s3697_s4 + $0x4c8] sm:$0xff]  ;;  %v2149_v21 = vld [vmem:[%s3697_s4 + $0x550] sm:$0xff]  ;;  %v2154_v24 = vld [vmem:[%s3697_s4 + $0x578] sm:$0xff] }
 0x11a   : > { %2485 = vmatprep.subr.bf16.mxu0 %v2484_v51  ;;  %2533 = vmatprep.subr.bf16.mxu1 %v2532_v52  ;;  %v2130_v51 = vld [vmem:[%s3697_s4 + $0x4b8] sm:$0xff]  ;;  %v2566_v27 = vpack.c.bf16 %v2149_v21, %v2145_v19  ;;  %v2153_v31 = vld [vmem:[%s3697_s4 + $0x570] sm:$0xff]  ;;  %v2164_v35 = vld [vmem:[%s3697_s4 + $0x5c8] sm:$0xff] }
 0x11b   : > { %1239 = vmatmul.mubr.f32.vlgmr.msra.gmra.mrb[0].mxu1 %v3805_v43  ;;  %2487 = vmatpush1.bf16.msra.mxu0 %v2486_v55  ;;  %v2134_v52 = vld [vmem:[%s3697_s4 + $0x4d8] sm:$0xff]  ;;  %v2508_v55 = vpack.c.bf16 %v2132_v50, %v2128_v49  ;;  %v2157_v33 = vld [vmem:[%s3697_s4 + $0x590] sm:$0xff]  ;;  %v2172_v48 = vld [vmem:[%s3697_s4 + $0x608] sm:$0xff] }
 0x11c   : > { %2535 = vmatpush1.bf16.msra.mxu1 %v2534_v56  ;;  %2489 = vmatprep.subr.bf16.mxu0 %v2488_v57  ;;  %v2127_v56 = vld [vmem:[%s3697_s4 + $0x4a0] sm:$0xff]  ;;  %v2556_v59 = vpack.c.bf16 %v2134_v52, %v2130_v51  ;;  %v2158_v25 = vld [vmem:[%s3697_s4 + $0x598] sm:$0xff]  ;;  %v2570_v39 = vpack.c.bf16 %v2157_v33, %v2153_v31  ;;  %v2161_v44 = vld [vmem:[%s3697_s4 + $0x5b0] sm:$0xff] }
 0x11d   : > { %2537 = vmatprep.subr.bf16.mxu1 %v2536_v61  ;;  %2179 = vmatprep.mubr.msk.f32.mxu0 %vm1099_vm0, %v3691_v16  ;;  %v2131_v57 = vld [vmem:[%s3697_s4 + $0x4c0] sm:$0xff]  ;;  %v2136_v61 = vld [vmem:[%s3697_s4 + $0x4e8] sm:$0xff]  ;;  %v2568_v32 = vpack.c.bf16 %v2158_v25, %v2154_v24  ;;  %v2162_v36 = vld [vmem:[%s3697_s4 + $0x5b8] sm:$0xff] }
 0x11e   : > { %2180 = vmatprep.mubr.msk.f32.mxu1 %vm1099_vm0, %v3691_v16  ;;  %v2510_v1 = vpack.c.bf16 %v2131_v57, %v2127_v56  ;;  %v2166_v37 = vld [vmem:[%s3697_s4 + $0x5d8] sm:$0xff]  ;;  %v2165_v46 = vld [vmem:[%s3697_s4 + $0x5d0] sm:$0xff]  ;;  %v1093_v51 = vld [vmem:[%s4146_s2] sm:$0xff] }
 0x11f   : > { %2491 = vmatpush1.bf16.msra.mxu0 %v2490_v3  ;;  %v2512_v3 = vpack.c.bf16 %v2140_v62, %v2136_v61  ;;  %v2572_v45 = vpack.c.bf16 %v2166_v37, %v2162_v36  ;;  %v2170_v49 = vld [vmem:[%s3697_s4 + $0x5f8] sm:$0xff]  ;;  %1096 = vperm.xlu0 %2799, %v1093_v51   ;;  %v2171_v56 = vld [vmem:[%s3697_s4 + $0x600] sm:$0xff]  ;;  %v2169_v58 = vld [vmem:[%s3697_s4 + $0x5f0] sm:$0xff] }
 0x120   : > { %2539 = vmatpush1.bf16.msra.mxu1 %v2538_v4  ;;  %2493 = vmatprep.subr.bf16.mxu0 %v2492_v5  ;;  %v2135_v4 = vld [vmem:[%s3697_s4 + $0x4e0] sm:$0xff]  ;;  %v2174_v50 = vld [vmem:[%s3697_s4 + $0x618] sm:$0xff]  ;;  %v2176_v62 = vld [vmem:[%s3697_s4 + $0x628] sm:$0xff] }
 0x121   : > { %2541 = vmatprep.subr.bf16.mxu1 %v2540_v9  ;;  %v2139_v5 = vld [vmem:[%s3697_s4 + $0x500] sm:$0xff]  ;;  %v2144_v9 = vld [vmem:[%s3697_s4 + $0x528] sm:$0xff]  ;;  %v2576_v57 = vpack.c.bf16 %v2174_v50, %v2170_v49  ;;  %v2178_v63 = vld [vmem:[%s3697_s4 + $0x638] sm:$0xff] }
 0x122   : > { %v2514_v13 = vpack.c.bf16 %v2139_v5, %v2135_v4  ;;  %v2182_v0 = vld [vmem:[%s3697_s4 + $0x648] sm:$0xff]  ;;  %v2188_v4 = vld [vmem:[%s3697_s4 + $0x678] sm:$0xff]  ;;  %v2181_v5 = vld [vmem:[%s3697_s4 + $0x640] sm:$0xff] }
 0x123   : > { %2495 = vmatpush1.bf16.msra.mxu0 %v2494_v15  ;;  %v2516_v15 = vpack.c.bf16 %v2148_v10, %v2144_v9  ;;  %v2185_v6 = vld [vmem:[%s3697_s4 + $0x660] sm:$0xff]  ;;  %v2187_v8 = vld [vmem:[%s3697_s4 + $0x670] sm:$0xff]  ;;  %v2190_v9 = vld [vmem:[%s3697_s4 + $0x688] sm:$0xff] }
 0x124   : > { %2543 = vmatpush1.bf16.msra.mxu1 %v2542_v17  ;;  %2497 = vmatprep.subr.bf16.mxu0 %v2496_v18  ;;  %v2143_v17 = vld [vmem:[%s3697_s4 + $0x520] sm:$0xff]  ;;  %v2194_v10 = vld [vmem:[%s3697_s4 + $0x6a8] sm:$0xff]  ;;  %v2177_v11 = vld [vmem:[%s3697_s4 + $0x630] sm:$0xff] }
 0x125   : > { %2545 = vmatprep.subr.bf16.mxu1 %v2544_v22  ;;  %v2147_v18 = vld [vmem:[%s3697_s4 + $0x540] sm:$0xff]  ;;  %v2152_v22 = vld [vmem:[%s3697_s4 + $0x568] sm:$0xff]  ;;  %v2584_v19 = vpack.c.bf16 %v2194_v10, %v2190_v9  ;;  %v2195_v24 = vld [vmem:[%s3697_s4 + $0x6b0] sm:$0xff] }
 0x126   : > { %v2518_v26 = vpack.c.bf16 %v2147_v18, %v2143_v17  ;;  %v2582_v17 = vpack.c.bf16 %v2185_v6, %v2181_v5  ;;  %v2193_v21 = vld [vmem:[%s3697_s4 + $0x6a0] sm:$0xff]  ;;  %v2198_v25 = vld [vmem:[%s3697_s4 + $0x6c8] sm:$0xff]  ;;  %v2203_v36 = vld [vmem:[%s3697_s4 + $0x6f0] sm:$0xff] }
 0x127   : > { %2499 = vmatpush1.bf16.msra.mxu0 %v2498_v28  ;;  %v2520_v28 = vpack.c.bf16 %v2156_v23, %v2152_v22  ;;  %v2191_v22 = vld [vmem:[%s3697_s4 + $0x690] sm:$0xff]  ;;  %v2201_v33 = vld [vmem:[%s3697_s4 + $0x6e0] sm:$0xff]  ;;  %v2206_v37 = vld [vmem:[%s3697_s4 + $0x708] sm:$0xff] }
 0x128   : > { %2547 = vmatpush1.bf16.msra.mxu1 %v2546_v29  ;;  %2501 = vmatprep.subr.bf16.mxu0 %v2500_v30  ;;  %v2151_v29 = vld [vmem:[%s3697_s4 + $0x560] sm:$0xff]  ;;  %v2211_v49 = vld [vmem:[%s3697_s4 + $0x730] sm:$0xff]  ;;  %v2214_v50 = vld [vmem:[%s3697_s4 + $0x748] sm:$0xff] }
 0x129   : > { %2549 = vmatprep.subr.bf16.mxu1 %v2548_v34  ;;  %v2155_v30 = vld [vmem:[%s3697_s4 + $0x580] sm:$0xff]  ;;  %v2160_v34 = vld [vmem:[%s3697_s4 + $0x5a8] sm:$0xff]  ;;  %v2216_v51 = vld [vmem:[%s3697_s4 + $0x758] sm:$0xff] }
 0x12a   : > { %v2522_v38 = vpack.c.bf16 %v2155_v30, %v2151_v29  ;;  %v2634_v30 = vpack.c.bf16 %v2195_v24, %v2191_v22  ;;  %v2225_v5 = vld [vmem:[%s3697_s4 + $0x7a0] sm:$0xff]  ;;  %v2223_v6 = vld [vmem:[%s3697_s4 + $0x790] sm:$0xff]  ;;  %v2230_v9 = vld [vmem:[%s3697_s4 + $0x7c8] sm:$0xff] }
 0x12b   : > { %2503 = vmatpush1.bf16.msra.mxu0 %v2502_v40  ;;  %v2524_v40 = vpack.c.bf16 %v2164_v35, %v2160_v34  ;;  %v2199_v34 = vld [vmem:[%s3697_s4 + $0x6d0] sm:$0xff]  ;;  %v2234_v10 = vld [vmem:[%s3697_s4 + $0x7e8] sm:$0xff]  ;;  %v2240_v24 = vld [vmem:[%s3697_s4 + $0x818] sm:$0xff] }
 0x12c   : > { %2551 = vmatpush1.bf16.msra.mxu1 %v2550_v41  ;;  %2505 = vmatprep.subr.bf16.mxu0 %v2504_v42  ;;  %v2159_v41 = vld [vmem:[%s3697_s4 + $0x5a0] sm:$0xff]  ;;  %v2238_v22 = vld [vmem:[%s3697_s4 + $0x808] sm:$0xff] }
 0x12d   : > { %2553 = vmatprep.subr.bf16.mxu1 %v2552_v47  ;;  %v2163_v42 = vld [vmem:[%s3697_s4 + $0x5c0] sm:$0xff]  ;;  %v2168_v47 = vld [vmem:[%s3697_s4 + $0x5e8] sm:$0xff] }
 0x12e   : > { %v2526_v52 = vpack.c.bf16 %v2163_v42, %v2159_v41  ;;  %v2638_v42 = vpack.c.bf16 %v2203_v36, %v2199_v34  ;;  %v2246_v34 = vld [vmem:[%s3697_s4 + $0x848] sm:$0xff]  ;;  %v2248_v36 = vld [vmem:[%s3697_s4 + $0x858] sm:$0xff] }
 0x12f   : > { %2507 = vmatpush1.bf16.msra.mxu0 %v2506_v53  ;;  %v2574_v53 = vpack.c.bf16 %v2165_v46, %v2161_v44  ;;  %v2209_v46 = vld [vmem:[%s3697_s4 + $0x720] sm:$0xff] }
 0x130   : > { %2555 = vmatpush1.bf16.msra.mxu1 %v2554_v54  ;;  %2509 = vmatprep.subr.bf16.mxu0 %v2508_v55  ;;  %v2528_v54 = vpack.c.bf16 %v2172_v48, %v2168_v47  ;;  %v2167_v55 = vld [vmem:[%s3697_s4 + $0x5e0] sm:$0xff]  ;;  %v2207_v47 = vld [vmem:[%s3697_s4 + $0x710] sm:$0xff] }
 0x131   : > { %2557 = vmatprep.subr.bf16.mxu1 %v2556_v59  ;;  %v2173_v59 = vld [vmem:[%s3697_s4 + $0x610] sm:$0xff]  ;;  %v2530_v60 = vpack.c.bf16 %v2171_v56, %v2167_v55  ;;  %v2213_v56 = vld [vmem:[%s3697_s4 + $0x740] sm:$0xff] }
 0x132   : > { %v2578_v61 = vpack.c.bf16 %v2173_v59, %v2169_v58  ;;  %v2215_v58 = vld [vmem:[%s3697_s4 + $0x750] sm:$0xff] }
 0x133   : > { %2511 = vmatpush1.bf16.msra.mxu0 %v2510_v1  ;;  %v2175_v1 = vld [vmem:[%s3697_s4 + $0x620] sm:$0xff] }
 0x134   : > { %2559 = vmatpush1.bf16.msra.mxu1 %v2558_v2  ;;  %2513 = vmatprep.subr.bf16.mxu0 %v2512_v3  ;;  %v2186_v2 = vld [vmem:[%s3697_s4 + $0x668] sm:$0xff]  ;;  %v2184_v3 = vld [vmem:[%s3697_s4 + $0x658] sm:$0xff] }
 0x135   : > { %2561 = vmatprep.subr.bf16.mxu1 %v2560_v7  ;;  %v2183_v7 = vld [vmem:[%s3697_s4 + $0x650] sm:$0xff]  ;;  %v2580_v12 = vpack.c.bf16 %v2186_v2, %v2182_v0  ;;  %v2228_v0 = vld [vmem:[%s3697_s4 + $0x7b8] sm:$0xff] }
 0x136   : > { %v2630_v18 = vpack.c.bf16 %v2187_v8, %v2183_v7  ;;  %v2227_v8 = vld [vmem:[%s3697_s4 + $0x7b0] sm:$0xff] }
 0x137   : > { %2515 = vmatpush1.bf16.msra.mxu0 %v2514_v13  ;;  %v2192_v13 = vld [vmem:[%s3697_s4 + $0x698] sm:$0xff] }
 0x138   : > { %2563 = vmatpush1.bf16.msra.mxu1 %v2562_v14  ;;  %2517 = vmatprep.subr.bf16.mxu0 %v2516_v15  ;;  %v2196_v14 = vld [vmem:[%s3697_s4 + $0x6b8] sm:$0xff]  ;;  %v2628_v15 = vpack.c.bf16 %v2188_v4, %v2184_v3  ;;  %v2221_v4 = vld [vmem:[%s3697_s4 + $0x780] sm:$0xff] }
 0x139   : > { %2565 = vmatprep.subr.bf16.mxu1 %v2564_v20  ;;  %v2189_v20 = vld [vmem:[%s3697_s4 + $0x680] sm:$0xff]  ;;  %v2632_v23 = vpack.c.bf16 %v2196_v14, %v2192_v13  ;;  %v2602_v13 = vpack.c.bf16 %v2225_v5, %v2221_v4  ;;  %v2650_v14 = vpack.c.bf16 %v2227_v8, %v2223_v6  ;;  %v2267_v5 = vld [vmem:[%s3697_s4 + $0x8f0] sm:$0xff]  ;;  %v2270_v6 = vld [vmem:[%s3697_s4 + $0x908] sm:$0xff] }
 0x13a   : > { %v2586_v29 = vpack.c.bf16 %v2193_v21, %v2189_v20  ;;  %v2235_v21 = vld [vmem:[%s3697_s4 + $0x7f0] sm:$0xff]  ;;  %v2272_v8 = vld [vmem:[%s3697_s4 + $0x918] sm:$0xff] }
 0x13b   : > { %2519 = vmatpush1.bf16.msra.mxu0 %v2518_v26  ;;  %v2202_v26 = vld [vmem:[%s3697_s4 + $0x6e8] sm:$0xff] }
 0x13c   : > { %2567 = vmatpush1.bf16.msra.mxu1 %v2566_v27  ;;  %2521 = vmatprep.subr.bf16.mxu0 %v2520_v28  ;;  %v2200_v27 = vld [vmem:[%s3697_s4 + $0x6d8] sm:$0xff]  ;;  %v2588_v31 = vpack.c.bf16 %v2202_v26, %v2198_v25 }
 0x13d   : > { %2569 = vmatprep.subr.bf16.mxu1 %v2568_v32  ;;  %v2204_v28 = vld [vmem:[%s3697_s4 + $0x6f8] sm:$0xff]  ;;  %v2197_v32 = vld [vmem:[%s3697_s4 + $0x6c0] sm:$0xff] }
 0x13e   : > { %v2636_v35 = vpack.c.bf16 %v2204_v28, %v2200_v27  ;;  %v2590_v41 = vpack.c.bf16 %v2201_v33, %v2197_v32  ;;  %v2244_v25 = vld [vmem:[%s3697_s4 + $0x838] sm:$0xff]  ;;  %v2243_v33 = vld [vmem:[%s3697_s4 + $0x830] sm:$0xff] }
 0x13f   : > { %2523 = vmatpush1.bf16.msra.mxu0 %v2522_v38  ;;  %v2210_v38 = vld [vmem:[%s3697_s4 + $0x728] sm:$0xff]  ;;  %v2656_v32 = vpack.c.bf16 %v2244_v25, %v2240_v24  ;;  %v2277_v24 = vld [vmem:[%s3697_s4 + $0x940] sm:$0xff] }
 0x140   : > { %2571 = vmatpush1.bf16.msra.mxu1 %v2570_v39  ;;  %2525 = vmatprep.subr.bf16.mxu0 %v2524_v40  ;;  %v2208_v39 = vld [vmem:[%s3697_s4 + $0x718] sm:$0xff]  ;;  %v2592_v44 = vpack.c.bf16 %v2210_v38, %v2206_v37  ;;  %v2288_v25 = vld [vmem:[%s3697_s4 + $0x988] sm:$0xff] }
 0x141   : > { %2573 = vmatprep.subr.bf16.mxu1 %v2572_v45  ;;  %v2212_v40 = vld [vmem:[%s3697_s4 + $0x738] sm:$0xff]  ;;  %v2205_v45 = vld [vmem:[%s3697_s4 + $0x700] sm:$0xff] }
 0x142   : > { %v2640_v48 = vpack.c.bf16 %v2212_v40, %v2208_v39  ;;  %v2252_v37 = vld [vmem:[%s3697_s4 + $0x878] sm:$0xff] }
 0x143   : > { %2527 = vmatpush1.bf16.msra.mxu0 %v2526_v52  ;;  %v2220_v52 = vld [vmem:[%s3697_s4 + $0x778] sm:$0xff] }
 0x144   : > { %2575 = vmatpush1.bf16.msra.mxu1 %v2574_v53  ;;  %2529 = vmatprep.subr.bf16.mxu0 %v2528_v54  ;;  %v2594_v53 = vpack.c.bf16 %v2209_v46, %v2205_v45  ;;  %v2642_v54 = vpack.c.bf16 %v2211_v49, %v2207_v47  ;;  %v2644_v59 = vpack.c.bf16 %v2220_v52, %v2216_v51  ;;  %v2251_v46 = vld [vmem:[%s3697_s4 + $0x870] sm:$0xff]  ;;  %v2254_v47 = vld [vmem:[%s3697_s4 + $0x888] sm:$0xff]  ;;  %v2256_v49 = vld [vmem:[%s3697_s4 + $0x898] sm:$0xff] }
 0x145   : > { %2577 = vmatprep.subr.bf16.mxu1 %v2576_v57  ;;  %v2217_v57 = vld [vmem:[%s3697_s4 + $0x760] sm:$0xff]  ;;  %v2660_v45 = vpack.c.bf16 %v2252_v37, %v2248_v36  ;;  %v2294_v36 = vld [vmem:[%s3697_s4 + $0x9b8] sm:$0xff] }
 0x146   : > { %v2298_v37 = vld [vmem:[%s3697_s4 + $0x9d8] sm:$0xff] }
 0x147   : > { %2531 = vmatpush1.bf16.msra.mxu0 %v2530_v60  ;;  %v2219_v60 = vld [vmem:[%s3697_s4 + $0x770] sm:$0xff] }
 0x148   : > { %2579 = vmatpush1.bf16.msra.mxu1 %v2578_v61  ;;  %1398 = vmatprep.subr.mxu0 %v2176_v62  ;;  %v2222_v61 = vld [vmem:[%s3697_s4 + $0x788] sm:$0xff]  ;;  %v2646_v2 = vpack.c.bf16 %v2219_v60, %v2215_v58  ;;  %v2264_v60 = vld [vmem:[%s3697_s4 + $0x8d8] sm:$0xff] }
 0x149   : > { %1469 = vmatprep.subr.mxu1 %v2178_v63  ;;  %v2226_v62 = vld [vmem:[%s3697_s4 + $0x7a8] sm:$0xff]  ;;  %v2224_v63 = vld [vmem:[%s3697_s4 + $0x798] sm:$0xff] }
 0x14a   : > { %v2600_v3 = vpack.c.bf16 %v2226_v62, %v2222_v61  ;;  %v2648_v7 = vpack.c.bf16 %v2228_v0, %v2224_v63  ;;  %v2262_v58 = vld [vmem:[%s3697_s4 + $0x8c8] sm:$0xff]  ;;  %v2268_v61 = vld [vmem:[%s3697_s4 + $0x8f8] sm:$0xff] }
 0x14b   : > { %1399 = vmatpush1.msra.mxu0 %v2175_v1  ;;  %v2598_v1 = vpack.c.bf16 %v2217_v57, %v2213_v56  ;;  %v2259_v57 = vld [vmem:[%s3697_s4 + $0x8b0] sm:$0xff]  ;;  %v2668_v4 = vpack.c.bf16 %v2268_v61, %v2264_v60  ;;  %v2800_v60 = vld [vmem:[%s4145_s1 + $0x8] sm:$0xff]  ;;  %v2310_v61 = vld [vmem:[%s3697_s4 + $0xa38] sm:$0xff] }
 0x14c   : > { %1470 = vmatpush1.msra.mxu1 %v2177_v11  ;;  %1415 = vmatmul.mubr.f32.vlgmr.msra.gmra.mrb[2].mxu0 %v3805_v43  ;;  %v2232_v11 = vld [vmem:[%s3697_s4 + $0x7d8] sm:$0xff] }
 0x14d   : > { %1486 = vmatmul.mubr.f32.vlgmr.msra.gmra.mrb[2].mxu1 %v3805_v43  ;;  %2581 = vmatprep.subr.bf16.mxu0 %v2580_v12  ;;  %v2236_v12 = vld [vmem:[%s3697_s4 + $0x7f8] sm:$0xff] }
 0x14e   : > { %2629 = vmatprep.subr.bf16.mxu1 %v2628_v15  ;;  %2583 = vmatpush1.bf16.msra.mxu0 %v2582_v17  ;;  %v2604_v15 = vpack.c.bf16 %v2234_v10, %v2230_v9  ;;  %v2229_v17 = vld [vmem:[%s3697_s4 + $0x7c0] sm:$0xff]  ;;  %v2652_v20 = vpack.c.bf16 %v2236_v12, %v2232_v11  ;;  %v2276_v9 = vld [vmem:[%s3697_s4 + $0x938] sm:$0xff] }
 0x14f   : > { %2631 = vmatpush1.bf16.msra.mxu1 %v2630_v18  ;;  %2585 = vmatprep.subr.bf16.mxu0 %v2584_v19  ;;  %v2233_v18 = vld [vmem:[%s3697_s4 + $0x7e0] sm:$0xff]  ;;  %v2231_v19 = vld [vmem:[%s3697_s4 + $0x7d0] sm:$0xff] }
 0x150   : > { %2633 = vmatprep.subr.bf16.mxu1 %v2632_v23  ;;  %2281 = vmatprep.mubr.msk.f32.mxu0 %vm1099_vm0, %v3691_v16  ;;  %v2242_v23 = vld [vmem:[%s3697_s4 + $0x828] sm:$0xff]  ;;  %v2606_v26 = vpack.c.bf16 %v2233_v18, %v2229_v17  ;;  %v2654_v27 = vpack.c.bf16 %v2235_v21, %v2231_v19  ;;  %v2271_v17 = vld [vmem:[%s3697_s4 + $0x910] sm:$0xff] }
 0x151   : > { %2282 = vmatprep.mubr.msk.f32.mxu1 %vm1099_vm0, %v3691_v16  ;;  %v2218_v16 = vld [vmem:[%s3697_s4 + $0x768] sm:$0xff]  ;;  %v2608_v28 = vpack.c.bf16 %v2242_v23, %v2238_v22  ;;  %v2275_v18 = vld [vmem:[%s3697_s4 + $0x930] sm:$0xff]  ;;  %v2280_v22 = vld [vmem:[%s3697_s4 + $0x958] sm:$0xff] }
 0x152   : > { %2587 = vmatpush1.bf16.msra.mxu0 %v2586_v29  ;;  %v2596_v55 = vpack.c.bf16 %v2218_v16, %v2214_v50  ;;  %v2237_v29 = vld [vmem:[%s3697_s4 + $0x800] sm:$0xff]  ;;  %v2260_v50 = vld [vmem:[%s3697_s4 + $0x8b8] sm:$0xff]  ;;  %v2278_v21 = vld [vmem:[%s3697_s4 + $0x948] sm:$0xff] }
 0x153   : > { %2635 = vmatpush1.bf16.msra.mxu1 %v2634_v30  ;;  %2589 = vmatprep.subr.bf16.mxu0 %v2588_v31  ;;  %v2241_v30 = vld [vmem:[%s3697_s4 + $0x820] sm:$0xff]  ;;  %v2239_v31 = vld [vmem:[%s3697_s4 + $0x810] sm:$0xff]  ;;  %v2664_v56 = vpack.c.bf16 %v2260_v50, %v2256_v49  ;;  %v2284_v23 = vld [vmem:[%s3697_s4 + $0x968] sm:$0xff] }
 0x154   : > { %2637 = vmatprep.subr.bf16.mxu1 %v2636_v35  ;;  %v2250_v35 = vld [vmem:[%s3697_s4 + $0x868] sm:$0xff]  ;;  %v2610_v38 = vpack.c.bf16 %v2241_v30, %v2237_v29  ;;  %v2658_v39 = vpack.c.bf16 %v2243_v33, %v2239_v31  ;;  %v2287_v29 = vld [vmem:[%s3697_s4 + $0x980] sm:$0xff]  ;;  %v2285_v30 = vld [vmem:[%s3697_s4 + $0x970] sm:$0xff] }
 0x155   : > { %v2612_v40 = vpack.c.bf16 %v2250_v35, %v2246_v34  ;;  %v2289_v31 = vld [vmem:[%s3697_s4 + $0x990] sm:$0xff]  ;;  %v2296_v33 = vld [vmem:[%s3697_s4 + $0x9c8] sm:$0xff]  ;;  %v2676_v35 = vpack.c.bf16 %v2288_v25, %v2284_v23  ;;  %v2302_v50 = vld [vmem:[%s3697_s4 + $0x9f8] sm:$0xff] }
 0x156   : > { %2591 = vmatpush1.bf16.msra.mxu0 %v2590_v41  ;;  %v2245_v41 = vld [vmem:[%s3697_s4 + $0x840] sm:$0xff]  ;;  %v2279_v34 = vld [vmem:[%s3697_s4 + $0x950] sm:$0xff]  ;;  %v2304_v49 = vld [vmem:[%s3697_s4 + $0xa08] sm:$0xff] }
 0x157   : > { %2639 = vmatpush1.bf16.msra.mxu1 %v2638_v42  ;;  %2593 = vmatprep.subr.bf16.mxu0 %v2592_v44  ;;  %v2249_v42 = vld [vmem:[%s3697_s4 + $0x860] sm:$0xff]  ;;  %v2247_v44 = vld [vmem:[%s3697_s4 + $0x850] sm:$0xff]  ;;  %v2330_v23 = vld [vmem:[%s3697_s4 + $0xad8] sm:$0xff] }
 0x158   : > { %2641 = vmatprep.subr.bf16.mxu1 %v2640_v48  ;;  %v2258_v48 = vld [vmem:[%s3697_s4 + $0x8a8] sm:$0xff]  ;;  %v2614_v16 = vpack.c.bf16 %v2249_v42, %v2245_v41  ;;  %v2662_v51 = vpack.c.bf16 %v2251_v46, %v2247_v44  ;;  %v2291_v42 = vld [vmem:[%s3697_s4 + $0x9a0] sm:$0xff]  ;;  %v2728_v46 = vpack.c.bf16 %v2298_v37, %v2294_v36 }
 0x159   : > { %v2616_v52 = vpack.c.bf16 %v2258_v48, %v2254_v47  ;;  %v2295_v44 = vld [vmem:[%s3697_s4 + $0x9c0] sm:$0xff]  ;;  %v2297_v47 = vld [vmem:[%s3697_s4 + $0x9d0] sm:$0xff]  ;;  %v2300_v48 = vld [vmem:[%s3697_s4 + $0x9e8] sm:$0xff] }
 0x15a   : > { %2595 = vmatpush1.bf16.msra.mxu0 %v2594_v53  ;;  %v2253_v53 = vld [vmem:[%s3697_s4 + $0x880] sm:$0xff] }
 0x15b   : > { %2643 = vmatpush1.bf16.msra.mxu1 %v2642_v54  ;;  %2597 = vmatprep.subr.bf16.mxu0 %v2596_v55  ;;  %v2257_v54 = vld [vmem:[%s3697_s4 + $0x8a0] sm:$0xff]  ;;  %v2255_v55 = vld [vmem:[%s3697_s4 + $0x890] sm:$0xff] }
 0x15c   : > { %2645 = vmatprep.subr.bf16.mxu1 %v2644_v59  ;;  %v2266_v59 = vld [vmem:[%s3697_s4 + $0x8e8] sm:$0xff]  ;;  %v2618_v62 = vpack.c.bf16 %v2257_v54, %v2253_v53  ;;  %v2666_v63 = vpack.c.bf16 %v2259_v57, %v2255_v55  ;;  %v2684_v53 = vpack.c.bf16 %v2304_v49, %v2300_v48  ;;  %v2299_v54 = vld [vmem:[%s3697_s4 + $0x9e0] sm:$0xff]  ;;  %v2305_v57 = vld [vmem:[%s3697_s4 + $0xa10] sm:$0xff] }
 0x15d   : > { %v2620_v0 = vpack.c.bf16 %v2266_v59, %v2262_v58  ;;  %v2303_v55 = vld [vmem:[%s3697_s4 + $0xa00] sm:$0xff]  ;;  %v2308_v58 = vld [vmem:[%s3697_s4 + $0xa28] sm:$0xff]  ;;  %v2346_v48 = vld [vmem:[%s3697_s4 + $0xb58] sm:$0xff] }
 0x15e   : > { %2599 = vmatpush1.bf16.msra.mxu0 %v2598_v1  ;;  %v2261_v1 = vld [vmem:[%s3697_s4 + $0x8c0] sm:$0xff]  ;;  %v2312_v59 = vld [vmem:[%s3697_s4 + $0xa48] sm:$0xff] }
 0x15f   : > { %2647 = vmatpush1.bf16.msra.mxu1 %v2646_v2  ;;  %2601 = vmatprep.subr.bf16.mxu0 %v2600_v3  ;;  %v2265_v2 = vld [vmem:[%s3697_s4 + $0x8e0] sm:$0xff]  ;;  %v2263_v3 = vld [vmem:[%s3697_s4 + $0x8d0] sm:$0xff] }
 0x160   : > { %2649 = vmatprep.subr.bf16.mxu1 %v2648_v7  ;;  %v2274_v7 = vld [vmem:[%s3697_s4 + $0x928] sm:$0xff]  ;;  %v2622_v10 = vpack.c.bf16 %v2265_v2, %v2261_v1  ;;  %v2670_v11 = vpack.c.bf16 %v2267_v5, %v2263_v3  ;;  %v2688_v1 = vpack.c.bf16 %v2312_v59, %v2308_v58  ;;  %v2307_v2 = vld [vmem:[%s3697_s4 + $0xa20] sm:$0xff]  ;;  %v2354_v58 = vld [vmem:[%s3697_s4 + $0xb98] sm:$0xff] }
 0x161   : > { %v2624_v12 = vpack.c.bf16 %v2274_v7, %v2270_v6  ;;  %v2311_v3 = vld [vmem:[%s3697_s4 + $0xa40] sm:$0xff]  ;;  %v2313_v6 = vld [vmem:[%s3697_s4 + $0xa50] sm:$0xff]  ;;  %v2316_v7 = vld [vmem:[%s3697_s4 + $0xa68] sm:$0xff] }
 0x162   : > { %2603 = vmatpush1.bf16.msra.mxu0 %v2602_v13  ;;  %v2269_v13 = vld [vmem:[%s3697_s4 + $0x900] sm:$0xff] }
 0x163   : > { %2651 = vmatpush1.bf16.msra.mxu1 %v2650_v14  ;;  %2605 = vmatprep.subr.bf16.mxu0 %v2604_v15  ;;  %v2273_v14 = vld [vmem:[%s3697_s4 + $0x920] sm:$0xff]  ;;  %v2672_v15 = vpack.c.bf16 %v2276_v9, %v2272_v8  ;;  %v2320_v8 = vld [vmem:[%s3697_s4 + $0xa88] sm:$0xff]  ;;  %v2318_v9 = vld [vmem:[%s3697_s4 + $0xa78] sm:$0xff] }
 0x164   : > { %2653 = vmatprep.subr.bf16.mxu1 %v2652_v20  ;;  %v2626_v19 = vpack.c.bf16 %v2273_v14, %v2269_v13  ;;  %v2674_v20 = vpack.c.bf16 %v2275_v18, %v2271_v17  ;;  %v2692_v13 = vpack.c.bf16 %v2320_v8, %v2316_v7  ;;  %v2315_v14 = vld [vmem:[%s3697_s4 + $0xa60] sm:$0xff]  ;;  %v2317_v17 = vld [vmem:[%s3697_s4 + $0xa70] sm:$0xff] }
 0x166   : > { %2607 = vmatpush1.bf16.msra.mxu0 %v2606_v26  ;;  %v2286_v26 = vld [vmem:[%s3697_s4 + $0x978] sm:$0xff] }
 0x167   : > { %2655 = vmatpush1.bf16.msra.mxu1 %v2654_v27  ;;  %2609 = vmatprep.subr.bf16.mxu0 %v2608_v28  ;;  %v2290_v27 = vld [vmem:[%s3697_s4 + $0x998] sm:$0xff]  ;;  %v2283_v28 = vld [vmem:[%s3697_s4 + $0x960] sm:$0xff] }
 0x168   : > { %2657 = vmatprep.subr.bf16.mxu1 %v2656_v32  ;;  %v2292_v32 = vld [vmem:[%s3697_s4 + $0x9a8] sm:$0xff] }
 0x169   : > { %v2680_v41 = vpack.c.bf16 %v2296_v33, %v2292_v32  ;;  %v2332_v32 = vld [vmem:[%s3697_s4 + $0xae8] sm:$0xff] }
 0x16a   : > { %2611 = vmatpush1.bf16.msra.mxu0 %v2610_v38  ;;  %v2724_v38 = vpack.c.bf16 %v2290_v27, %v2286_v26  ;;  %v2323_v27 = vld [vmem:[%s3697_s4 + $0xaa0] sm:$0xff]  ;;  %v2336_v33 = vld [vmem:[%s3697_s4 + $0xb08] sm:$0xff] }
 0x16b   : > { %2659 = vmatpush1.bf16.msra.mxu1 %v2658_v39  ;;  %2613 = vmatprep.subr.bf16.mxu0 %v2612_v40  ;;  %v2678_v39 = vpack.c.bf16 %v2287_v29, %v2283_v28  ;;  %v2726_v40 = vpack.c.bf16 %v2289_v31, %v2285_v30  ;;  %v2327_v28 = vld [vmem:[%s3697_s4 + $0xac0] sm:$0xff]  ;;  %v2325_v29 = vld [vmem:[%s3697_s4 + $0xab0] sm:$0xff] }
 0x16c   : > { %2661 = vmatprep.subr.bf16.mxu1 %v2660_v45  ;;  %v2293_v45 = vld [vmem:[%s3697_s4 + $0x9b0] sm:$0xff]  ;;  %v2698_v36 = vpack.c.bf16 %v2327_v28, %v2323_v27  ;;  %v2372_v28 = vld [vmem:[%s3697_s4 + $0xc28] sm:$0xff] }
 0x16d   : > { %v2329_v31 = vld [vmem:[%s3697_s4 + $0xad0] sm:$0xff] }
 0x16e   : > { %2615 = vmatpush1.bf16.msra.mxu0 %v2614_v16  ;;  %v2306_v16 = vld [vmem:[%s3697_s4 + $0xa18] sm:$0xff]  ;;  %v2746_v37 = vpack.c.bf16 %v2329_v31, %v2325_v29  ;;  %v2369_v27 = vld [vmem:[%s3697_s4 + $0xc10] sm:$0xff]  ;;  %v2376_v29 = vld [vmem:[%s3697_s4 + $0xc48] sm:$0xff] }
 0x16f   : > { %2663 = vmatpush1.bf16.msra.mxu1 %v2662_v51  ;;  %2617 = vmatprep.subr.bf16.mxu0 %v2616_v52  ;;  %v2682_v51 = vpack.c.bf16 %v2295_v44, %v2291_v42  ;;  %v2730_v52 = vpack.c.bf16 %v2297_v47, %v2293_v45  ;;  %v2337_v44 = vld [vmem:[%s3697_s4 + $0xb10] sm:$0xff]  ;;  %v2340_v45 = vld [vmem:[%s3697_s4 + $0xb28] sm:$0xff]  ;;  %v2342_v47 = vld [vmem:[%s3697_s4 + $0xb38] sm:$0xff] }
 0x170   : > { %2665 = vmatprep.subr.bf16.mxu1 %v2664_v56  ;;  %v2301_v56 = vld [vmem:[%s3697_s4 + $0x9f0] sm:$0xff]  ;;  %v2378_v31 = vld [vmem:[%s3697_s4 + $0xc58] sm:$0xff] }
 0x172   : > { %2619 = vmatpush1.bf16.msra.mxu0 %v2618_v62  ;;  %v2314_v62 = vld [vmem:[%s3697_s4 + $0xa58] sm:$0xff] }
 0x173   : > { %2667 = vmatpush1.bf16.msra.mxu1 %v2666_v63  ;;  %2621 = vmatprep.subr.bf16.mxu0 %v2620_v0  ;;  %v2686_v63 = vpack.c.bf16 %v2303_v55, %v2299_v54  ;;  %v2734_v0 = vpack.c.bf16 %v2305_v57, %v2301_v56  ;;  %v2736_v5 = vpack.c.bf16 %v2314_v62, %v2310_v61  ;;  %v2345_v55 = vld [vmem:[%s3697_s4 + $0xb50] sm:$0xff]  ;;  %v2348_v56 = vld [vmem:[%s3697_s4 + $0xb68] sm:$0xff]  ;;  %v2350_v57 = vld [vmem:[%s3697_s4 + $0xb78] sm:$0xff] }
 0x174   : > { %2669 = vmatprep.subr.bf16.mxu1 %v2668_v4  ;;  %v2309_v4 = vld [vmem:[%s3697_s4 + $0xa30] sm:$0xff]  ;;  %v2752_v54 = vpack.c.bf16 %v2346_v48, %v2342_v47  ;;  %v2347_v62 = vld [vmem:[%s3697_s4 + $0xb60] sm:$0xff] }
 0x175   : > { %v2801_v47 = vld [vmem:[%s4145_s1] sm:$0xff] }
 0x176   : > { %2623 = vmatpush1.bf16.msra.mxu0 %v2622_v10  ;;  %v2322_v10 = vld [vmem:[%s3697_s4 + $0xa98] sm:$0xff] }
 0x177   : > { %2671 = vmatpush1.bf16.msra.mxu1 %v2670_v11  ;;  %2625 = vmatprep.subr.bf16.mxu0 %v2624_v12  ;;  %v2690_v11 = vpack.c.bf16 %v2311_v3, %v2307_v2  ;;  %v2738_v12 = vpack.c.bf16 %v2313_v6, %v2309_v4  ;;  %v2740_v18 = vpack.c.bf16 %v2322_v10, %v2318_v9  ;;  %v2353_v2 = vld [vmem:[%s3697_s4 + $0xb90] sm:$0xff]  ;;  %v2356_v3 = vld [vmem:[%s3697_s4 + $0xba8] sm:$0xff]  ;;  %v2362_v6 = vld [vmem:[%s3697_s4 + $0xbd8] sm:$0xff] }
 0x178   : > { %2673 = vmatprep.subr.bf16.mxu1 %v2672_v15  ;;  %v2319_v15 = vld [vmem:[%s3697_s4 + $0xa80] sm:$0xff]  ;;  %v2360_v4 = vld [vmem:[%s3697_s4 + $0xbc8] sm:$0xff] }
 0x179   : > { %v2712_v9 = vpack.c.bf16 %v2360_v4, %v2356_v3  ;;  %v2355_v10 = vld [vmem:[%s3697_s4 + $0xba0] sm:$0xff] }
 0x17a   : > { %2627 = vmatpush1.bf16.msra.mxu0 %v2626_v19  ;;  %v2321_v19 = vld [vmem:[%s3697_s4 + $0xa90] sm:$0xff] }
 0x17b   : > { %2675 = vmatpush1.bf16.msra.mxu1 %v2674_v20  ;;  %1649 = vmatprep.subr.mxu0 %v2278_v21  ;;  %v2324_v20 = vld [vmem:[%s3697_s4 + $0xaa8] sm:$0xff]  ;;  %v2742_v25 = vpack.c.bf16 %v2321_v19, %v2317_v17  ;;  %v2370_v19 = vld [vmem:[%s3697_s4 + $0xc18] sm:$0xff] }
 0x17c   : > { %1720 = vmatprep.subr.mxu1 %v2280_v22  ;;  %v2328_v21 = vld [vmem:[%s3697_s4 + $0xac8] sm:$0xff]  ;;  %v2326_v22 = vld [vmem:[%s3697_s4 + $0xab8] sm:$0xff] }
 0x17d   : > { %v2696_v26 = vpack.c.bf16 %v2328_v21, %v2324_v20  ;;  %v2744_v30 = vpack.c.bf16 %v2330_v23, %v2326_v22  ;;  %v2368_v17 = vld [vmem:[%s3697_s4 + $0xc08] sm:$0xff]  ;;  %v2363_v23 = vld [vmem:[%s3697_s4 + $0xbe0] sm:$0xff] }
 0x17e   : > { %1650 = vmatpush1.msra.mxu0 %v2277_v24  ;;  %v2694_v24 = vpack.c.bf16 %v2319_v15, %v2315_v14  ;;  %v2361_v14 = vld [vmem:[%s3697_s4 + $0xbd0] sm:$0xff]  ;;  %v2364_v15 = vld [vmem:[%s3697_s4 + $0xbe8] sm:$0xff] }
 0x17f   : > { %1721 = vmatpush1.msra.mxu1 %v2279_v34  ;;  %1666 = vmatmul.mubr.f32.vlgmr.msra.gmra.mrb[4].mxu0 %v3805_v43  ;;  %v2334_v34 = vld [vmem:[%s3697_s4 + $0xaf8] sm:$0xff]  ;;  %v2716_v22 = vpack.c.bf16 %v2368_v17, %v2364_v15 }
 0x180   : > { %1737 = vmatmul.mubr.f32.vlgmr.msra.gmra.mrb[4].mxu1 %v3805_v43  ;;  %2677 = vmatprep.subr.bf16.mxu0 %v2676_v35  ;;  %v2732_v43 = vpack.c.bf16 %v2306_v16, %v2302_v50  ;;  %v2338_v35 = vld [vmem:[%s3697_s4 + $0xb18] sm:$0xff] }
 0x181   : > { %2725 = vmatprep.subr.bf16.mxu1 %v2724_v38  ;;  %2679 = vmatpush1.bf16.msra.mxu0 %v2678_v39  ;;  %v2700_v38 = vpack.c.bf16 %v2336_v33, %v2332_v32  ;;  %v2331_v39 = vld [vmem:[%s3697_s4 + $0xae0] sm:$0xff]  ;;  %v2748_v42 = vpack.c.bf16 %v2338_v35, %v2334_v34  ;;  %v2720_v34 = vpack.c.bf16 %v2376_v29, %v2372_v28 }
 0x182   : > { %2727 = vmatpush1.bf16.msra.mxu1 %v2726_v40  ;;  %2681 = vmatprep.subr.bf16.mxu0 %v2680_v41  ;;  %v2335_v40 = vld [vmem:[%s3697_s4 + $0xb00] sm:$0xff]  ;;  %v2333_v41 = vld [vmem:[%s3697_s4 + $0xaf0] sm:$0xff] }
 0x183   : > { %2729 = vmatprep.subr.bf16.mxu1 %v2728_v46  ;;  %2383 = vmatprep.mubr.msk.f32.mxu0 %vm1099_vm0, %v2800_v60  ;;  %v2344_v46 = vld [vmem:[%s3697_s4 + $0xb48] sm:$0xff]  ;;  %v2702_v49 = vpack.c.bf16 %v2335_v40, %v2331_v39  ;;  %v2750_v50 = vpack.c.bf16 %v2337_v44, %v2333_v41  ;;  %v2371_v35 = vld [vmem:[%s3697_s4 + $0xc20] sm:$0xff]  ;;  %v2377_v39 = vld [vmem:[%s3697_s4 + $0xc50] sm:$0xff] }
 0x184   : > { %2384 = vmatprep.mubr.msk.f32.mxu1 %vm1099_vm0, %v2800_v60  ;;  %v2704_v16 = vpack.c.bf16 %v2344_v46, %v2340_v45  ;;  %v2382_v44 = vld [vmem:[%s3697_s4 + $0xc78] sm:$0xff]  ;;  %v2379_v45 = vld [vmem:[%s3697_s4 + $0xc60] sm:$0xff]  ;;  %v2381_v46 = vld [vmem:[%s3697_s4 + $0xc70] sm:$0xff] }
 0x185   : > { %2683 = vmatpush1.bf16.msra.mxu0 %v2682_v51  ;;  %v2339_v51 = vld [vmem:[%s3697_s4 + $0xb20] sm:$0xff] }
 0x186   : > { %2731 = vmatpush1.bf16.msra.mxu1 %v2730_v52  ;;  %2685 = vmatprep.subr.bf16.mxu0 %v2684_v53  ;;  %v2343_v52 = vld [vmem:[%s3697_s4 + $0xb40] sm:$0xff]  ;;  %v2341_v53 = vld [vmem:[%s3697_s4 + $0xb30] sm:$0xff] }
 0x187   : > { %2733 = vmatprep.subr.bf16.mxu1 %v2732_v43  ;;  %v2352_v43 = vld [vmem:[%s3697_s4 + $0xb88] sm:$0xff]  ;;  %v2706_v59 = vpack.c.bf16 %v2343_v52, %v2339_v51  ;;  %v2754_v60 = vpack.c.bf16 %v2345_v55, %v2341_v53 }
 0x188   : > { %v2708_v61 = vpack.c.bf16 %v2352_v43, %v2348_v56 }
 0x189   : > { %2687 = vmatpush1.bf16.msra.mxu0 %v2686_v63  ;;  %v2351_v63 = vld [vmem:[%s3697_s4 + $0xb80] sm:$0xff] }
 0x18a   : > { %2735 = vmatpush1.bf16.msra.mxu1 %v2734_v0  ;;  %2689 = vmatprep.subr.bf16.mxu0 %v2688_v1  ;;  %v2349_v0 = vld [vmem:[%s3697_s4 + $0xb70] sm:$0xff]  ;;  %v2756_v1 = vpack.c.bf16 %v2354_v58, %v2350_v57  ;;  %v2710_v7 = vpack.c.bf16 %v2351_v63, %v2347_v62 }
 0x18b   : > { %2737 = vmatprep.subr.bf16.mxu1 %v2736_v5  ;;  %v2358_v5 = vld [vmem:[%s3697_s4 + $0xbb8] sm:$0xff]  ;;  %v2758_v8 = vpack.c.bf16 %v2353_v2, %v2349_v0 }
 0x18d   : > { %2691 = vmatpush1.bf16.msra.mxu0 %v2690_v11  ;;  %v2359_v11 = vld [vmem:[%s3697_s4 + $0xbc0] sm:$0xff] }
 0x18e   : > { %2739 = vmatpush1.bf16.msra.mxu1 %v2738_v12  ;;  %2693 = vmatprep.subr.bf16.mxu0 %v2692_v13  ;;  %v2357_v12 = vld [vmem:[%s3697_s4 + $0xbb0] sm:$0xff]  ;;  %v2760_v13 = vpack.c.bf16 %v2362_v6, %v2358_v5  ;;  %v2714_v20 = vpack.c.bf16 %v2359_v11, %v2355_v10 }
 0x18f   : > { %2741 = vmatprep.subr.bf16.mxu1 %v2740_v18  ;;  %v2366_v18 = vld [vmem:[%s3697_s4 + $0xbf8] sm:$0xff]  ;;  %v2762_v21 = vpack.c.bf16 %v2361_v14, %v2357_v12 }
 0x191   : > { %2695 = vmatpush1.bf16.msra.mxu0 %v2694_v24  ;;  %v2367_v24 = vld [vmem:[%s3697_s4 + $0xc00] sm:$0xff] }
 0x192   : > { %2743 = vmatpush1.bf16.msra.mxu1 %v2742_v25  ;;  %2697 = vmatprep.subr.bf16.mxu0 %v2696_v26  ;;  %v2365_v25 = vld [vmem:[%s3697_s4 + $0xbf0] sm:$0xff]  ;;  %v2764_v26 = vpack.c.bf16 %v2370_v19, %v2366_v18  ;;  %v2718_v32 = vpack.c.bf16 %v2367_v24, %v2363_v23 }
 0x193   : > { %2745 = vmatprep.subr.bf16.mxu1 %v2744_v30  ;;  %v2374_v30 = vld [vmem:[%s3697_s4 + $0xc38] sm:$0xff]  ;;  %v2766_v33 = vpack.c.bf16 %v2369_v27, %v2365_v25 }
 0x195   : > { %2699 = vmatpush1.bf16.msra.mxu0 %v2698_v36  ;;  %v2375_v36 = vld [vmem:[%s3697_s4 + $0xc40] sm:$0xff] }
 0x196   : > { %2747 = vmatpush1.bf16.msra.mxu1 %v2746_v37  ;;  %2701 = vmatprep.subr.bf16.mxu0 %v2700_v38  ;;  %v2768_v37 = vpack.c.bf16 %v2378_v31, %v2374_v30  ;;  %v2373_v38 = vld [vmem:[%s3697_s4 + $0xc30] sm:$0xff]  ;;  %v2722_v40 = vpack.c.bf16 %v2375_v36, %v2371_v35 }
 0x197   : > { %2749 = vmatprep.subr.bf16.mxu1 %v2748_v42  ;;  %v2770_v41 = vpack.c.bf16 %v2377_v39, %v2373_v38  ;;  %v2380_v42 = vld [vmem:[%s3697_s4 + $0xc68] sm:$0xff] }
 0x199   : > { %2703 = vmatpush1.bf16.msra.mxu0 %v2702_v49 }
 0x19a   : > { %2751 = vmatpush1.bf16.msra.mxu1 %v2750_v50  ;;  %2705 = vmatprep.subr.bf16.mxu0 %v2704_v16 }
 0x19b   : > { %2753 = vmatprep.subr.bf16.mxu1 %v2752_v54 }
 0x19d   : > { %2707 = vmatpush1.bf16.msra.mxu0 %v2706_v59 }
 0x19e   : > { %2755 = vmatpush1.bf16.msra.mxu1 %v2754_v60  ;;  %2709 = vmatprep.subr.bf16.mxu0 %v2708_v61  ;;  %v1097_v51 = vpop.permute.xlu0 %1096 }
 0x19f   : > { %2757 = vmatprep.subr.bf16.mxu1 %v2756_v1 }
 0x1a1   : > { %2711 = vmatpush1.bf16.msra.mxu0 %v2710_v7 }
 0x1a2   : > { %2759 = vmatpush1.bf16.msra.mxu1 %v2758_v8  ;;  %2713 = vmatprep.subr.bf16.mxu0 %v2712_v9 }
 0x1a3   : > { %2761 = vmatprep.subr.bf16.mxu1 %v2760_v13 }
 0x1a5   : > { %2715 = vmatpush1.bf16.msra.mxu0 %v2714_v20 }
 0x1a6   : > { %2763 = vmatpush1.bf16.msra.mxu1 %v2762_v21  ;;  %2717 = vmatprep.subr.bf16.mxu0 %v2716_v22 }
 0x1a7   : > { %2765 = vmatprep.subr.bf16.mxu1 %v2764_v26 }
 0x1a9   : > { %2719 = vmatpush1.bf16.msra.mxu0 %v2718_v32 }
 0x1aa   : > { %2767 = vmatpush1.bf16.msra.mxu1 %v2766_v33  ;;  %2721 = vmatprep.subr.bf16.mxu0 %v2720_v34 }
 0x1ab   : > { %2769 = vmatprep.subr.bf16.mxu1 %v2768_v37 }
 0x1ad   : > { %2723 = vmatpush1.bf16.msra.mxu0 %v2722_v40 }
 0x1ae   : > { %2771 = vmatpush1.bf16.msra.mxu1 %v2770_v41  ;;  %1900 = vmatprep.subr.mxu0 %v2380_v42 }
 0x1af   : > { %1971 = vmatprep.subr.mxu1 %v2382_v44 }
 0x1b1   : > { %1901 = vmatpush1.msra.mxu0 %v2379_v45 }
 0x1b2   : > { %1972 = vmatpush1.msra.mxu1 %v2381_v46  ;;  %1917 = vmatmul.mubr.f32.vlgmr.msra.gmra.mrb[6].mxu0 %v2801_v47 }
 0x1b3   : > { %1988 = vmatmul.mubr.f32.vlgmr.msra.gmra.mrb[6].mxu1 %v2801_v47 }
 0x1ec   : > { %v1169_v48 = vpop.f32.mrb[0].mxu0 }
 0x1ed   : > { %v1171_v49 = vpop.f32.mrb[1].mxu0  ;;  %v1170_v52 = vadd.f32 %v1169_v48, %v1097_v51 }
 0x1ee   : > { %v1240_v50 = vpop.f32.mrb[0].mxu1  ;;  %v1172_v53 = vadd.f32 %v1171_v49, %v1097_v51 }
 0x1ef   : > { %v1242_v16 = vpop.f32.mrb[1].mxu1  ;;  %v1241_v54 = vadd.f32 %v1240_v50, %v1097_v51  ;;  %v1245_v62 = vmax.f32 %v1170_v52, 0.0 }
 0x1f0   : > { %v1243_v56 = vadd.f32 %v1242_v16, %v1097_v51  ;;  %v1246_v1 = vmax.f32 %v1172_v53, 0.0 }
 0x1f1   : > { %v1247_v2 = vmax.f32 %v1241_v54, 0.0 }
 0x1f2   : > { %v1248_v5 = vmax.f32 %v1243_v56, 0.0 }
 0x21f   : > { %v1416_v55 = vpop.f32.mrb[2].mxu0 }
 0x220   : > { %v1417_v43 = vadd.f32 %v1416_v55, %v1097_v51  ;;  %v1487_v57 = vpop.f32.mrb[2].mxu1  ;;  %v1418_v58 = vpop.f32.mrb[3].mxu0 }
 0x221   : > { %v1488_v59 = vadd.f32 %v1487_v57, %v1097_v51  ;;  %v1419_v60 = vadd.f32 %v1418_v58, %v1097_v51  ;;  %v1489_v61 = vpop.f32.mrb[3].mxu1 }
 0x222   : > { %v1492_v63 = vmax.f32 %v1417_v43, 0.0  ;;  %v1490_v0 = vadd.f32 %v1489_v61, %v1097_v51 }
 0x223   : > { %v1494_v3 = vmax.f32 %v1488_v59, 0.0  ;;  %v1493_v4 = vmax.f32 %v1419_v60, 0.0 }
 0x224   : > { %v1496_v6 = vmax.f32 %v1245_v62, %v1492_v63  ;;  %v1495_v7 = vmax.f32 %v1490_v0, 0.0 }
 0x225   : > { %v1498_v8 = vmax.f32 %v1247_v2, %v1494_v3  ;;  %v1497_v9 = vmax.f32 %v1246_v1, %v1493_v4 }
 0x226   : > { %v1499_v10 = vmax.f32 %v1248_v5, %v1495_v7 }
 0x252   : > { %v1667_v11 = vpop.f32.mrb[4].mxu0 }
 0x253   : > { %v1668_v12 = vadd.f32 %v1667_v11, %v1097_v51  ;;  %v1738_v13 = vpop.f32.mrb[4].mxu1  ;;  %v1669_v14 = vpop.f32.mrb[5].mxu0 }
 0x254   : > { %v1739_v15 = vadd.f32 %v1738_v13, %v1097_v51  ;;  %v1670_v17 = vadd.f32 %v1669_v14, %v1097_v51  ;;  %v1740_v18 = vpop.f32.mrb[5].mxu1 }
 0x255   : > { %v1743_v19 = vmax.f32 %v1668_v12, 0.0  ;;  %v1741_v20 = vadd.f32 %v1740_v18, %v1097_v51 }
 0x256   : > { %v1745_v21 = vmax.f32 %v1739_v15, 0.0  ;;  %v1744_v22 = vmax.f32 %v1670_v17, 0.0 }
 0x257   : > { %v1747_v23 = vmax.f32 %v1496_v6, %v1743_v19  ;;  %v1746_v24 = vmax.f32 %v1741_v20, 0.0 }
 0x258   : > { %v1749_v25 = vmax.f32 %v1498_v8, %v1745_v21  ;;  %v1748_v26 = vmax.f32 %v1497_v9, %v1744_v22 }
 0x259   : > { %v1750_v27 = vmax.f32 %v1499_v10, %v1746_v24 }
 0x285   : > { %v1918_v28 = vpop.f32.mrb[6].mxu0 }
 0x286   : > { %v1919_v29 = vadd.f32 %v1918_v28, %v1097_v51  ;;  %v1989_v30 = vpop.f32.mrb[6].mxu1  ;;  %v1920_v31 = vpop.f32.mrb[7].mxu0 }
 0x287   : > { %v1990_v32 = vadd.f32 %v1989_v30, %v1097_v51  ;;  %v1921_v33 = vadd.f32 %v1920_v31, %v1097_v51  ;;  %v1991_v34 = vpop.f32.mrb[7].mxu1 }
 0x288   : > { %v1994_v35 = vmax.f32 %v1919_v29, 0.0  ;;  %v1992_v36 = vadd.f32 %v1991_v34, %v1097_v51 }
 0x289   : > { %v1996_v37 = vmax.f32 %v1990_v32, 0.0  ;;  %v1995_v38 = vmax.f32 %v1921_v33, 0.0 }
 0x28a   : > { %v1998_v39 = vmax.f32 %v1747_v23, %v1994_v35  ;;  %v1997_v40 = vmax.f32 %v1992_v36, 0.0 }
 0x28b   : > { %v2000_v41 = vmax.f32 %v1749_v25, %v1996_v37  ;;  %v1999_v42 = vmax.f32 %v1748_v26, %v1995_v38 }
 0x28c   : > { %2002 = vst [vmem:[%s989_s22] sm:$0xff] %v1998_v39  ;;  %v2001_v44 = vmax.f32 %v1750_v27, %v1997_v40 }
 0x28d   : > { %2003 = vst [vmem:[%s989_s22 + $0x8] sm:$0xff] %v1999_v42  ;;  %2004 = vst [vmem:[%s989_s22 + $0x10] sm:$0xff] %v2000_v41 }
 0x28e   : > { %2005 = vst [vmem:[%s989_s22 + $0x18] sm:$0xff] %v2001_v44 }
 0x28f PF: > { %p10_p9 = scmp.ge.s32.totalorder %s2864_s16, 4   ;;  %s4148_s12 = smov %s2820_s13 }
 0x290   : > { %s4149_s13 = smov %s2873_s19  ;;  %s4150_s14 = smov %s2864_s16 }
 0x291   :  { %12 = sbr.rel (!%p10_p9) target bundleno = 2 (0x2), region = 93 }

// kernel: net_forward.7
= control target key start
LH: loop header
LB: loop body
LE: loop exit
PB: predicated region body
PF: predicated region fallthrough
CT: control target
= control target key end

     0   :  { %v378_v3 = vmov 0.0|0.0   ;;  %vm379_vm0 = vmmov 0   ;;  %v380_v63 = vmov 0.0   ;;  %vm170_vm1 = vcmask 523264   ;;  %s566_s1 = inlined_call_operand.vmem [shape: f32[256,64], index: 1, kind: input, shape index: {}]   ;;  %s567_s0 = inlined_call_operand.vmem [shape: f32[8,256], index: 0, kind: input, shape index: {}]   ;;  %s568_s5 = inlined_call_operand.vmem [shape: f32[64,128], index: 5, kind: input, shape index: {}]   ;;  %s569_s2 = inlined_call_operand.vmem [shape: f32[1,64], index: 2, kind: input, shape index: {}]   ;;  %s570_s3 = inlined_call_operand.vmem [shape: f32[1,64], index: 3, kind: input, shape index: {}]   ;;  %s571_s4 = inlined_call_operand.vmem [shape: f32[1,64], index: 4, kind: input, shape index: {}]   ;;  %s572_s6 = inlined_call_operand.vmem [shape: f32[1,128], index: 6, kind: input, shape index: {}]   ;;  %s573_s7 = inlined_call_operand.vmem [shape: f32[8,128], index: 7, kind: output, shape index: {}]  }
   0x1   :  { %v44_v0 = vld [vmem:[%s566_s1 + $0x80] sm:$0xff]  ;;  %v45_v1 = vld [vmem:[%s566_s1 + $0x88] sm:$0xff]  ;;  %359 = vmatprep.subr.bf16.mxu1 %v378_v3  ;;  %v46_v6 = vld [vmem:[%s566_s1 + $0x90] sm:$0xff]  ;;  %324 = vmatprep.mubr.msk.f32.mxu1 %vm379_vm0, %v380_v63 }
   0x2   :  { %v28_v2 = vld [vmem:[%s566_s1] sm:$0xff]  ;;  %v327_v4 = vpack.c.bf16 %v45_v1, %v44_v0  ;;  %v29_v5 = vld [vmem:[%s566_s1 + $0x8] sm:$0xff]  ;;  %v47_v7 = vld [vmem:[%s566_s1 + $0x98] sm:$0xff] }
   0x3   :  { %v329_v8 = vpack.c.bf16 %v29_v5, %v28_v2  ;;  %v331_v9 = vpack.c.bf16 %v47_v7, %v46_v6  ;;  %v30_v10 = vld [vmem:[%s566_s1 + $0x10] sm:$0xff]  ;;  %v31_v11 = vld [vmem:[%s566_s1 + $0x18] sm:$0xff]  ;;  %v48_v12 = vld [vmem:[%s566_s1 + $0xa0] sm:$0xff] }
   0x4   :  { %328 = vmatprep.subr.bf16.mxu0 %v327_v4  ;;  %v49_v13 = vld [vmem:[%s566_s1 + $0xa8] sm:$0xff]  ;;  %v333_v14 = vpack.c.bf16 %v31_v11, %v30_v10  ;;  %v32_v16 = vld [vmem:[%s566_s1 + $0x20] sm:$0xff]  ;;  %v50_v18 = vld [vmem:[%s566_s1 + $0xb0] sm:$0xff] }
   0x5   :  { %330 = vmatpush3.bf16.msra.mxu0 %v329_v8  ;;  %v335_v15 = vpack.c.bf16 %v49_v13, %v48_v12  ;;  %v33_v17 = vld [vmem:[%s566_s1 + $0x28] sm:$0xff]  ;;  %v51_v19 = vld [vmem:[%s566_s1 + $0xb8] sm:$0xff]  ;;  %v34_v22 = vld [vmem:[%s566_s1 + $0x30] sm:$0xff] }
   0x6   :  { %332 = vmatprep.subr.bf16.mxu0 %v331_v9  ;;  %v337_v20 = vpack.c.bf16 %v33_v17, %v32_v16  ;;  %v339_v21 = vpack.c.bf16 %v51_v19, %v50_v18  ;;  %v35_v23 = vld [vmem:[%s566_s1 + $0x38] sm:$0xff]  ;;  %v52_v24 = vld [vmem:[%s566_s1 + $0xc0] sm:$0xff]  ;;  %v53_v25 = vld [vmem:[%s566_s1 + $0xc8] sm:$0xff] }
   0x7   :  { %v27_v26 = vld [vmem:[%s567_s0 + $0x8] sm:$0xff]  ;;  %v155_v27 = vld [vmem:[%s568_s5] sm:$0xff]  ;;  %v341_v29 = vpack.c.bf16 %v35_v23, %v34_v22  ;;  %v343_v31 = vpack.c.bf16 %v53_v25, %v52_v24  ;;  %v54_v34 = vld [vmem:[%s566_s1 + $0xd0] sm:$0xff] }
   0x8   :  { %131 = vmatprep.mubr.f32.mxu0 %v27_v26  ;;  %v156_v28 = vld [vmem:[%s568_s5 + $0x8] sm:$0xff]  ;;  %v36_v32 = vld [vmem:[%s566_s1 + $0x40] sm:$0xff]  ;;  %v55_v35 = vld [vmem:[%s566_s1 + $0xd8] sm:$0xff] }
   0x9   :  { %334 = vmatpush3.bf16.msra.mxu0 %v333_v14  ;;  %v360_v30 = vpack.c.bf16 %v156_v28, %v155_v27  ;;  %v37_v33 = vld [vmem:[%s566_s1 + $0x48] sm:$0xff]  ;;  %v347_v37 = vpack.c.bf16 %v55_v35, %v54_v34  ;;  %v38_v38 = vld [vmem:[%s566_s1 + $0x50] sm:$0xff]  ;;  %v39_v39 = vld [vmem:[%s566_s1 + $0x58] sm:$0xff] }
   0xa   :  { %336 = vmatprep.subr.bf16.mxu0 %v335_v15  ;;  %v345_v36 = vpack.c.bf16 %v37_v33, %v36_v32  ;;  %v56_v40 = vld [vmem:[%s566_s1 + $0xe0] sm:$0xff]  ;;  %v57_v41 = vld [vmem:[%s566_s1 + $0xe8] sm:$0xff]  ;;  %v349_v42 = vpack.c.bf16 %v39_v39, %v38_v38  ;;  %v58_v46 = vld [vmem:[%s566_s1 + $0xf0] sm:$0xff] }
   0xb   :  { %361 = vmatpush3.bf16.msra.mxu1 %v360_v30  ;;  %v351_v43 = vpack.c.bf16 %v57_v41, %v56_v40  ;;  %v40_v44 = vld [vmem:[%s566_s1 + $0x60] sm:$0xff]  ;;  %v41_v45 = vld [vmem:[%s566_s1 + $0x68] sm:$0xff]  ;;  %v59_v47 = vld [vmem:[%s566_s1 + $0xf8] sm:$0xff] }
   0xc   :  { %362 = vmatprep.subr.bf16.mxu1 %v378_v3  ;;  %v353_v48 = vpack.c.bf16 %v41_v45, %v40_v44  ;;  %v355_v49 = vpack.c.bf16 %v59_v47, %v58_v46  ;;  %v42_v50 = vld [vmem:[%s566_s1 + $0x70] sm:$0xff]  ;;  %v43_v51 = vld [vmem:[%s566_s1 + $0x78] sm:$0xff]  ;;  %v26_v53 = vld [vmem:[%s567_s0] sm:$0xff] }
   0xd   :  { %338 = vmatpush3.bf16.msra.mxu0 %v337_v20  ;;  %v357_v52 = vpack.c.bf16 %v43_v51, %v42_v50  ;;  %v157_v54 = vld [vmem:[%s568_s5 + $0x10] sm:$0xff]  ;;  %v158_v55 = vld [vmem:[%s568_s5 + $0x18] sm:$0xff]  ;;  %v159_v57 = vld [vmem:[%s568_s5 + $0x20] sm:$0xff] }
   0xe   :  { %340 = vmatprep.subr.bf16.mxu0 %v339_v21  ;;  %v363_v56 = vpack.c.bf16 %v158_v55, %v157_v54  ;;  %v160_v58 = vld [vmem:[%s568_s5 + $0x28] sm:$0xff]  ;;  %v161_v60 = vld [vmem:[%s568_s5 + $0x30] sm:$0xff]  ;;  %v162_v61 = vld [vmem:[%s568_s5 + $0x38] sm:$0xff] }
   0xf   :  { %v366_v59 = vpack.c.bf16 %v160_v58, %v159_v57  ;;  %v369_v62 = vpack.c.bf16 %v162_v61, %v161_v60  ;;  %v259_v1 = vld [vmem:[%s569_s2] ss:$0 sm:$0xff] }
  0x10   :  { %364 = vmatpush3.bf16.msra.mxu1 %v363_v56  ;;  %v260_v5 = vld [vmem:[%s570_s3] ss:$0 sm:$0xff] }
  0x11   :  { %342 = vmatpush3.bf16.msra.mxu0 %v341_v29  ;;  %365 = vmatprep.subr.bf16.mxu1 %v378_v3  ;;  %v261_v7 = vld [vmem:[%s571_s4] ss:$0 sm:$0xff] }
  0x12   :  { %344 = vmatprep.subr.bf16.mxu0 %v343_v31  ;;  %v262_v11 = vld [vmem:[%s572_s6] ss:$0 sm:$0xff] }
  0x14   :  { %367 = vmatpush3.bf16.msra.mxu1 %v366_v59 }
  0x15   :  { %346 = vmatpush3.bf16.msra.mxu0 %v345_v36  ;;  %368 = vmatprep.subr.bf16.mxu1 %v378_v3 }
  0x16   :  { %348 = vmatprep.subr.bf16.mxu0 %v347_v37 }
  0x18   :  { %370 = vmatpush3.bf16.msra.mxu1 %v369_v62 }
  0x19   :  { %350 = vmatpush3.bf16.msra.mxu0 %v349_v42 }
  0x1a   :  { %352 = vmatprep.subr.bf16.mxu0 %v351_v43 }
  0x1d   :  { %354 = vmatpush3.bf16.msra.mxu0 %v353_v48 }
  0x1e   :  { %356 = vmatprep.subr.bf16.mxu0 %v355_v49 }
  0x21   :  { %358 = vmatpush3.bf16.msra.mxu0 %v357_v52 }
  0x24   :  { %132 = vmatmul.mubr.f32.vlgmr.msra.gmra.mrb[0].mxu0 %v26_v53 }
  0xf7   :  { %v296_v0 = vpop.f32.mrb[0].mxu0 }
  0xf8   :  { %v297_v2 = vpop.f32.mrb[1].mxu0 }
  0xf9   :  { %v298_v3 = vadd.f32 %v297_v2, %v296_v0 }
  0xfb   :  { %v134_v4 = vadd.f32 %v298_v3, %v259_v1 }
  0xfd   :  { %v137_v6 = vmax.f32 %v134_v4, 0.0 }
  0xff   :  { %v145_v8 = vmul.f32 %v260_v5, %v137_v6 }
 0x101   :  { %v153_v9 = vadd.f32 %v261_v7, %v145_v8 }
 0x103   :  { %v154_v10 = vmax.f32 %v153_v9, 0.0 }
 0x105   :  { %325 = vmatmul.mubr.msk.f32.vlgmr.msra.gmra.mrb[0].mxu1 %vm170_vm1, %v154_v10 }
 0x1d8   :  { %v240_v12 = vpop.f32.mrb[0].mxu1 }
 0x1d9   :  { %v241_v13 = vadd.f32 %v262_v11, %v240_v12  ;;  %v326_v14 = vpop.f32.mrb[1].mxu1 }
 0x1db   :  { %244 = vmax.xlane.f32.xlu0 %v241_v13 }
 0x268   :  { %v245_v15 = vpop.xlane.xlu0 %244 }
 0x269   :  { %v246_v16 = vsub.f32 %v241_v13, %v245_v15 }
 0x26b   :  { %v247_v17 = vmul.f32 1.442695, %v246_v16 }
 0x26d   :  { %374 = vpow2.f32 %v247_v17 }
 0x277   :  { %v375_v18 = vpop.eup %374 }
 0x278   :  { %249 = vadd.xlane.f32.xlu0 %v375_v18 }
 0x305   :  { %v250_v19 = vpop.xlane.xlu0 %249 }
 0x306   :  { %376 = vlog2.f32 %v250_v19 }
 0x310   :  { %v377_v20 = vpop.eup %376 }
 0x311   :  { %v252_v21 = vmul.f32 0.6931472, %v377_v20 }
 0x313   :  { %v253_v22 = vsub.f32 %v246_v16, %v252_v21 }
 0x315   :  { %254 = vst [vmem:[%s573_s7] sm:$0xff] %v253_v22 }

// kernel: net_forward.6
= control target key start
LH: loop header
LB: loop body
LE: loop exit
PB: predicated region body
PF: predicated region fallthrough
CT: control target
= control target key end

     0   :  { %v691_v0 = vmov 0.0|0.0   ;;  %v692_v8 = vmov 0   ;;  %vm55_vm0 = vcmask 588800   ;;  %s1122_s0 = inlined_call_operand.vmem [shape: f32[4,200,128], index: 0, kind: input, shape index: {}]   ;;  %s1123_s1 = inlined_call_operand.vmem [shape: f32[16,200], index: 1, kind: input, shape index: {}]   ;;  %s1124_s2 = inlined_call_operand.vmem [shape: f32[16,1], index: 2, kind: input, shape index: {}]   ;;  %s1125_s3 = inlined_call_operand.vmem [shape: f32[16,128], index: 3, kind: output, shape index: {}]  }
   0x1   :  { %543 = vmatprep.subr.bf16.mxu0 %v691_v0  ;;  %579 = vmatprep.subr.bf16.mxu1 %v691_v0  ;;  %v18_v1 = vld [vmem:[%s1122_s0] sm:$0xff]  ;;  %v19_v2 = vld [vmem:[%s1122_s0 + $0x8] sm:$0xff]  ;;  %v463_v5 = vld [vmem:[%s1122_s0 + $0xd0] sm:$0xff] }
   0x2   :  { %v462_v3 = vld [vmem:[%s1122_s0 + $0xc8] sm:$0xff]  ;;  %v544_v4 = vpack.c.bf16 %v19_v2, %v18_v1  ;;  %v20_v6 = vld [vmem:[%s1122_s0 + $0x10] sm:$0xff]  ;;  %v21_v7 = vld [vmem:[%s1122_s0 + $0x18] sm:$0xff]  ;;  %690 = vset.pattern.permute.xlu0 %v692_v8 }
   0x3   :  { %v580_v9 = vpack.c.bf16 %v463_v5, %v462_v3  ;;  %v464_v10 = vld [vmem:[%s1122_s0 + $0xd8] sm:$0xff]  ;;  %v465_v11 = vld [vmem:[%s1122_s0 + $0xe0] sm:$0xff]  ;;  %v547_v12 = vpack.c.bf16 %v21_v7, %v20_v6  ;;  %v23_v15 = vld [vmem:[%s1122_s0 + $0x28] sm:$0xff] }
   0x4   :  { %545 = vmatpush1.bf16.msra.mxu0 %v544_v4  ;;  %v583_v13 = vpack.c.bf16 %v465_v11, %v464_v10  ;;  %v22_v14 = vld [vmem:[%s1122_s0 + $0x20] sm:$0xff]  ;;  %v466_v16 = vld [vmem:[%s1122_s0 + $0xe8] sm:$0xff]  ;;  %v467_v17 = vld [vmem:[%s1122_s0 + $0xf0] sm:$0xff] }
   0x5   :  { %581 = vmatpush1.bf16.msra.mxu1 %v580_v9  ;;  %546 = vmatprep.subr.bf16.mxu0 %v691_v0  ;;  %v550_v18 = vpack.c.bf16 %v23_v15, %v22_v14  ;;  %v586_v19 = vpack.c.bf16 %v467_v17, %v466_v16  ;;  %v24_v20 = vld [vmem:[%s1122_s0 + $0x30] sm:$0xff]  ;;  %v25_v21 = vld [vmem:[%s1122_s0 + $0x38] sm:$0xff]  ;;  %v469_v23 = vld [vmem:[%s1122_s0 + $0x100] sm:$0xff]  ;;  %v693_v16 = vmov 0.0  }
   0x6   :  { %582 = vmatprep.subr.bf16.mxu1 %v691_v0  ;;  %v468_v22 = vld [vmem:[%s1122_s0 + $0xf8] sm:$0xff]  ;;  %v553_v24 = vpack.c.bf16 %v25_v21, %v24_v20  ;;  %v26_v26 = vld [vmem:[%s1122_s0 + $0x40] sm:$0xff]  ;;  %v27_v27 = vld [vmem:[%s1122_s0 + $0x48] sm:$0xff] }
   0x7   :  { %v589_v25 = vpack.c.bf16 %v469_v23, %v468_v22  ;;  %v470_v28 = vld [vmem:[%s1122_s0 + $0x108] sm:$0xff]  ;;  %v471_v29 = vld [vmem:[%s1122_s0 + $0x110] sm:$0xff]  ;;  %v556_v30 = vpack.c.bf16 %v27_v27, %v26_v26  ;;  %v29_v33 = vld [vmem:[%s1122_s0 + $0x58] sm:$0xff] }
   0x8   :  { %548 = vmatpush1.bf16.msra.mxu0 %v547_v12  ;;  %v592_v31 = vpack.c.bf16 %v471_v29, %v470_v28  ;;  %v28_v32 = vld [vmem:[%s1122_s0 + $0x50] sm:$0xff]  ;;  %v792_v34 = vld [vmem:[%s1123_s1 + $0x8] sm:$0xff]  ;;  %v472_v35 = vld [vmem:[%s1122_s0 + $0x118] sm:$0xff] }
   0x9   :  { %584 = vmatpush1.bf16.msra.mxu1 %v583_v13  ;;  %549 = vmatprep.subr.bf16.mxu0 %v691_v0  ;;  %v473_v36 = vld [vmem:[%s1122_s0 + $0x120] sm:$0xff]  ;;  %v559_v37 = vpack.c.bf16 %v29_v33, %v28_v32  ;;  %v31_v40 = vld [vmem:[%s1122_s0 + $0x68] sm:$0xff]  ;;  %v475_v42 = vld [vmem:[%s1122_s0 + $0x130] sm:$0xff] }
   0xa   :  { %585 = vmatprep.subr.bf16.mxu1 %v691_v0  ;;  %460 = vmatprep.mubr.msk.f32.mxu0 %vm55_vm0, %v792_v34  ;;  %v595_v38 = vpack.c.bf16 %v473_v36, %v472_v35  ;;  %v30_v39 = vld [vmem:[%s1122_s0 + $0x60] sm:$0xff]  ;;  %v474_v41 = vld [vmem:[%s1122_s0 + $0x128] sm:$0xff]  ;;  %v32_v45 = vld [vmem:[%s1122_s0 + $0x70] sm:$0xff] }
   0xb   :  { %487 = vmatprep.mubr.msk.f32.mxu1 %vm55_vm0, %v792_v34  ;;  %v562_v43 = vpack.c.bf16 %v31_v40, %v30_v39  ;;  %v598_v44 = vpack.c.bf16 %v475_v42, %v474_v41  ;;  %v33_v46 = vld [vmem:[%s1122_s0 + $0x78] sm:$0xff]  ;;  %v477_v48 = vld [vmem:[%s1122_s0 + $0x140] sm:$0xff]  ;;  %v35_v52 = vld [vmem:[%s1122_s0 + $0x88] sm:$0xff] }
   0xc   :  { %551 = vmatpush1.bf16.msra.mxu0 %v550_v18  ;;  %v476_v47 = vld [vmem:[%s1122_s0 + $0x138] sm:$0xff]  ;;  %v565_v49 = vpack.c.bf16 %v33_v46, %v32_v45  ;;  %v34_v51 = vld [vmem:[%s1122_s0 + $0x80] sm:$0xff]  ;;  %v478_v53 = vld [vmem:[%s1122_s0 + $0x148] sm:$0xff] }
   0xd   :  { %587 = vmatpush1.bf16.msra.mxu1 %v586_v19  ;;  %552 = vmatprep.subr.bf16.mxu0 %v691_v0  ;;  %v601_v50 = vpack.c.bf16 %v477_v48, %v476_v47  ;;  %v479_v54 = vld [vmem:[%s1122_s0 + $0x150] sm:$0xff]  ;;  %v568_v55 = vpack.c.bf16 %v35_v52, %v34_v51  ;;  %v37_v58 = vld [vmem:[%s1122_s0 + $0x98] sm:$0xff]  ;;  %v481_v60 = vld [vmem:[%s1122_s0 + $0x160] sm:$0xff] }
   0xe   :  { %588 = vmatprep.subr.bf16.mxu1 %v691_v0  ;;  %v604_v56 = vpack.c.bf16 %v479_v54, %v478_v53  ;;  %v36_v57 = vld [vmem:[%s1122_s0 + $0x90] sm:$0xff]  ;;  %v480_v59 = vld [vmem:[%s1122_s0 + $0x158] sm:$0xff]  ;;  %v43_v61 = vld [vmem:[%s1124_s2] sm:$0xff] }
   0xf   :  { %v571_v62 = vpack.c.bf16 %v37_v58, %v36_v57  ;;  %47 = vperm.xlu0 %690, %v43_v61   ;;  %v607_v63 = vpack.c.bf16 %v481_v60, %v480_v59  ;;  %v38_v1 = vld [vmem:[%s1122_s0 + $0xa0] sm:$0xff]  ;;  %v39_v2 = vld [vmem:[%s1122_s0 + $0xa8] sm:$0xff]  ;;  %v483_v5 = vld [vmem:[%s1122_s0 + $0x170] sm:$0xff] }
  0x10   :  { %554 = vmatpush1.bf16.msra.mxu0 %v553_v24  ;;  %v44_v3 = vld [vmem:[%s1124_s2 + $0x8] sm:$0xff]  ;;  %v574_v6 = vpack.c.bf16 %v39_v2, %v38_v1  ;;  %v40_v8 = vld [vmem:[%s1122_s0 + $0xb0] sm:$0xff]  ;;  %v41_v9 = vld [vmem:[%s1122_s0 + $0xb8] sm:$0xff] }
  0x11   :  { %590 = vmatpush1.bf16.msra.mxu1 %v589_v25  ;;  %555 = vmatprep.subr.bf16.mxu0 %v691_v0  ;;  %v482_v4 = vld [vmem:[%s1122_s0 + $0x168] sm:$0xff]  ;;  %v484_v10 = vld [vmem:[%s1122_s0 + $0x178] sm:$0xff]  ;;  %v485_v11 = vld [vmem:[%s1122_s0 + $0x180] sm:$0xff]  ;;  %v577_v12 = vpack.c.bf16 %v41_v9, %v40_v8 }
  0x12   :  { %591 = vmatprep.subr.bf16.mxu1 %v691_v0  ;;  %v610_v7 = vpack.c.bf16 %v483_v5, %v482_v4  ;;  %v613_v13 = vpack.c.bf16 %v485_v11, %v484_v10  ;;  %v489_v14 = vld [vmem:[%s1122_s0 + $0x190] sm:$0xff]  ;;  %v490_v15 = vld [vmem:[%s1122_s0 + $0x198] sm:$0xff]  ;;  %v42_v17 = vld [vmem:[%s1122_s0 + $0xc0] sm:$0xff] }
  0x13   :  { %52 = vperm.xlu0 %690, %v44_v3   ;;  %v516_v18 = vld [vmem:[%s1122_s0 + $0x258] sm:$0xff]  ;;  %v517_v19 = vld [vmem:[%s1122_s0 + $0x260] sm:$0xff]  ;;  %v486_v20 = vld [vmem:[%s1122_s0 + $0x188] sm:$0xff]  ;;  %v616_v22 = vpack.c.bf16 %v490_v15, %v489_v14 }
  0x14   :  { %557 = vmatpush1.bf16.msra.mxu0 %v556_v30  ;;  %v920_v21 = vld [vmem:[%s1123_s1] sm:$0xff]  ;;  %v652_v23 = vpack.c.bf16 %v517_v19, %v516_v18  ;;  %v492_v25 = vld [vmem:[%s1122_s0 + $0x1a8] sm:$0xff]  ;;  %v519_v27 = vld [vmem:[%s1122_s0 + $0x270] sm:$0xff] }
  0x15   :  { %593 = vmatpush1.bf16.msra.mxu1 %v592_v31  ;;  %558 = vmatprep.subr.bf16.mxu0 %v691_v0  ;;  %v491_v24 = vld [vmem:[%s1122_s0 + $0x1a0] sm:$0xff]  ;;  %v518_v26 = vld [vmem:[%s1122_s0 + $0x268] sm:$0xff]  ;;  %v940_v28 = vld [vmem:[%s1123_s1 + $0x18] sm:$0xff] }
  0x16   :  { %594 = vmatprep.subr.bf16.mxu1 %v691_v0  ;;  %v619_v29 = vpack.c.bf16 %v492_v25, %v491_v24  ;;  %v946_v30 = vld [vmem:[%s1123_s1 + $0x10] sm:$0xff]  ;;  %v655_v31 = vpack.c.bf16 %v519_v27, %v518_v26  ;;  %v494_v33 = vld [vmem:[%s1122_s0 + $0x1b8] sm:$0xff]  ;;  %v521_v36 = vld [vmem:[%s1122_s0 + $0x280] sm:$0xff] }
  0x17   :  { %v493_v32 = vld [vmem:[%s1122_s0 + $0x1b0] sm:$0xff]  ;;  %v520_v35 = vld [vmem:[%s1122_s0 + $0x278] sm:$0xff]  ;;  %v495_v39 = vld [vmem:[%s1122_s0 + $0x1c0] sm:$0xff] }
  0x18   :  { %560 = vmatpush1.bf16.msra.mxu0 %v559_v37  ;;  %v622_v37 = vpack.c.bf16 %v494_v33, %v493_v32  ;;  %v496_v40 = vld [vmem:[%s1122_s0 + $0x1c8] sm:$0xff]  ;;  %v523_v42 = vld [vmem:[%s1122_s0 + $0x290] sm:$0xff]  ;;  %v498_v46 = vld [vmem:[%s1122_s0 + $0x1d8] sm:$0xff] }
  0x19   :  { %596 = vmatpush1.bf16.msra.mxu1 %v595_v38  ;;  %561 = vmatprep.subr.bf16.mxu0 %v691_v0  ;;  %v658_v38 = vpack.c.bf16 %v521_v36, %v520_v35  ;;  %v522_v41 = vld [vmem:[%s1122_s0 + $0x288] sm:$0xff]  ;;  %v497_v45 = vld [vmem:[%s1122_s0 + $0x1d0] sm:$0xff]  ;;  %v525_v47 = vld [vmem:[%s1122_s0 + $0x2a0] sm:$0xff] }
  0x1a   :  { %597 = vmatprep.subr.bf16.mxu1 %v691_v0  ;;  %v628_v48 = vpack.c.bf16 %v498_v46, %v497_v45  ;;  %v500_v51 = vld [vmem:[%s1122_s0 + $0x1e8] sm:$0xff]  ;;  %v527_v53 = vld [vmem:[%s1122_s0 + $0x2b0] sm:$0xff]  ;;  %v502_v57 = vld [vmem:[%s1122_s0 + $0x1f8] sm:$0xff] }
  0x1b   :  { %v526_v52 = vld [vmem:[%s1122_s0 + $0x2a8] sm:$0xff]  ;;  %v528_v58 = vld [vmem:[%s1122_s0 + $0x2b8] sm:$0xff]  ;;  %v529_v59 = vld [vmem:[%s1122_s0 + $0x2c0] sm:$0xff] }
  0x1c   :  { %563 = vmatpush1.bf16.msra.mxu0 %v562_v43  ;;  %v625_v43 = vpack.c.bf16 %v496_v40, %v495_v39  ;;  %v670_v61 = vpack.c.bf16 %v529_v59, %v528_v58  ;;  %v530_v1 = vld [vmem:[%s1122_s0 + $0x2c8] sm:$0xff]  ;;  %v531_v2 = vld [vmem:[%s1122_s0 + $0x2d0] sm:$0xff]  ;;  %v533_v8 = vld [vmem:[%s1122_s0 + $0x2e0] sm:$0xff] }
  0x1d   :  { %599 = vmatpush1.bf16.msra.mxu1 %v598_v44  ;;  %564 = vmatprep.subr.bf16.mxu0 %v691_v0  ;;  %v661_v44 = vpack.c.bf16 %v523_v42, %v522_v41  ;;  %v673_v4 = vpack.c.bf16 %v531_v2, %v530_v1  ;;  %v505_v5 = vld [vmem:[%s1122_s0 + $0x210] sm:$0xff]  ;;  %v507_v11 = vld [vmem:[%s1122_s0 + $0x220] sm:$0xff]  ;;  %v510_v19 = vld [vmem:[%s1122_s0 + $0x238] sm:$0xff] }
  0x1e   :  { %600 = vmatprep.subr.bf16.mxu1 %v691_v0  ;;  %v535_v14 = vld [vmem:[%s1122_s0 + $0x2f0] sm:$0xff]  ;;  %v511_v25 = vld [vmem:[%s1122_s0 + $0x240] sm:$0xff]  ;;  %v512_v26 = vld [vmem:[%s1122_s0 + $0x248] sm:$0xff] }
  0x1f   :  { %v509_v18 = vld [vmem:[%s1122_s0 + $0x230] sm:$0xff]  ;;  %v538_v27 = vld [vmem:[%s1122_s0 + $0x308] sm:$0xff]  ;;  %v540_v35 = vld [vmem:[%s1122_s0 + $0x318] sm:$0xff] }
  0x20   :  { %566 = vmatpush1.bf16.msra.mxu0 %v565_v49  ;;  %v513_v33 = vld [vmem:[%s1122_s0 + $0x250] sm:$0xff] }
  0x21   :  { %602 = vmatpush1.bf16.msra.mxu1 %v601_v50  ;;  %567 = vmatprep.subr.bf16.mxu0 %v691_v0  ;;  %v499_v50 = vld [vmem:[%s1122_s0 + $0x1e0] sm:$0xff] }
  0x22   :  { %603 = vmatprep.subr.bf16.mxu1 %v691_v0  ;;  %v631_v54 = vpack.c.bf16 %v500_v51, %v499_v50 }
  0x24   :  { %569 = vmatpush1.bf16.msra.mxu0 %v568_v55  ;;  %v667_v55 = vpack.c.bf16 %v527_v53, %v526_v52 }
  0x25   :  { %605 = vmatpush1.bf16.msra.mxu1 %v604_v56  ;;  %570 = vmatprep.subr.bf16.mxu0 %v691_v0  ;;  %v501_v56 = vld [vmem:[%s1122_s0 + $0x1f0] sm:$0xff] }
  0x26   :  { %606 = vmatprep.subr.bf16.mxu1 %v691_v0  ;;  %v634_v60 = vpack.c.bf16 %v502_v57, %v501_v56 }
  0x28   :  { %572 = vmatpush1.bf16.msra.mxu0 %v571_v62  ;;  %v503_v62 = vld [vmem:[%s1122_s0 + $0x200] sm:$0xff] }
  0x29   :  { %608 = vmatpush1.bf16.msra.mxu1 %v607_v63  ;;  %573 = vmatprep.subr.bf16.mxu0 %v691_v0  ;;  %v504_v63 = vld [vmem:[%s1122_s0 + $0x208] sm:$0xff] }
  0x2a   :  { %609 = vmatprep.subr.bf16.mxu1 %v691_v0  ;;  %v637_v3 = vpack.c.bf16 %v504_v63, %v503_v62 }
  0x2c   :  { %575 = vmatpush1.bf16.msra.mxu0 %v574_v6  ;;  %v506_v6 = vld [vmem:[%s1122_s0 + $0x218] sm:$0xff] }
  0x2d   :  { %611 = vmatpush1.bf16.msra.mxu1 %v610_v7  ;;  %576 = vmatprep.subr.bf16.mxu0 %v691_v0  ;;  %v532_v7 = vld [vmem:[%s1122_s0 + $0x2d8] sm:$0xff]  ;;  %v640_v9 = vpack.c.bf16 %v506_v6, %v505_v5 }
  0x2e   :  { %612 = vmatprep.subr.bf16.mxu1 %v691_v0  ;;  %v676_v10 = vpack.c.bf16 %v533_v8, %v532_v7 }
  0x30   :  { %578 = vmatpush1.bf16.msra.mxu0 %v577_v12  ;;  %v508_v12 = vld [vmem:[%s1122_s0 + $0x228] sm:$0xff] }
  0x31   :  { %614 = vmatpush1.bf16.msra.mxu1 %v613_v13  ;;  %110 = vmatprep.subr.mxu0 %v693_v16  ;;  %v534_v13 = vld [vmem:[%s1122_s0 + $0x2e8] sm:$0xff]  ;;  %v643_v15 = vpack.c.bf16 %v508_v12, %v507_v11 }
  0x32   :  { %213 = vmatprep.subr.mxu1 %v693_v16 }
  0x34   :  { %111 = vmatpush1.msra.mxu0 %v42_v17  ;;  %v679_v17 = vpack.c.bf16 %v535_v14, %v534_v13 }
  0x35   :  { %214 = vmatpush1.msra.mxu1 %v486_v20  ;;  %127 = vmatmul.mubr.f32.vlgmr.msra.gmra.mrb[0].mxu0 %v920_v21  ;;  %v536_v20 = vld [vmem:[%s1122_s0 + $0x2f8] sm:$0xff] }
  0x36   :  { %615 = vmatprep.subr.bf16.mxu0 %v691_v0  ;;  %651 = vmatprep.subr.bf16.mxu1 %v691_v0 }
  0x37   :  { %230 = vmatmul.mubr.f32.vlgmr.msra.gmra.mrb[0].mxu1 %v920_v21  ;;  %617 = vmatpush1.bf16.msra.mxu0 %v616_v22  ;;  %v537_v22 = vld [vmem:[%s1122_s0 + $0x300] sm:$0xff] }
  0x38   :  { %653 = vmatpush1.bf16.msra.mxu1 %v652_v23  ;;  %618 = vmatprep.subr.bf16.mxu0 %v691_v0  ;;  %v646_v23 = vpack.c.bf16 %v510_v19, %v509_v18  ;;  %v682_v24 = vpack.c.bf16 %v537_v22, %v536_v20 }
  0x39   :  { %654 = vmatprep.subr.bf16.mxu1 %v691_v0  ;;  %461 = vmatprep.mubr.msk.f32.mxu0 %vm55_vm0, %v940_v28 }
  0x3a   :  { %132 = vmatmul.mubr.f32.gmra.mrb[2].mxu0 %v946_v30  ;;  %488 = vmatprep.mubr.msk.f32.mxu1 %vm55_vm0, %v940_v28 }
  0x3b   :  { %620 = vmatpush1.bf16.msra.mxu0 %v619_v29  ;;  %235 = vmatmul.mubr.f32.gmra.mrb[2].mxu1 %v946_v30  ;;  %v539_v29 = vld [vmem:[%s1122_s0 + $0x310] sm:$0xff] }
  0x3c   :  { %656 = vmatpush1.bf16.msra.mxu1 %v655_v31  ;;  %621 = vmatprep.subr.bf16.mxu0 %v691_v0  ;;  %v649_v31 = vpack.c.bf16 %v512_v26, %v511_v25  ;;  %v685_v32 = vpack.c.bf16 %v539_v29, %v538_v27 }
  0x3d   :  { %657 = vmatprep.subr.bf16.mxu1 %v691_v0  ;;  %514 = vmatprep.mubr.msk.f32.mxu0 %vm55_vm0, %v792_v34 }
  0x3e   :  { %541 = vmatprep.mubr.msk.f32.mxu1 %vm55_vm0, %v792_v34  ;;  %v524_v34 = vld [vmem:[%s1122_s0 + $0x298] sm:$0xff] }
  0x3f   :  { %623 = vmatpush1.bf16.msra.mxu0 %v622_v37  ;;  %v664_v49 = vpack.c.bf16 %v525_v47, %v524_v34 }
  0x40   :  { %659 = vmatpush1.bf16.msra.mxu1 %v658_v38  ;;  %624 = vmatprep.subr.bf16.mxu0 %v691_v0 }
  0x41   :  { %660 = vmatprep.subr.bf16.mxu1 %v691_v0 }
  0x43   :  { %626 = vmatpush1.bf16.msra.mxu0 %v625_v43 }
  0x44   :  { %662 = vmatpush1.bf16.msra.mxu1 %v661_v44  ;;  %627 = vmatprep.subr.bf16.mxu0 %v691_v0 }
  0x45   :  { %663 = vmatprep.subr.bf16.mxu1 %v691_v0 }
  0x47   :  { %629 = vmatpush1.bf16.msra.mxu0 %v628_v48 }
  0x48   :  { %665 = vmatpush1.bf16.msra.mxu1 %v664_v49  ;;  %630 = vmatprep.subr.bf16.mxu0 %v691_v0 }
  0x49   :  { %666 = vmatprep.subr.bf16.mxu1 %v691_v0 }
  0x4b   :  { %632 = vmatpush1.bf16.msra.mxu0 %v631_v54 }
  0x4c   :  { %668 = vmatpush1.bf16.msra.mxu1 %v667_v55  ;;  %633 = vmatprep.subr.bf16.mxu0 %v691_v0 }
  0x4d   :  { %669 = vmatprep.subr.bf16.mxu1 %v691_v0 }
  0x4f   :  { %635 = vmatpush1.bf16.msra.mxu0 %v634_v60 }
  0x50   :  { %671 = vmatpush1.bf16.msra.mxu1 %v670_v61  ;;  %636 = vmatprep.subr.bf16.mxu0 %v691_v0 }
  0x51   :  { %672 = vmatprep.subr.bf16.mxu1 %v691_v0 }
  0x53   :  { %638 = vmatpush1.bf16.msra.mxu0 %v637_v3 }
  0x54   :  { %674 = vmatpush1.bf16.msra.mxu1 %v673_v4  ;;  %639 = vmatprep.subr.bf16.mxu0 %v691_v0 }
  0x55   :  { %675 = vmatprep.subr.bf16.mxu1 %v691_v0 }
  0x57   :  { %641 = vmatpush1.bf16.msra.mxu0 %v640_v9 }
  0x58   :  { %677 = vmatpush1.bf16.msra.mxu1 %v676_v10  ;;  %642 = vmatprep.subr.bf16.mxu0 %v691_v0 }
  0x59   :  { %678 = vmatprep.subr.bf16.mxu1 %v691_v0 }
  0x5b   :  { %644 = vmatpush1.bf16.msra.mxu0 %v643_v15 }
  0x5c   :  { %680 = vmatpush1.bf16.msra.mxu1 %v679_v17  ;;  %645 = vmatprep.subr.bf16.mxu0 %v691_v0 }
  0x5d   :  { %681 = vmatprep.subr.bf16.mxu1 %v691_v0 }
  0x5f   :  { %647 = vmatpush1.bf16.msra.mxu0 %v646_v23 }
  0x60   :  { %683 = vmatpush1.bf16.msra.mxu1 %v682_v24  ;;  %648 = vmatprep.subr.bf16.mxu0 %v691_v0 }
  0x61   :  { %684 = vmatprep.subr.bf16.mxu1 %v691_v0 }
  0x63   :  { %650 = vmatpush1.bf16.msra.mxu0 %v649_v31 }
  0x64   :  { %686 = vmatpush1.bf16.msra.mxu1 %v685_v32  ;;  %318 = vmatprep.subr.mxu0 %v693_v16 }
  0x65   :  { %423 = vmatprep.subr.mxu1 %v693_v16 }
  0x67   :  { %319 = vmatpush1.msra.mxu0 %v513_v33 }
  0x68   :  { %424 = vmatpush1.msra.mxu1 %v540_v35  ;;  %335 = vmatmul.mubr.f32.vlgmr.msra.gmra.mrb[4].mxu0 %v920_v21 }
  0x69   :  { %440 = vmatmul.mubr.f32.vlgmr.msra.gmra.mrb[4].mxu1 %v920_v21  ;;  %515 = vmatprep.mubr.msk.f32.mxu0 %vm55_vm0, %v940_v28 }
  0x6a   :  { %542 = vmatprep.mubr.msk.f32.mxu1 %vm55_vm0, %v940_v28 }
  0x6c   :  { %340 = vmatmul.mubr.f32.gmra.mrb[6].mxu0 %v946_v30 }
  0x6d   :  { %445 = vmatmul.mubr.f32.gmra.mrb[6].mxu1 %v946_v30 }
  0x8e   :  { %v48_v0 = vpop.permute.xlu0 %47 }
  0x92   :  { %v53_v42 = vpop.permute.xlu0 %52 }
 0x108   :  { %v128_v16 = vpop.f32.mrb[0].mxu0 }
 0x109   :  { %v130_v36 = vpop.f32.mrb[1].mxu0  ;;  %v129_v37 = vadd.f32 %v128_v16, %v48_v0 }
 0x10a   :  { %v231_v38 = vpop.f32.mrb[0].mxu1 }
 0x10b   :  { %v137_v39 = vmax.f32 %v129_v37, 0.0  ;;  %v232_v40 = vadd.f32 %v231_v38, %v48_v0  ;;  %v233_v41 = vpop.f32.mrb[1].mxu1 }
 0x10d   :  { %v240_v21 = vmax.f32 %v232_v40, 0.0  ;;  %v133_v43 = vpop.f32.mrb[2].mxu0 }
 0x10e   :  { %v134_v44 = vadd.f32 %v133_v43, %v53_v42  ;;  %v135_v45 = vpop.f32.mrb[3].mxu0  ;;  %v236_v46 = vpop.f32.mrb[2].mxu1 }
 0x10f   :  { %v242_v34 = vmax.f32 %v137_v39, %v240_v21  ;;  %v237_v28 = vadd.f32 %v236_v46, %v53_v42  ;;  %v238_v47 = vpop.f32.mrb[3].mxu1 }
 0x110   :  { %v138_v48 = vmax.f32 %v134_v44, 0.0 }
 0x111   :  { %v241_v49 = vmax.f32 %v237_v28, 0.0 }
 0x113   :  { %v243_v30 = vmax.f32 %v138_v48, %v241_v49 }
 0x13b   :  { %v336_v50 = vpop.f32.mrb[4].mxu0 }
 0x13c   :  { %v337_v51 = vadd.f32 %v336_v50, %v48_v0  ;;  %v441_v52 = vpop.f32.mrb[4].mxu1  ;;  %v338_v53 = vpop.f32.mrb[5].mxu0 }
 0x13d   :  { %v442_v54 = vadd.f32 %v441_v52, %v48_v0  ;;  %v443_v55 = vpop.f32.mrb[5].mxu1 }
 0x13e   :  { %v345_v56 = vmax.f32 %v337_v51, 0.0 }
 0x13f   :  { %v341_v57 = vpop.f32.mrb[6].mxu0  ;;  %v450_v59 = vmax.f32 %v442_v54, 0.0 }
 0x140   :  { %v347_v58 = vmax.f32 %v242_v34, %v345_v56  ;;  %v342_v60 = vadd.f32 %v341_v57, %v53_v42  ;;  %v446_v61 = vpop.f32.mrb[6].mxu1  ;;  %v343_v62 = vpop.f32.mrb[7].mxu0 }
 0x141   :  { %v447_v63 = vadd.f32 %v446_v61, %v53_v42  ;;  %v448_v1 = vpop.f32.mrb[7].mxu1 }
 0x142   :  { %v452_v2 = vmax.f32 %v347_v58, %v450_v59  ;;  %v346_v3 = vmax.f32 %v342_v60, 0.0 }
 0x143   :  { %v451_v5 = vmax.f32 %v447_v63, 0.0 }
 0x144   :  { %454 = vst [vmem:[%s1125_s3] sm:$0xff] %v452_v2  ;;  %v348_v4 = vmax.f32 %v243_v30, %v346_v3 }
 0x146   :  { %v453_v6 = vmax.f32 %v348_v4, %v451_v5 }
 0x148   :  { %455 = vst [vmem:[%s1125_s3 + $0x8] sm:$0xff] %v453_v6 }

</bundles_post_ra>
